<compile_context>
chip_gen: v7x
topology: tpu7x:2x2x1
jax: 0.10.0
libtpu: 0.0.40
codegen_flags: <defaults>
</compile_context>

<pallas_src>
import jax
import jax.numpy as jnp
from jax import lax
from jax.experimental import pallas as pl
from jax.experimental.pallas import tpu as pltpu


# ----------------------------------------------------------------------------
# Fused kernel factory (geometry is static, closed over).
# ----------------------------------------------------------------------------
def _make_fused_kernel(h, w):
    # Spatial sizes through the network (all convs stride 1, padding 0).
    h1, w1 = h - 1, w - 1          # conv1, k=2
    h2, w2 = h1 - 2, w1 - 2        # conv2, k=3
    h2p, w2p = h2 + 4, w2 + 4      # zero-pad 2 for conv_trans2 (k=3)
    h3, w3 = h2p - 2, w2p - 2      # conv_trans2 output (== h1, w1)
    h3p, w3p = h3 + 2, w3 + 2      # zero-pad 1 for conv_trans3 (k=2)
    h4, w4 = h3p - 1, w3p - 1      # conv_trans3 output (== h, w)

    def conv_flat(src_ref, w_ref, b_ref, hp, wp, kh, kw, act):
        """Valid stride-1 correlation + bias + activation on a flat
        (hp*wp, Cin) ref.  Returns a (L, Cout) value with L = (ho-1)*wp + wo;
        output pixel (i, j) lives at row i*wp + j (rows with j >= wo are
        wrap-around junk and are ignored by the caller)."""
        ho, wo = hp - kh + 1, wp - kw + 1
        L = (ho - 1) * wp + wo
        cout = w_ref.shape[-1]
        acc = jnp.zeros((L, cout), jnp.float32)
        for ki in range(kh):                      # static unroll: kh*kw dots
            for kj in range(kw):
                s = ki * wp + kj
                acc = acc + jnp.dot(src_ref[s:s + L, :],
                                    w_ref[ki * kw + kj],
                                    preferred_element_type=jnp.float32)
        acc = acc + b_ref[...]
        return jnp.tanh(acc) if act == "tanh" else jnp.maximum(acc, 0.0)

    def scatter_rows(dst_ref, y, ho, wo, wp_src, wp_dst, pad):
        """Copy the valid rows of a conv_flat result into dst_ref (flat
        (*, C) layout of spatial width wp_dst), offset by `pad` on both
        spatial axes (used to build the zero-padded convT inputs)."""
        for i in range(ho):
            d = (i + pad) * wp_dst + pad
            dst_ref[d:d + wo, :] = y[i * wp_src:i * wp_src + wo, :]

    def kernel(x_ref, w1_ref, b1_ref, w2_ref, b2_ref, w3_ref, b3_ref,
               w4_ref, b4_ref, o_ref, a1_ref, p2_ref, p3_ref):
        # conv1: Conv2d(13 -> 32, k=2) + tanh
        y = conv_flat(x_ref, w1_ref, b1_ref, h, w, 2, 2, "tanh")
        scatter_rows(a1_ref, y, h1, w1, w, w1, 0)

        # conv2: Conv2d(32 -> 64, k=3) + tanh, written into the zero-padded
        # (pad=2) VMEM buffer that feeds conv_trans2.
        y = conv_flat(a1_ref, w2_ref, b2_ref, h1, w1, 3, 3, "tanh")
        p2_ref[...] = jnp.zeros_like(p2_ref)
        scatter_rows(p2_ref, y, h2, w2, w1, w2p, 2)

        # conv_trans2: ConvTranspose2d(64 -> 32, k=3) + tanh
        #   == valid correlation of the padded input with the spatially
        #      flipped, in/out-swapped kernel (precomputed in prepare_params).
        y = conv_flat(p2_ref, w3_ref, b3_ref, h2p, w2p, 3, 3, "tanh")
        p3_ref[...] = jnp.zeros_like(p3_ref)
        scatter_rows(p3_ref, y, h3, w3, w2p, w3p, 1)

        # conv_trans3: ConvTranspose2d(32 -> 13, k=2) + relu
        y = conv_flat(p3_ref, w4_ref, b4_ref, h3p, w3p, 2, 2, "relu")
        scatter_rows(o_ref, y, h4, w4, w3p, w4, 0)

        # Dropout(p=0.0) is the identity -> no-op.

    scratch = [
        pltpu.VMEM((h1 * w1, 32), jnp.float32),    # conv1 activation
        pltpu.VMEM((h2p * w2p, 64), jnp.float32),  # padded conv2 activation
        pltpu.VMEM((h3p * w3p, 32), jnp.float32),  # padded conv_trans2 act.
    ]
    return kernel, (h4, w4), scratch


# ----------------------------------------------------------------------------
# One-time parameter re-layout (kept OUT of the jitted forward).
# ----------------------------------------------------------------------------
def prepare_params(params):
    def conv_w(w_oihw):                        # (Cout, Cin, kh, kw)
        cout, cin, kh, kw = w_oihw.shape
        # -> (kh*kw, Cin, Cout): one (Cin, Cout) matrix per spatial tap,
        # tap index = ki*kw + kj.
        return jnp.transpose(w_oihw, (2, 3, 1, 0)).reshape(kh * kw, cin, cout)

    def convT_w(w_iohw):                       # (Cin, Cout, kh, kw)
        # ConvTranspose2d(stride=1, padding=0) == pad-(k-1) + valid
        # correlation with the spatially flipped, in/out-swapped kernel.
        w = jnp.transpose(jnp.flip(w_iohw, axis=(2, 3)), (1, 0, 2, 3))
        return conv_w(w)

    (w1, b1), (w2, b2) = params["conv1"], params["conv2"]
    (w3, b3), (w4, b4) = params["convT2"], params["convT3"]
    f32 = jnp.float32
    return {
        "w1": conv_w(w1).astype(f32),  "b1": b1.reshape(1, -1).astype(f32),
        "w2": conv_w(w2).astype(f32),  "b2": b2.reshape(1, -1).astype(f32),
        "w3": convT_w(w3).astype(f32), "b3": b3.reshape(1, -1).astype(f32),
        "w4": convT_w(w4).astype(f32), "b4": b4.reshape(1, -1).astype(f32),
    }


# ----------------------------------------------------------------------------
# Public forward: NCHW in, NCHW out (matches the PyTorch module contract).
# ----------------------------------------------------------------------------
@jax.jit
def conv_autoencoder_forward(prep, x_nchw):
    n, c, h, w = x_nchw.shape
    assert c == 13
    # NCHW -> flat (N, H*W, C): channels on the 128-lane axis; the reshape is
    # free, the transpose is the only remaining layout op in the hot path.
    x = jnp.transpose(x_nchw, (0, 2, 3, 1)).reshape(n, h * w, c)

    kernel, (h4, w4), scratch = _make_fused_kernel(h, w)

    def full(shape):
        return pl.BlockSpec(shape, lambda b, _s=len(shape): (0,) * _s)

    out_flat = pl.pallas_call(
        kernel,
        out_shape=jax.ShapeDtypeStruct((n, h4 * w4, 13), jnp.float32),
        grid_spec=pltpu.PrefetchScalarGridSpec(
            num_scalar_prefetch=0,
            grid=(n,),                      # one image per step; v7x: per TC
            in_specs=[
                pl.BlockSpec((None, h * w, c), lambda b: (b, 0, 0)),
                full((4, 13, 32)), full((1, 32)),     # conv1
                full((9, 32, 64)), full((1, 64)),     # conv2
                full((9, 64, 32)), full((1, 32)),     # conv_trans2
                full((4, 32, 13)), full((1, 13)),     # conv_trans3
            ],
            out_specs=pl.BlockSpec((None, h4 * w4, 13), lambda b: (b, 0, 0)),
            scratch_shapes=scratch,
        ),
        compiler_params=pltpu.CompilerParams(
            dimension_semantics=("parallel",)),
    )(x, prep["w1"], prep["b1"], prep["w2"], prep["b2"],
      prep["w3"], prep["b3"], prep["w4"], prep["b4"])

    out = out_flat.reshape(n, h4, w4, 13)
    return jnp.transpose(out, (0, 3, 1, 2))          # NHWC -> NCHW


# ----------------------------------------------------------------------------
# Deterministic, PyTorch-like parameter init.
# ----------------------------------------------------------------------------
def init_params(key):
    def conv_p(k, cout, cin, ks):
        k1, k2 = jax.random.split(k)
        bound = 1.0 / jnp.sqrt(cin * ks * ks)
        w = jax.random.uniform(k1, (cout, cin, ks, ks), jnp.float32, -bound, bound)
        b = jax.random.uniform(k2, (cout,), jnp.float32, -bound, bound)
        return w, b

    def convT_p(k, cin, cout, ks):
        k1, k2 = jax.random.split(k)
        bound = 1.0 / jnp.sqrt(cout * ks * ks)
        w = jax.random.uniform(k1, (cin, cout, ks, ks), jnp.float32, -bound, bound)
        b = jax.random.uniform(k2, (cout,), jnp.float32, -bound, bound)
        return w, b

    ks = jax.random.split(key, 4)
    return {
        "conv1": conv_p(ks[0], 32, 13, 2),      # Conv2d(13, 32, k=2)
        "conv2": conv_p(ks[1], 64, 32, 3),      # Conv2d(32, 64, k=3)
        "convT2": convT_p(ks[2], 64, 32, 3),    # ConvTranspose2d(64, 32, k=3)
        "convT3": convT_p(ks[3], 32, 13, 2),    # ConvTranspose2d(32, 13, k=2)
    }


# ----------------------------------------------------------------------------
# Pure-JAX (lax conv) reference for correctness.
# ----------------------------------------------------------------------------
def _ref_forward(params, x):
    def conv(x, w, b):
        y = lax.conv_general_dilated(
            x, w, (1, 1), "VALID",
            dimension_numbers=("NCHW", "OIHW", "NCHW"))
        return y + b[None, :, None, None]

    def convT(x, w, b):
        cin, cout, kh, kw = w.shape
        xp = jnp.pad(x, ((0, 0), (0, 0), (kh - 1, kh - 1), (kw - 1, kw - 1)))
        wf = jnp.transpose(jnp.flip(w, axis=(2, 3)), (1, 0, 2, 3))
        return conv(xp, wf, b)

    w1, b1 = params["conv1"]; x = jnp.tanh(conv(x, w1, b1))
    w2, b2 = params["conv2"]; x = jnp.tanh(conv(x, w2, b2))
    w3, b3 = params["convT2"]; x = jnp.tanh(convT(x, w3, b3))
    w4, b4 = params["convT3"]; x = jax.nn.relu(convT(x, w4, b4))
    return x


if __name__ == "__main__":
    key = jax.random.PRNGKey(0)
    pkey, xkey = jax.random.split(key)
    params = init_params(pkey)
    prep = prepare_params(params)           # one-time weight re-layout

    # N=2, C=13, H=W=8 (NCHW), consistent with the module.
    x = jax.random.normal(xkey, (2, 13, 8, 8), jnp.float32)

    out = conv_autoencoder_forward(prep, x)
    out = jax.block_until_ready(out)
    assert out.shape == (2, 13, 8, 8), out.shape

    ref = jax.block_until_ready(_ref_forward(params, x))
    err = float(jnp.max(jnp.abs(out - ref)))
    assert err < 1e-4, f"max abs err {err}"

    print("KERNEL_OK")
</pallas_src>

<mosaic_0001>
module attributes {stable_mosaic.version = 11 : i64} {
  func.func @kernel(%arg0: i32, %arg1: memref<1x64x13xf32, #tpu.memory_space<vmem>>, %arg2: memref<4x13x32xf32, #tpu.memory_space<vmem>>, %arg3: memref<1x32xf32, #tpu.memory_space<vmem>>, %arg4: memref<9x32x64xf32, #tpu.memory_space<vmem>>, %arg5: memref<1x64xf32, #tpu.memory_space<vmem>>, %arg6: memref<9x64x32xf32, #tpu.memory_space<vmem>>, %arg7: memref<1x32xf32, #tpu.memory_space<vmem>>, %arg8: memref<4x32x13xf32, #tpu.memory_space<vmem>>, %arg9: memref<1x13xf32, #tpu.memory_space<vmem>>, %arg10: memref<1x64x13xf32, #tpu.memory_space<vmem>>, %arg11: memref<49x32xf32, #tpu.memory_space<vmem>>, %arg12: memref<81x64xf32, #tpu.memory_space<vmem>>, %arg13: memref<81x32xf32, #tpu.memory_space<vmem>>) attributes {dimension_semantics = [#tpu.dimension_semantics<parallel>], iteration_bounds = array<i64: 2>, scalar_prefetch = 0 : i64, scratch_operands = 3 : i64, tpu.core_type = #tpu.core_type<tc>, window_params = [{transform_indices = @transform_0, window_bounds = array<i64: 1, 64, 13>}, {pipeline_mode = #tpu.pipeline_mode<synchronous>, transform_indices = @transform_1, window_bounds = array<i64: 4, 13, 32>}, {pipeline_mode = #tpu.pipeline_mode<synchronous>, transform_indices = @transform_2, window_bounds = array<i64: 1, 32>}, {pipeline_mode = #tpu.pipeline_mode<synchronous>, transform_indices = @transform_3, window_bounds = array<i64: 9, 32, 64>}, {pipeline_mode = #tpu.pipeline_mode<synchronous>, transform_indices = @transform_4, window_bounds = array<i64: 1, 64>}, {pipeline_mode = #tpu.pipeline_mode<synchronous>, transform_indices = @transform_5, window_bounds = array<i64: 9, 64, 32>}, {pipeline_mode = #tpu.pipeline_mode<synchronous>, transform_indices = @transform_6, window_bounds = array<i64: 1, 32>}, {pipeline_mode = #tpu.pipeline_mode<synchronous>, transform_indices = @transform_7, window_bounds = array<i64: 4, 32, 13>}, {pipeline_mode = #tpu.pipeline_mode<synchronous>, transform_indices = @transform_8, window_bounds = array<i64: 1, 13>}, {transform_indices = @transform_9, window_bounds = array<i64: 1, 64, 13>}]} {
    %cst = arith.constant 0.000000e+00 : f32
    %0 = vector.broadcast %cst : f32 to vector<55x32xf32>
    %c0 = arith.constant 0 : index
    %c0_0 = arith.constant 0 : index
    %c0_1 = arith.constant 0 : index
    %1 = vector.load %arg1[%c0, %c0_0, %c0_1] : memref<1x64x13xf32, #tpu.memory_space<vmem>>, vector<1x55x13xf32>
    %2 = vector.shape_cast %1 : vector<1x55x13xf32> to vector<55x13xf32>
    %c0_2 = arith.constant 0 : index
    %c0_3 = arith.constant 0 : index
    %c0_4 = arith.constant 0 : index
    %3 = vector.load %arg2[%c0_2, %c0_3, %c0_4] : memref<4x13x32xf32, #tpu.memory_space<vmem>>, vector<1x13x32xf32>
    %4 = vector.shape_cast %3 : vector<1x13x32xf32> to vector<13x32xf32>
    %cst_5 = arith.constant dense<0.000000e+00> : vector<55x32xf32>
    %5 = tpu.matmul %2, %4, %cst_5 {dimension_numbers = #tpu.dot_dimension_numbers<[1], [0], [0], [1], [0, 0, 1, 1], [], []>} : vector<55x13xf32>, vector<13x32xf32>, vector<55x32xf32> -> vector<55x32xf32>
    %6 = arith.addf %0, %5 : vector<55x32xf32>
    %c0_6 = arith.constant 0 : index
    %c1 = arith.constant 1 : index
    %c0_7 = arith.constant 0 : index
    %7 = vector.load %arg1[%c0_6, %c1, %c0_7] : memref<1x64x13xf32, #tpu.memory_space<vmem>>, vector<1x55x13xf32>
    %8 = vector.shape_cast %7 : vector<1x55x13xf32> to vector<55x13xf32>
    %c1_8 = arith.constant 1 : index
    %c0_9 = arith.constant 0 : index
    %c0_10 = arith.constant 0 : index
    %9 = vector.load %arg2[%c1_8, %c0_9, %c0_10] : memref<4x13x32xf32, #tpu.memory_space<vmem>>, vector<1x13x32xf32>
    %10 = vector.shape_cast %9 : vector<1x13x32xf32> to vector<13x32xf32>
    %cst_11 = arith.constant dense<0.000000e+00> : vector<55x32xf32>
    %11 = tpu.matmul %8, %10, %cst_11 {dimension_numbers = #tpu.dot_dimension_numbers<[1], [0], [0], [1], [0, 0, 1, 1], [], []>} : vector<55x13xf32>, vector<13x32xf32>, vector<55x32xf32> -> vector<55x32xf32>
    %12 = arith.addf %6, %11 : vector<55x32xf32>
    %c0_12 = arith.constant 0 : index
    %c8 = arith.constant 8 : index
    %c0_13 = arith.constant 0 : index
    %13 = vector.load %arg1[%c0_12, %c8, %c0_13] : memref<1x64x13xf32, #tpu.memory_space<vmem>>, vector<1x55x13xf32>
    %14 = vector.shape_cast %13 : vector<1x55x13xf32> to vector<55x13xf32>
    %c2 = arith.constant 2 : index
    %c0_14 = arith.constant 0 : index
    %c0_15 = arith.constant 0 : index
    %15 = vector.load %arg2[%c2, %c0_14, %c0_15] : memref<4x13x32xf32, #tpu.memory_space<vmem>>, vector<1x13x32xf32>
    %16 = vector.shape_cast %15 : vector<1x13x32xf32> to vector<13x32xf32>
    %cst_16 = arith.constant dense<0.000000e+00> : vector<55x32xf32>
    %17 = tpu.matmul %14, %16, %cst_16 {dimension_numbers = #tpu.dot_dimension_numbers<[1], [0], [0], [1], [0, 0, 1, 1], [], []>} : vector<55x13xf32>, vector<13x32xf32>, vector<55x32xf32> -> vector<55x32xf32>
    %18 = arith.addf %12, %17 : vector<55x32xf32>
    %c0_17 = arith.constant 0 : index
    %c9 = arith.constant 9 : index
    %c0_18 = arith.constant 0 : index
    %19 = vector.load %arg1[%c0_17, %c9, %c0_18] : memref<1x64x13xf32, #tpu.memory_space<vmem>>, vector<1x55x13xf32>
    %20 = vector.shape_cast %19 : vector<1x55x13xf32> to vector<55x13xf32>
    %c3 = arith.constant 3 : index
    %c0_19 = arith.constant 0 : index
    %c0_20 = arith.constant 0 : index
    %21 = vector.load %arg2[%c3, %c0_19, %c0_20] : memref<4x13x32xf32, #tpu.memory_space<vmem>>, vector<1x13x32xf32>
    %22 = vector.shape_cast %21 : vector<1x13x32xf32> to vector<13x32xf32>
    %cst_21 = arith.constant dense<0.000000e+00> : vector<55x32xf32>
    %23 = tpu.matmul %20, %22, %cst_21 {dimension_numbers = #tpu.dot_dimension_numbers<[1], [0], [0], [1], [0, 0, 1, 1], [], []>} : vector<55x13xf32>, vector<13x32xf32>, vector<55x32xf32> -> vector<55x32xf32>
    %24 = arith.addf %18, %23 : vector<55x32xf32>
    %c0_22 = arith.constant 0 : index
    %c0_23 = arith.constant 0 : index
    %25 = vector.load %arg3[%c0_22, %c0_23] : memref<1x32xf32, #tpu.memory_space<vmem>>, vector<1x32xf32>
    %26 = vector.broadcast %25 : vector<1x32xf32> to vector<55x32xf32>
    %27 = arith.addf %24, %26 : vector<55x32xf32>
    %28 = math.tanh %27 : vector<55x32xf32>
    %29 = vector.extract_strided_slice %28 {offsets = [0, 0], sizes = [7, 32], strides = [1, 1]} : vector<55x32xf32> to vector<7x32xf32>
    %c0_24 = arith.constant 0 : index
    %c0_25 = arith.constant 0 : index
    %30 = vector.load %arg11[%c0_24, %c0_25] : memref<49x32xf32, #tpu.memory_space<vmem>>, vector<7x32xf32>
    tpu.vector_store %arg11[%c0_24, %c0_25], %29 {strides = array<i32>} : memref<49x32xf32, #tpu.memory_space<vmem>>, vector<7x32xf32>,
    %31 = vector.extract_strided_slice %28 {offsets = [8, 0], sizes = [7, 32], strides = [1, 1]} : vector<55x32xf32> to vector<7x32xf32>
    %c7 = arith.constant 7 : index
    %c0_26 = arith.constant 0 : index
    %32 = vector.load %arg11[%c7, %c0_26] : memref<49x32xf32, #tpu.memory_space<vmem>>, vector<7x32xf32>
    tpu.vector_store %arg11[%c7, %c0_26], %31 {strides = array<i32>} : memref<49x32xf32, #tpu.memory_space<vmem>>, vector<7x32xf32>,
    %33 = vector.extract_strided_slice %28 {offsets = [16, 0], sizes = [7, 32], strides = [1, 1]} : vector<55x32xf32> to vector<7x32xf32>
    %c14 = arith.constant 14 : index
    %c0_27 = arith.constant 0 : index
    %34 = vector.load %arg11[%c14, %c0_27] : memref<49x32xf32, #tpu.memory_space<vmem>>, vector<7x32xf32>
    tpu.vector_store %arg11[%c14, %c0_27], %33 {strides = array<i32>} : memref<49x32xf32, #tpu.memory_space<vmem>>, vector<7x32xf32>,
    %35 = vector.extract_strided_slice %28 {offsets = [24, 0], sizes = [7, 32], strides = [1, 1]} : vector<55x32xf32> to vector<7x32xf32>
    %c21 = arith.constant 21 : index
    %c0_28 = arith.constant 0 : index
    %36 = vector.load %arg11[%c21, %c0_28] : memref<49x32xf32, #tpu.memory_space<vmem>>, vector<7x32xf32>
    tpu.vector_store %arg11[%c21, %c0_28], %35 {strides = array<i32>} : memref<49x32xf32, #tpu.memory_space<vmem>>, vector<7x32xf32>,
    %37 = vector.extract_strided_slice %28 {offsets = [32, 0], sizes = [7, 32], strides = [1, 1]} : vector<55x32xf32> to vector<7x32xf32>
    %c28 = arith.constant 28 : index
    %c0_29 = arith.constant 0 : index
    %38 = vector.load %arg11[%c28, %c0_29] : memref<49x32xf32, #tpu.memory_space<vmem>>, vector<7x32xf32>
    tpu.vector_store %arg11[%c28, %c0_29], %37 {strides = array<i32>} : memref<49x32xf32, #tpu.memory_space<vmem>>, vector<7x32xf32>,
    %39 = vector.extract_strided_slice %28 {offsets = [40, 0], sizes = [7, 32], strides = [1, 1]} : vector<55x32xf32> to vector<7x32xf32>
    %c35 = arith.constant 35 : index
    %c0_30 = arith.constant 0 : index
    %40 = vector.load %arg11[%c35, %c0_30] : memref<49x32xf32, #tpu.memory_space<vmem>>, vector<7x32xf32>
    tpu.vector_store %arg11[%c35, %c0_30], %39 {strides = array<i32>} : memref<49x32xf32, #tpu.memory_space<vmem>>, vector<7x32xf32>,
    %41 = vector.extract_strided_slice %28 {offsets = [48, 0], sizes = [7, 32], strides = [1, 1]} : vector<55x32xf32> to vector<7x32xf32>
    %c42 = arith.constant 42 : index
    %c0_31 = arith.constant 0 : index
    %42 = vector.load %arg11[%c42, %c0_31] : memref<49x32xf32, #tpu.memory_space<vmem>>, vector<7x32xf32>
    tpu.vector_store %arg11[%c42, %c0_31], %41 {strides = array<i32>} : memref<49x32xf32, #tpu.memory_space<vmem>>, vector<7x32xf32>,
    %cst_32 = arith.constant 0.000000e+00 : f32
    %43 = vector.broadcast %cst_32 : f32 to vector<33x64xf32>
    %c0_33 = arith.constant 0 : index
    %c0_34 = arith.constant 0 : index
    %44 = vector.load %arg11[%c0_33, %c0_34] : memref<49x32xf32, #tpu.memory_space<vmem>>, vector<33x32xf32>
    %c0_35 = arith.constant 0 : index
    %c0_36 = arith.constant 0 : index
    %c0_37 = arith.constant 0 : index
    %45 = vector.load %arg4[%c0_35, %c0_36, %c0_37] : memref<9x32x64xf32, #tpu.memory_space<vmem>>, vector<1x32x64xf32>
    %46 = vector.shape_cast %45 : vector<1x32x64xf32> to vector<32x64xf32>
    %cst_38 = arith.constant dense<0.000000e+00> : vector<33x64xf32>
    %47 = tpu.matmul %44, %46, %cst_38 {dimension_numbers = #tpu.dot_dimension_numbers<[1], [0], [0], [1], [0, 0, 1, 1], [], []>} : vector<33x32xf32>, vector<32x64xf32>, vector<33x64xf32> -> vector<33x64xf32>
    %48 = arith.addf %43, %47 : vector<33x64xf32>
    %c1_39 = arith.constant 1 : index
    %c0_40 = arith.constant 0 : index
    %49 = vector.load %arg11[%c1_39, %c0_40] : memref<49x32xf32, #tpu.memory_space<vmem>>, vector<33x32xf32>
    %c1_41 = arith.constant 1 : index
    %c0_42 = arith.constant 0 : index
    %c0_43 = arith.constant 0 : index
    %50 = vector.load %arg4[%c1_41, %c0_42, %c0_43] : memref<9x32x64xf32, #tpu.memory_space<vmem>>, vector<1x32x64xf32>
    %51 = vector.shape_cast %50 : vector<1x32x64xf32> to vector<32x64xf32>
    %cst_44 = arith.constant dense<0.000000e+00> : vector<33x64xf32>
    %52 = tpu.matmul %49, %51, %cst_44 {dimension_numbers = #tpu.dot_dimension_numbers<[1], [0], [0], [1], [0, 0, 1, 1], [], []>} : vector<33x32xf32>, vector<32x64xf32>, vector<33x64xf32> -> vector<33x64xf32>
    %53 = arith.addf %48, %52 : vector<33x64xf32>
    %c2_45 = arith.constant 2 : index
    %c0_46 = arith.constant 0 : index
    %54 = vector.load %arg11[%c2_45, %c0_46] : memref<49x32xf32, #tpu.memory_space<vmem>>, vector<33x32xf32>
    %c2_47 = arith.constant 2 : index
    %c0_48 = arith.constant 0 : index
    %c0_49 = arith.constant 0 : index
    %55 = vector.load %arg4[%c2_47, %c0_48, %c0_49] : memref<9x32x64xf32, #tpu.memory_space<vmem>>, vector<1x32x64xf32>
    %56 = vector.shape_cast %55 : vector<1x32x64xf32> to vector<32x64xf32>
    %cst_50 = arith.constant dense<0.000000e+00> : vector<33x64xf32>
    %57 = tpu.matmul %54, %56, %cst_50 {dimension_numbers = #tpu.dot_dimension_numbers<[1], [0], [0], [1], [0, 0, 1, 1], [], []>} : vector<33x32xf32>, vector<32x64xf32>, vector<33x64xf32> -> vector<33x64xf32>
    %58 = arith.addf %53, %57 : vector<33x64xf32>
    %c7_51 = arith.constant 7 : index
    %c0_52 = arith.constant 0 : index
    %59 = vector.load %arg11[%c7_51, %c0_52] : memref<49x32xf32, #tpu.memory_space<vmem>>, vector<33x32xf32>
    %c3_53 = arith.constant 3 : index
    %c0_54 = arith.constant 0 : index
    %c0_55 = arith.constant 0 : index
    %60 = vector.load %arg4[%c3_53, %c0_54, %c0_55] : memref<9x32x64xf32, #tpu.memory_space<vmem>>, vector<1x32x64xf32>
    %61 = vector.shape_cast %60 : vector<1x32x64xf32> to vector<32x64xf32>
    %cst_56 = arith.constant dense<0.000000e+00> : vector<33x64xf32>
    %62 = tpu.matmul %59, %61, %cst_56 {dimension_numbers = #tpu.dot_dimension_numbers<[1], [0], [0], [1], [0, 0, 1, 1], [], []>} : vector<33x32xf32>, vector<32x64xf32>, vector<33x64xf32> -> vector<33x64xf32>
    %63 = arith.addf %58, %62 : vector<33x64xf32>
    %c8_57 = arith.constant 8 : index
    %c0_58 = arith.constant 0 : index
    %64 = vector.load %arg11[%c8_57, %c0_58] : memref<49x32xf32, #tpu.memory_space<vmem>>, vector<33x32xf32>
    %c4 = arith.constant 4 : index
    %c0_59 = arith.constant 0 : index
    %c0_60 = arith.constant 0 : index
    %65 = vector.load %arg4[%c4, %c0_59, %c0_60] : memref<9x32x64xf32, #tpu.memory_space<vmem>>, vector<1x32x64xf32>
    %66 = vector.shape_cast %65 : vector<1x32x64xf32> to vector<32x64xf32>
    %cst_61 = arith.constant dense<0.000000e+00> : vector<33x64xf32>
    %67 = tpu.matmul %64, %66, %cst_61 {dimension_numbers = #tpu.dot_dimension_numbers<[1], [0], [0], [1], [0, 0, 1, 1], [], []>} : vector<33x32xf32>, vector<32x64xf32>, vector<33x64xf32> -> vector<33x64xf32>
    %68 = arith.addf %63, %67 : vector<33x64xf32>
    %c9_62 = arith.constant 9 : index
    %c0_63 = arith.constant 0 : index
    %69 = vector.load %arg11[%c9_62, %c0_63] : memref<49x32xf32, #tpu.memory_space<vmem>>, vector<33x32xf32>
    %c5 = arith.constant 5 : index
    %c0_64 = arith.constant 0 : index
    %c0_65 = arith.constant 0 : index
    %70 = vector.load %arg4[%c5, %c0_64, %c0_65] : memref<9x32x64xf32, #tpu.memory_space<vmem>>, vector<1x32x64xf32>
    %71 = vector.shape_cast %70 : vector<1x32x64xf32> to vector<32x64xf32>
    %cst_66 = arith.constant dense<0.000000e+00> : vector<33x64xf32>
    %72 = tpu.matmul %69, %71, %cst_66 {dimension_numbers = #tpu.dot_dimension_numbers<[1], [0], [0], [1], [0, 0, 1, 1], [], []>} : vector<33x32xf32>, vector<32x64xf32>, vector<33x64xf32> -> vector<33x64xf32>
    %73 = arith.addf %68, %72 : vector<33x64xf32>
    %c14_67 = arith.constant 14 : index
    %c0_68 = arith.constant 0 : index
    %74 = vector.load %arg11[%c14_67, %c0_68] : memref<49x32xf32, #tpu.memory_space<vmem>>, vector<33x32xf32>
    %c6 = arith.constant 6 : index
    %c0_69 = arith.constant 0 : index
    %c0_70 = arith.constant 0 : index
    %75 = vector.load %arg4[%c6, %c0_69, %c0_70] : memref<9x32x64xf32, #tpu.memory_space<vmem>>, vector<1x32x64xf32>
    %76 = vector.shape_cast %75 : vector<1x32x64xf32> to vector<32x64xf32>
    %cst_71 = arith.constant dense<0.000000e+00> : vector<33x64xf32>
    %77 = tpu.matmul %74, %76, %cst_71 {dimension_numbers = #tpu.dot_dimension_numbers<[1], [0], [0], [1], [0, 0, 1, 1], [], []>} : vector<33x32xf32>, vector<32x64xf32>, vector<33x64xf32> -> vector<33x64xf32>
    %78 = arith.addf %73, %77 : vector<33x64xf32>
    %c15 = arith.constant 15 : index
    %c0_72 = arith.constant 0 : index
    %79 = vector.load %arg11[%c15, %c0_72] : memref<49x32xf32, #tpu.memory_space<vmem>>, vector<33x32xf32>
    %c7_73 = arith.constant 7 : index
    %c0_74 = arith.constant 0 : index
    %c0_75 = arith.constant 0 : index
    %80 = vector.load %arg4[%c7_73, %c0_74, %c0_75] : memref<9x32x64xf32, #tpu.memory_space<vmem>>, vector<1x32x64xf32>
    %81 = vector.shape_cast %80 : vector<1x32x64xf32> to vector<32x64xf32>
    %cst_76 = arith.constant dense<0.000000e+00> : vector<33x64xf32>
    %82 = tpu.matmul %79, %81, %cst_76 {dimension_numbers = #tpu.dot_dimension_numbers<[1], [0], [0], [1], [0, 0, 1, 1], [], []>} : vector<33x32xf32>, vector<32x64xf32>, vector<33x64xf32> -> vector<33x64xf32>
    %83 = arith.addf %78, %82 : vector<33x64xf32>
    %c16 = arith.constant 16 : index
    %c0_77 = arith.constant 0 : index
    %84 = vector.load %arg11[%c16, %c0_77] : memref<49x32xf32, #tpu.memory_space<vmem>>, vector<33x32xf32>
    %c8_78 = arith.constant 8 : index
    %c0_79 = arith.constant 0 : index
    %c0_80 = arith.constant 0 : index
    %85 = vector.load %arg4[%c8_78, %c0_79, %c0_80] : memref<9x32x64xf32, #tpu.memory_space<vmem>>, vector<1x32x64xf32>
    %86 = vector.shape_cast %85 : vector<1x32x64xf32> to vector<32x64xf32>
    %cst_81 = arith.constant dense<0.000000e+00> : vector<33x64xf32>
    %87 = tpu.matmul %84, %86, %cst_81 {dimension_numbers = #tpu.dot_dimension_numbers<[1], [0], [0], [1], [0, 0, 1, 1], [], []>} : vector<33x32xf32>, vector<32x64xf32>, vector<33x64xf32> -> vector<33x64xf32>
    %88 = arith.addf %83, %87 : vector<33x64xf32>
    %c0_82 = arith.constant 0 : index
    %c0_83 = arith.constant 0 : index
    %89 = vector.load %arg5[%c0_82, %c0_83] : memref<1x64xf32, #tpu.memory_space<vmem>>, vector<1x64xf32>
    %90 = vector.broadcast %89 : vector<1x64xf32> to vector<33x64xf32>
    %91 = arith.addf %88, %90 : vector<33x64xf32>
    %92 = math.tanh %91 : vector<33x64xf32>
    %cst_84 = arith.constant 0.000000e+00 : f32
    %93 = vector.broadcast %cst_84 : f32 to vector<81x64xf32>
    %c0_85 = arith.constant 0 : index
    %c0_86 = arith.constant 0 : index
    %94 = vector.load %arg12[%c0_85, %c0_86] : memref<81x64xf32, #tpu.memory_space<vmem>>, vector<81x64xf32>
    tpu.vector_store %arg12[%c0_85, %c0_86], %93 {strides = array<i32>} : memref<81x64xf32, #tpu.memory_space<vmem>>, vector<81x64xf32>,
    %95 = vector.extract_strided_slice %92 {offsets = [0, 0], sizes = [5, 64], strides = [1, 1]} : vector<33x64xf32> to vector<5x64xf32>
    %c20 = arith.constant 20 : index
    %c0_87 = arith.constant 0 : index
    %96 = vector.load %arg12[%c20, %c0_87] : memref<81x64xf32, #tpu.memory_space<vmem>>, vector<5x64xf32>
    tpu.vector_store %arg12[%c20, %c0_87], %95 {strides = array<i32>} : memref<81x64xf32, #tpu.memory_space<vmem>>, vector<5x64xf32>,
    %97 = vector.extract_strided_slice %92 {offsets = [7, 0], sizes = [5, 64], strides = [1, 1]} : vector<33x64xf32> to vector<5x64xf32>
    %c29 = arith.constant 29 : index
    %c0_88 = arith.constant 0 : index
    %98 = vector.load %arg12[%c29, %c0_88] : memref<81x64xf32, #tpu.memory_space<vmem>>, vector<5x64xf32>
    tpu.vector_store %arg12[%c29, %c0_88], %97 {strides = array<i32>} : memref<81x64xf32, #tpu.memory_space<vmem>>, vector<5x64xf32>,
    %99 = vector.extract_strided_slice %92 {offsets = [14, 0], sizes = [5, 64], strides = [1, 1]} : vector<33x64xf32> to vector<5x64xf32>
    %c38 = arith.constant 38 : index
    %c0_89 = arith.constant 0 : index
    %100 = vector.load %arg12[%c38, %c0_89] : memref<81x64xf32, #tpu.memory_space<vmem>>, vector<5x64xf32>
    tpu.vector_store %arg12[%c38, %c0_89], %99 {strides = array<i32>} : memref<81x64xf32, #tpu.memory_space<vmem>>, vector<5x64xf32>,
    %101 = vector.extract_strided_slice %92 {offsets = [21, 0], sizes = [5, 64], strides = [1, 1]} : vector<33x64xf32> to vector<5x64xf32>
    %c47 = arith.constant 47 : index
    %c0_90 = arith.constant 0 : index
    %102 = vector.load %arg12[%c47, %c0_90] : memref<81x64xf32, #tpu.memory_space<vmem>>, vector<5x64xf32>
    tpu.vector_store %arg12[%c47, %c0_90], %101 {strides = array<i32>} : memref<81x64xf32, #tpu.memory_space<vmem>>, vector<5x64xf32>,
    %103 = vector.extract_strided_slice %92 {offsets = [28, 0], sizes = [5, 64], strides = [1, 1]} : vector<33x64xf32> to vector<5x64xf32>
    %c56 = arith.constant 56 : index
    %c0_91 = arith.constant 0 : index
    %104 = vector.load %arg12[%c56, %c0_91] : memref<81x64xf32, #tpu.memory_space<vmem>>, vector<5x64xf32>
    tpu.vector_store %arg12[%c56, %c0_91], %103 {strides = array<i32>} : memref<81x64xf32, #tpu.memory_space<vmem>>, vector<5x64xf32>,
    %cst_92 = arith.constant 0.000000e+00 : f32
    %105 = vector.broadcast %cst_92 : f32 to vector<61x32xf32>
    %c0_93 = arith.constant 0 : index
    %c0_94 = arith.constant 0 : index
    %106 = vector.load %arg12[%c0_93, %c0_94] : memref<81x64xf32, #tpu.memory_space<vmem>>, vector<61x64xf32>
    %c0_95 = arith.constant 0 : index
    %c0_96 = arith.constant 0 : index
    %c0_97 = arith.constant 0 : index
    %107 = vector.load %arg6[%c0_95, %c0_96, %c0_97] : memref<9x64x32xf32, #tpu.memory_space<vmem>>, vector<1x64x32xf32>
    %108 = vector.shape_cast %107 : vector<1x64x32xf32> to vector<64x32xf32>
    %cst_98 = arith.constant dense<0.000000e+00> : vector<61x32xf32>
    %109 = tpu.matmul %106, %108, %cst_98 {dimension_numbers = #tpu.dot_dimension_numbers<[1], [0], [0], [1], [0, 0, 1, 1], [], []>} : vector<61x64xf32>, vector<64x32xf32>, vector<61x32xf32> -> vector<61x32xf32>
    %110 = arith.addf %105, %109 : vector<61x32xf32>
    %c1_99 = arith.constant 1 : index
    %c0_100 = arith.constant 0 : index
    %111 = vector.load %arg12[%c1_99, %c0_100] : memref<81x64xf32, #tpu.memory_space<vmem>>, vector<61x64xf32>
    %c1_101 = arith.constant 1 : index
    %c0_102 = arith.constant 0 : index
    %c0_103 = arith.constant 0 : index
    %112 = vector.load %arg6[%c1_101, %c0_102, %c0_103] : memref<9x64x32xf32, #tpu.memory_space<vmem>>, vector<1x64x32xf32>
    %113 = vector.shape_cast %112 : vector<1x64x32xf32> to vector<64x32xf32>
    %cst_104 = arith.constant dense<0.000000e+00> : vector<61x32xf32>
    %114 = tpu.matmul %111, %113, %cst_104 {dimension_numbers = #tpu.dot_dimension_numbers<[1], [0], [0], [1], [0, 0, 1, 1], [], []>} : vector<61x64xf32>, vector<64x32xf32>, vector<61x32xf32> -> vector<61x32xf32>
    %115 = arith.addf %110, %114 : vector<61x32xf32>
    %c2_105 = arith.constant 2 : index
    %c0_106 = arith.constant 0 : index
    %116 = vector.load %arg12[%c2_105, %c0_106] : memref<81x64xf32, #tpu.memory_space<vmem>>, vector<61x64xf32>
    %c2_107 = arith.constant 2 : index
    %c0_108 = arith.constant 0 : index
    %c0_109 = arith.constant 0 : index
    %117 = vector.load %arg6[%c2_107, %c0_108, %c0_109] : memref<9x64x32xf32, #tpu.memory_space<vmem>>, vector<1x64x32xf32>
    %118 = vector.shape_cast %117 : vector<1x64x32xf32> to vector<64x32xf32>
    %cst_110 = arith.constant dense<0.000000e+00> : vector<61x32xf32>
    %119 = tpu.matmul %116, %118, %cst_110 {dimension_numbers = #tpu.dot_dimension_numbers<[1], [0], [0], [1], [0, 0, 1, 1], [], []>} : vector<61x64xf32>, vector<64x32xf32>, vector<61x32xf32> -> vector<61x32xf32>
    %120 = arith.addf %115, %119 : vector<61x32xf32>
    %c9_111 = arith.constant 9 : index
    %c0_112 = arith.constant 0 : index
    %121 = vector.load %arg12[%c9_111, %c0_112] : memref<81x64xf32, #tpu.memory_space<vmem>>, vector<61x64xf32>
    %c3_113 = arith.constant 3 : index
    %c0_114 = arith.constant 0 : index
    %c0_115 = arith.constant 0 : index
    %122 = vector.load %arg6[%c3_113, %c0_114, %c0_115] : memref<9x64x32xf32, #tpu.memory_space<vmem>>, vector<1x64x32xf32>
    %123 = vector.shape_cast %122 : vector<1x64x32xf32> to vector<64x32xf32>
    %cst_116 = arith.constant dense<0.000000e+00> : vector<61x32xf32>
    %124 = tpu.matmul %121, %123, %cst_116 {dimension_numbers = #tpu.dot_dimension_numbers<[1], [0], [0], [1], [0, 0, 1, 1], [], []>} : vector<61x64xf32>, vector<64x32xf32>, vector<61x32xf32> -> vector<61x32xf32>
    %125 = arith.addf %120, %124 : vector<61x32xf32>
    %c10 = arith.constant 10 : index
    %c0_117 = arith.constant 0 : index
    %126 = vector.load %arg12[%c10, %c0_117] : memref<81x64xf32, #tpu.memory_space<vmem>>, vector<61x64xf32>
    %c4_118 = arith.constant 4 : index
    %c0_119 = arith.constant 0 : index
    %c0_120 = arith.constant 0 : index
    %127 = vector.load %arg6[%c4_118, %c0_119, %c0_120] : memref<9x64x32xf32, #tpu.memory_space<vmem>>, vector<1x64x32xf32>
    %128 = vector.shape_cast %127 : vector<1x64x32xf32> to vector<64x32xf32>
    %cst_121 = arith.constant dense<0.000000e+00> : vector<61x32xf32>
    %129 = tpu.matmul %126, %128, %cst_121 {dimension_numbers = #tpu.dot_dimension_numbers<[1], [0], [0], [1], [0, 0, 1, 1], [], []>} : vector<61x64xf32>, vector<64x32xf32>, vector<61x32xf32> -> vector<61x32xf32>
    %130 = arith.addf %125, %129 : vector<61x32xf32>
    %c11 = arith.constant 11 : index
    %c0_122 = arith.constant 0 : index
    %131 = vector.load %arg12[%c11, %c0_122] : memref<81x64xf32, #tpu.memory_space<vmem>>, vector<61x64xf32>
    %c5_123 = arith.constant 5 : index
    %c0_124 = arith.constant 0 : index
    %c0_125 = arith.constant 0 : index
    %132 = vector.load %arg6[%c5_123, %c0_124, %c0_125] : memref<9x64x32xf32, #tpu.memory_space<vmem>>, vector<1x64x32xf32>
    %133 = vector.shape_cast %132 : vector<1x64x32xf32> to vector<64x32xf32>
    %cst_126 = arith.constant dense<0.000000e+00> : vector<61x32xf32>
    %134 = tpu.matmul %131, %133, %cst_126 {dimension_numbers = #tpu.dot_dimension_numbers<[1], [0], [0], [1], [0, 0, 1, 1], [], []>} : vector<61x64xf32>, vector<64x32xf32>, vector<61x32xf32> -> vector<61x32xf32>
    %135 = arith.addf %130, %134 : vector<61x32xf32>
    %c18 = arith.constant 18 : index
    %c0_127 = arith.constant 0 : index
    %136 = vector.load %arg12[%c18, %c0_127] : memref<81x64xf32, #tpu.memory_space<vmem>>, vector<61x64xf32>
    %c6_128 = arith.constant 6 : index
    %c0_129 = arith.constant 0 : index
    %c0_130 = arith.constant 0 : index
    %137 = vector.load %arg6[%c6_128, %c0_129, %c0_130] : memref<9x64x32xf32, #tpu.memory_space<vmem>>, vector<1x64x32xf32>
    %138 = vector.shape_cast %137 : vector<1x64x32xf32> to vector<64x32xf32>
    %cst_131 = arith.constant dense<0.000000e+00> : vector<61x32xf32>
    %139 = tpu.matmul %136, %138, %cst_131 {dimension_numbers = #tpu.dot_dimension_numbers<[1], [0], [0], [1], [0, 0, 1, 1], [], []>} : vector<61x64xf32>, vector<64x32xf32>, vector<61x32xf32> -> vector<61x32xf32>
    %140 = arith.addf %135, %139 : vector<61x32xf32>
    %c19 = arith.constant 19 : index
    %c0_132 = arith.constant 0 : index
    %141 = vector.load %arg12[%c19, %c0_132] : memref<81x64xf32, #tpu.memory_space<vmem>>, vector<61x64xf32>
    %c7_133 = arith.constant 7 : index
    %c0_134 = arith.constant 0 : index
    %c0_135 = arith.constant 0 : index
    %142 = vector.load %arg6[%c7_133, %c0_134, %c0_135] : memref<9x64x32xf32, #tpu.memory_space<vmem>>, vector<1x64x32xf32>
    %143 = vector.shape_cast %142 : vector<1x64x32xf32> to vector<64x32xf32>
    %cst_136 = arith.constant dense<0.000000e+00> : vector<61x32xf32>
    %144 = tpu.matmul %141, %143, %cst_136 {dimension_numbers = #tpu.dot_dimension_numbers<[1], [0], [0], [1], [0, 0, 1, 1], [], []>} : vector<61x64xf32>, vector<64x32xf32>, vector<61x32xf32> -> vector<61x32xf32>
    %145 = arith.addf %140, %144 : vector<61x32xf32>
    %c20_137 = arith.constant 20 : index
    %c0_138 = arith.constant 0 : index
    %146 = vector.load %arg12[%c20_137, %c0_138] : memref<81x64xf32, #tpu.memory_space<vmem>>, vector<61x64xf32>
    %c8_139 = arith.constant 8 : index
    %c0_140 = arith.constant 0 : index
    %c0_141 = arith.constant 0 : index
    %147 = vector.load %arg6[%c8_139, %c0_140, %c0_141] : memref<9x64x32xf32, #tpu.memory_space<vmem>>, vector<1x64x32xf32>
    %148 = vector.shape_cast %147 : vector<1x64x32xf32> to vector<64x32xf32>
    %cst_142 = arith.constant dense<0.000000e+00> : vector<61x32xf32>
    %149 = tpu.matmul %146, %148, %cst_142 {dimension_numbers = #tpu.dot_dimension_numbers<[1], [0], [0], [1], [0, 0, 1, 1], [], []>} : vector<61x64xf32>, vector<64x32xf32>, vector<61x32xf32> -> vector<61x32xf32>
    %150 = arith.addf %145, %149 : vector<61x32xf32>
    %c0_143 = arith.constant 0 : index
    %c0_144 = arith.constant 0 : index
    %151 = vector.load %arg7[%c0_143, %c0_144] : memref<1x32xf32, #tpu.memory_space<vmem>>, vector<1x32xf32>
    %152 = vector.broadcast %151 : vector<1x32xf32> to vector<61x32xf32>
    %153 = arith.addf %150, %152 : vector<61x32xf32>
    %154 = math.tanh %153 : vector<61x32xf32>
    %cst_145 = arith.constant 0.000000e+00 : f32
    %155 = vector.broadcast %cst_145 : f32 to vector<81x32xf32>
    %c0_146 = arith.constant 0 : index
    %c0_147 = arith.constant 0 : index
    %156 = vector.load %arg13[%c0_146, %c0_147] : memref<81x32xf32, #tpu.memory_space<vmem>>, vector<81x32xf32>
    tpu.vector_store %arg13[%c0_146, %c0_147], %155 {strides = array<i32>} : memref<81x32xf32, #tpu.memory_space<vmem>>, vector<81x32xf32>,
    %157 = vector.extract_strided_slice %154 {offsets = [0, 0], sizes = [7, 32], strides = [1, 1]} : vector<61x32xf32> to vector<7x32xf32>
    %c10_148 = arith.constant 10 : index
    %c0_149 = arith.constant 0 : index
    %158 = vector.load %arg13[%c10_148, %c0_149] : memref<81x32xf32, #tpu.memory_space<vmem>>, vector<7x32xf32>
    tpu.vector_store %arg13[%c10_148, %c0_149], %157 {strides = array<i32>} : memref<81x32xf32, #tpu.memory_space<vmem>>, vector<7x32xf32>,
    %159 = vector.extract_strided_slice %154 {offsets = [9, 0], sizes = [7, 32], strides = [1, 1]} : vector<61x32xf32> to vector<7x32xf32>
    %c19_150 = arith.constant 19 : index
    %c0_151 = arith.constant 0 : index
    %160 = vector.load %arg13[%c19_150, %c0_151] : memref<81x32xf32, #tpu.memory_space<vmem>>, vector<7x32xf32>
    tpu.vector_store %arg13[%c19_150, %c0_151], %159 {strides = array<i32>} : memref<81x32xf32, #tpu.memory_space<vmem>>, vector<7x32xf32>,
    %161 = vector.extract_strided_slice %154 {offsets = [18, 0], sizes = [7, 32], strides = [1, 1]} : vector<61x32xf32> to vector<7x32xf32>
    %c28_152 = arith.constant 28 : index
    %c0_153 = arith.constant 0 : index
    %162 = vector.load %arg13[%c28_152, %c0_153] : memref<81x32xf32, #tpu.memory_space<vmem>>, vector<7x32xf32>
    tpu.vector_store %arg13[%c28_152, %c0_153], %161 {strides = array<i32>} : memref<81x32xf32, #tpu.memory_space<vmem>>, vector<7x32xf32>,
    %163 = vector.extract_strided_slice %154 {offsets = [27, 0], sizes = [7, 32], strides = [1, 1]} : vector<61x32xf32> to vector<7x32xf32>
    %c37 = arith.constant 37 : index
    %c0_154 = arith.constant 0 : index
    %164 = vector.load %arg13[%c37, %c0_154] : memref<81x32xf32, #tpu.memory_space<vmem>>, vector<7x32xf32>
    tpu.vector_store %arg13[%c37, %c0_154], %163 {strides = array<i32>} : memref<81x32xf32, #tpu.memory_space<vmem>>, vector<7x32xf32>,
    %165 = vector.extract_strided_slice %154 {offsets = [36, 0], sizes = [7, 32], strides = [1, 1]} : vector<61x32xf32> to vector<7x32xf32>
    %c46 = arith.constant 46 : index
    %c0_155 = arith.constant 0 : index
    %166 = vector.load %arg13[%c46, %c0_155] : memref<81x32xf32, #tpu.memory_space<vmem>>, vector<7x32xf32>
    tpu.vector_store %arg13[%c46, %c0_155], %165 {strides = array<i32>} : memref<81x32xf32, #tpu.memory_space<vmem>>, vector<7x32xf32>,
    %167 = vector.extract_strided_slice %154 {offsets = [45, 0], sizes = [7, 32], strides = [1, 1]} : vector<61x32xf32> to vector<7x32xf32>
    %c55 = arith.constant 55 : index
    %c0_156 = arith.constant 0 : index
    %168 = vector.load %arg13[%c55, %c0_156] : memref<81x32xf32, #tpu.memory_space<vmem>>, vector<7x32xf32>
    tpu.vector_store %arg13[%c55, %c0_156], %167 {strides = array<i32>} : memref<81x32xf32, #tpu.memory_space<vmem>>, vector<7x32xf32>,
    %169 = vector.extract_strided_slice %154 {offsets = [54, 0], sizes = [7, 32], strides = [1, 1]} : vector<61x32xf32> to vector<7x32xf32>
    %c64 = arith.constant 64 : index
    %c0_157 = arith.constant 0 : index
    %170 = vector.load %arg13[%c64, %c0_157] : memref<81x32xf32, #tpu.memory_space<vmem>>, vector<7x32xf32>
    tpu.vector_store %arg13[%c64, %c0_157], %169 {strides = array<i32>} : memref<81x32xf32, #tpu.memory_space<vmem>>, vector<7x32xf32>,
    %cst_158 = arith.constant 0.000000e+00 : f32
    %171 = vector.broadcast %cst_158 : f32 to vector<71x13xf32>
    %c0_159 = arith.constant 0 : index
    %c0_160 = arith.constant 0 : index
    %172 = vector.load %arg13[%c0_159, %c0_160] : memref<81x32xf32, #tpu.memory_space<vmem>>, vector<71x32xf32>
    %c0_161 = arith.constant 0 : index
    %c0_162 = arith.constant 0 : index
    %c0_163 = arith.constant 0 : index
    %173 = vector.load %arg8[%c0_161, %c0_162, %c0_163] : memref<4x32x13xf32, #tpu.memory_space<vmem>>, vector<1x32x13xf32>
    %174 = vector.shape_cast %173 : vector<1x32x13xf32> to vector<32x13xf32>
    %cst_164 = arith.constant dense<0.000000e+00> : vector<71x13xf32>
    %175 = tpu.matmul %172, %174, %cst_164 {dimension_numbers = #tpu.dot_dimension_numbers<[1], [0], [0], [1], [0, 0, 1, 1], [], []>} : vector<71x32xf32>, vector<32x13xf32>, vector<71x13xf32> -> vector<71x13xf32>
    %176 = arith.addf %171, %175 : vector<71x13xf32>
    %c1_165 = arith.constant 1 : index
    %c0_166 = arith.constant 0 : index
    %177 = vector.load %arg13[%c1_165, %c0_166] : memref<81x32xf32, #tpu.memory_space<vmem>>, vector<71x32xf32>
    %c1_167 = arith.constant 1 : index
    %c0_168 = arith.constant 0 : index
    %c0_169 = arith.constant 0 : index
    %178 = vector.load %arg8[%c1_167, %c0_168, %c0_169] : memref<4x32x13xf32, #tpu.memory_space<vmem>>, vector<1x32x13xf32>
    %179 = vector.shape_cast %178 : vector<1x32x13xf32> to vector<32x13xf32>
    %cst_170 = arith.constant dense<0.000000e+00> : vector<71x13xf32>
    %180 = tpu.matmul %177, %179, %cst_170 {dimension_numbers = #tpu.dot_dimension_numbers<[1], [0], [0], [1], [0, 0, 1, 1], [], []>} : vector<71x32xf32>, vector<32x13xf32>, vector<71x13xf32> -> vector<71x13xf32>
    %181 = arith.addf %176, %180 : vector<71x13xf32>
    %c9_171 = arith.constant 9 : index
    %c0_172 = arith.constant 0 : index
    %182 = vector.load %arg13[%c9_171, %c0_172] : memref<81x32xf32, #tpu.memory_space<vmem>>, vector<71x32xf32>
    %c2_173 = arith.constant 2 : index
    %c0_174 = arith.constant 0 : index
    %c0_175 = arith.constant 0 : index
    %183 = vector.load %arg8[%c2_173, %c0_174, %c0_175] : memref<4x32x13xf32, #tpu.memory_space<vmem>>, vector<1x32x13xf32>
    %184 = vector.shape_cast %183 : vector<1x32x13xf32> to vector<32x13xf32>
    %cst_176 = arith.constant dense<0.000000e+00> : vector<71x13xf32>
    %185 = tpu.matmul %182, %184, %cst_176 {dimension_numbers = #tpu.dot_dimension_numbers<[1], [0], [0], [1], [0, 0, 1, 1], [], []>} : vector<71x32xf32>, vector<32x13xf32>, vector<71x13xf32> -> vector<71x13xf32>
    %186 = arith.addf %181, %185 : vector<71x13xf32>
    %c10_177 = arith.constant 10 : index
    %c0_178 = arith.constant 0 : index
    %187 = vector.load %arg13[%c10_177, %c0_178] : memref<81x32xf32, #tpu.memory_space<vmem>>, vector<71x32xf32>
    %c3_179 = arith.constant 3 : index
    %c0_180 = arith.constant 0 : index
    %c0_181 = arith.constant 0 : index
    %188 = vector.load %arg8[%c3_179, %c0_180, %c0_181] : memref<4x32x13xf32, #tpu.memory_space<vmem>>, vector<1x32x13xf32>
    %189 = vector.shape_cast %188 : vector<1x32x13xf32> to vector<32x13xf32>
    %cst_182 = arith.constant dense<0.000000e+00> : vector<71x13xf32>
    %190 = tpu.matmul %187, %189, %cst_182 {dimension_numbers = #tpu.dot_dimension_numbers<[1], [0], [0], [1], [0, 0, 1, 1], [], []>} : vector<71x32xf32>, vector<32x13xf32>, vector<71x13xf32> -> vector<71x13xf32>
    %191 = arith.addf %186, %190 : vector<71x13xf32>
    %c0_183 = arith.constant 0 : index
    %c0_184 = arith.constant 0 : index
    %192 = vector.load %arg9[%c0_183, %c0_184] : memref<1x13xf32, #tpu.memory_space<vmem>>, vector<1x13xf32>
    %193 = vector.broadcast %192 : vector<1x13xf32> to vector<71x13xf32>
    %194 = arith.addf %191, %193 : vector<71x13xf32>
    %cst_185 = arith.constant 0.000000e+00 : f32
    %195 = vector.broadcast %cst_185 : f32 to vector<71x13xf32>
    %196 = arith.maximumf %194, %195 : vector<71x13xf32>
    %197 = vector.extract_strided_slice %196 {offsets = [0, 0], sizes = [8, 13], strides = [1, 1]} : vector<71x13xf32> to vector<8x13xf32>
    %c0_186 = arith.constant 0 : index
    %c0_187 = arith.constant 0 : index
    %c0_188 = arith.constant 0 : index
    %198 = vector.load %arg10[%c0_186, %c0_187, %c0_188] : memref<1x64x13xf32, #tpu.memory_space<vmem>>, vector<1x8x13xf32>
    %199 = vector.shape_cast %198 : vector<1x8x13xf32> to vector<8x13xf32>
    %200 = vector.shape_cast %197 : vector<8x13xf32> to vector<1x8x13xf32>
    tpu.vector_store %arg10[%c0_186, %c0_187, %c0_188], %200 {strides = array<i32>} : memref<1x64x13xf32, #tpu.memory_space<vmem>>, vector<1x8x13xf32>,
    %201 = vector.extract_strided_slice %196 {offsets = [9, 0], sizes = [8, 13], strides = [1, 1]} : vector<71x13xf32> to vector<8x13xf32>
    %c0_189 = arith.constant 0 : index
    %c8_190 = arith.constant 8 : index
    %c0_191 = arith.constant 0 : index
    %202 = vector.load %arg10[%c0_189, %c8_190, %c0_191] : memref<1x64x13xf32, #tpu.memory_space<vmem>>, vector<1x8x13xf32>
    %203 = vector.shape_cast %202 : vector<1x8x13xf32> to vector<8x13xf32>
    %204 = vector.shape_cast %201 : vector<8x13xf32> to vector<1x8x13xf32>
    tpu.vector_store %arg10[%c0_189, %c8_190, %c0_191], %204 {strides = array<i32>} : memref<1x64x13xf32, #tpu.memory_space<vmem>>, vector<1x8x13xf32>,
    %205 = vector.extract_strided_slice %196 {offsets = [18, 0], sizes = [8, 13], strides = [1, 1]} : vector<71x13xf32> to vector<8x13xf32>
    %c0_192 = arith.constant 0 : index
    %c16_193 = arith.constant 16 : index
    %c0_194 = arith.constant 0 : index
    %206 = vector.load %arg10[%c0_192, %c16_193, %c0_194] : memref<1x64x13xf32, #tpu.memory_space<vmem>>, vector<1x8x13xf32>
    %207 = vector.shape_cast %206 : vector<1x8x13xf32> to vector<8x13xf32>
    %208 = vector.shape_cast %205 : vector<8x13xf32> to vector<1x8x13xf32>
    tpu.vector_store %arg10[%c0_192, %c16_193, %c0_194], %208 {strides = array<i32>} : memref<1x64x13xf32, #tpu.memory_space<vmem>>, vector<1x8x13xf32>,
    %209 = vector.extract_strided_slice %196 {offsets = [27, 0], sizes = [8, 13], strides = [1, 1]} : vector<71x13xf32> to vector<8x13xf32>
    %c0_195 = arith.constant 0 : index
    %c24 = arith.constant 24 : index
    %c0_196 = arith.constant 0 : index
    %210 = vector.load %arg10[%c0_195, %c24, %c0_196] : memref<1x64x13xf32, #tpu.memory_space<vmem>>, vector<1x8x13xf32>
    %211 = vector.shape_cast %210 : vector<1x8x13xf32> to vector<8x13xf32>
    %212 = vector.shape_cast %209 : vector<8x13xf32> to vector<1x8x13xf32>
    tpu.vector_store %arg10[%c0_195, %c24, %c0_196], %212 {strides = array<i32>} : memref<1x64x13xf32, #tpu.memory_space<vmem>>, vector<1x8x13xf32>,
    %213 = vector.extract_strided_slice %196 {offsets = [36, 0], sizes = [8, 13], strides = [1, 1]} : vector<71x13xf32> to vector<8x13xf32>
    %c0_197 = arith.constant 0 : index
    %c32 = arith.constant 32 : index
    %c0_198 = arith.constant 0 : index
    %214 = vector.load %arg10[%c0_197, %c32, %c0_198] : memref<1x64x13xf32, #tpu.memory_space<vmem>>, vector<1x8x13xf32>
    %215 = vector.shape_cast %214 : vector<1x8x13xf32> to vector<8x13xf32>
    %216 = vector.shape_cast %213 : vector<8x13xf32> to vector<1x8x13xf32>
    tpu.vector_store %arg10[%c0_197, %c32, %c0_198], %216 {strides = array<i32>} : memref<1x64x13xf32, #tpu.memory_space<vmem>>, vector<1x8x13xf32>,
    %217 = vector.extract_strided_slice %196 {offsets = [45, 0], sizes = [8, 13], strides = [1, 1]} : vector<71x13xf32> to vector<8x13xf32>
    %c0_199 = arith.constant 0 : index
    %c40 = arith.constant 40 : index
    %c0_200 = arith.constant 0 : index
    %218 = vector.load %arg10[%c0_199, %c40, %c0_200] : memref<1x64x13xf32, #tpu.memory_space<vmem>>, vector<1x8x13xf32>
    %219 = vector.shape_cast %218 : vector<1x8x13xf32> to vector<8x13xf32>
    %220 = vector.shape_cast %217 : vector<8x13xf32> to vector<1x8x13xf32>
    tpu.vector_store %arg10[%c0_199, %c40, %c0_200], %220 {strides = array<i32>} : memref<1x64x13xf32, #tpu.memory_space<vmem>>, vector<1x8x13xf32>,
    %221 = vector.extract_strided_slice %196 {offsets = [54, 0], sizes = [8, 13], strides = [1, 1]} : vector<71x13xf32> to vector<8x13xf32>
    %c0_201 = arith.constant 0 : index
    %c48 = arith.constant 48 : index
    %c0_202 = arith.constant 0 : index
    %222 = vector.load %arg10[%c0_201, %c48, %c0_202] : memref<1x64x13xf32, #tpu.memory_space<vmem>>, vector<1x8x13xf32>
    %223 = vector.shape_cast %222 : vector<1x8x13xf32> to vector<8x13xf32>
    %224 = vector.shape_cast %221 : vector<8x13xf32> to vector<1x8x13xf32>
    tpu.vector_store %arg10[%c0_201, %c48, %c0_202], %224 {strides = array<i32>} : memref<1x64x13xf32, #tpu.memory_space<vmem>>, vector<1x8x13xf32>,
    %225 = vector.extract_strided_slice %196 {offsets = [63, 0], sizes = [8, 13], strides = [1, 1]} : vector<71x13xf32> to vector<8x13xf32>
    %c0_203 = arith.constant 0 : index
    %c56_204 = arith.constant 56 : index
    %c0_205 = arith.constant 0 : index
    %226 = vector.load %arg10[%c0_203, %c56_204, %c0_205] : memref<1x64x13xf32, #tpu.memory_space<vmem>>, vector<1x8x13xf32>
    %227 = vector.shape_cast %226 : vector<1x8x13xf32> to vector<8x13xf32>
    %228 = vector.shape_cast %225 : vector<8x13xf32> to vector<1x8x13xf32>
    tpu.vector_store %arg10[%c0_203, %c56_204, %c0_205], %228 {strides = array<i32>} : memref<1x64x13xf32, #tpu.memory_space<vmem>>, vector<1x8x13xf32>,
    return
  }
  func.func @transform_0(%arg0: i32) -> (i32, i32, i32) {
    %c0_i32 = arith.constant 0 : i32
    %c0_i32_0 = arith.constant 0 : i32
    %c0_i32_1 = arith.constant 0 : i32
    return %arg0, %c0_i32, %c0_i32_0 : i32, i32, i32
  }
  func.func @transform_1(%arg0: i32) -> (i32, i32, i32) {
    %c0_i32 = arith.constant 0 : i32
    %c0_i32_0 = arith.constant 0 : i32
    %c0_i32_1 = arith.constant 0 : i32
    %c0_i32_2 = arith.constant 0 : i32
    return %c0_i32, %c0_i32_0, %c0_i32_1 : i32, i32, i32
  }
  func.func @transform_2(%arg0: i32) -> (i32, i32) {
    %c0_i32 = arith.constant 0 : i32
    %c0_i32_0 = arith.constant 0 : i32
    %c0_i32_1 = arith.constant 0 : i32
    return %c0_i32, %c0_i32_0 : i32, i32
  }
  func.func @transform_3(%arg0: i32) -> (i32, i32, i32) {
    %c0_i32 = arith.constant 0 : i32
    %c0_i32_0 = arith.constant 0 : i32
    %c0_i32_1 = arith.constant 0 : i32
    %c0_i32_2 = arith.constant 0 : i32
    return %c0_i32, %c0_i32_0, %c0_i32_1 : i32, i32, i32
  }
  func.func @transform_4(%arg0: i32) -> (i32, i32) {
    %c0_i32 = arith.constant 0 : i32
    %c0_i32_0 = arith.constant 0 : i32
    %c0_i32_1 = arith.constant 0 : i32
    return %c0_i32, %c0_i32_0 : i32, i32
  }
  func.func @transform_5(%arg0: i32) -> (i32, i32, i32) {
    %c0_i32 = arith.constant 0 : i32
    %c0_i32_0 = arith.constant 0 : i32
    %c0_i32_1 = arith.constant 0 : i32
    %c0_i32_2 = arith.constant 0 : i32
    return %c0_i32, %c0_i32_0, %c0_i32_1 : i32, i32, i32
  }
  func.func @transform_6(%arg0: i32) -> (i32, i32) {
    %c0_i32 = arith.constant 0 : i32
    %c0_i32_0 = arith.constant 0 : i32
    %c0_i32_1 = arith.constant 0 : i32
    return %c0_i32, %c0_i32_0 : i32, i32
  }
  func.func @transform_7(%arg0: i32) -> (i32, i32, i32) {
    %c0_i32 = arith.constant 0 : i32
    %c0_i32_0 = arith.constant 0 : i32
    %c0_i32_1 = arith.constant 0 : i32
    %c0_i32_2 = arith.constant 0 : i32
    return %c0_i32, %c0_i32_0, %c0_i32_1 : i32, i32, i32
  }
  func.func @transform_8(%arg0: i32) -> (i32, i32) {
    %c0_i32 = arith.constant 0 : i32
    %c0_i32_0 = arith.constant 0 : i32
    %c0_i32_1 = arith.constant 0 : i32
    return %c0_i32, %c0_i32_0 : i32, i32
  }
  func.func @transform_9(%arg0: i32) -> (i32, i32, i32) {
    %c0_i32 = arith.constant 0 : i32
    %c0_i32_0 = arith.constant 0 : i32
    %c0_i32_1 = arith.constant 0 : i32
    return %arg0, %c0_i32, %c0_i32_0 : i32, i32, i32
  }
}

</mosaic_0001>

<bundles_post_ra>
// kernel: conv_autoencoder_forward.1
= control target key start
LH: loop header
LB: loop body
LE: loop exit
PB: predicated region body
PF: predicated region fallthrough
CT: control target
= control target key end

     0   :  { %14 = vsyncpa [#allocation6], 0  ;;  %s7248_s0 = inlined_call_operand.vmem [shape: f32[2,64,13], index: 0, kind: input, shape index: {}]   ;;  %s7249_s1 = inlined_call_operand.vmem [shape: f32[4,13,32], index: 1, kind: input, shape index: {}]   ;;  %s7250_s2 = inlined_call_operand.vmem [shape: f32[1,32], index: 2, kind: input, shape index: {}]   ;;  %s7251_s3 = inlined_call_operand.vmem [shape: f32[9,32,64], index: 3, kind: input, shape index: {}]   ;;  %s7252_s4 = inlined_call_operand.vmem [shape: f32[1,64], index: 4, kind: input, shape index: {}]   ;;  %s7253_s5 = inlined_call_operand.vmem [shape: f32[9,64,32], index: 5, kind: input, shape index: {}]   ;;  %s7254_s6 = inlined_call_operand.vmem [shape: f32[1,32], index: 6, kind: input, shape index: {}]   ;;  %s7255_s7 = inlined_call_operand.vmem [shape: f32[4,32,13], index: 7, kind: input, shape index: {}]   ;;  %s7256_s8 = inlined_call_operand.vmem [shape: f32[1,13], index: 8, kind: input, shape index: {}]   ;;  %s7257_s9 = inlined_call_operand.hbm [shape: f32[2,64,13], index: 9, kind: output, shape index: {}]  }
   0x1   :  { %16 = vsyncpa [#allocation6 + $0x1], 0  ;;  %s6044_s30 = smov 0   ;;  %s6046_s10 = smov 0  }
   0x2   :  { %s6048_s11 = smov 0   ;;  %s6050_s12 = smov 0  }
   0x3 LB: > { %s6065_s13 = sadd.s32 4294967295, %s5985_s12   ;;  %s4205_s14 = sadd.s32 4294967294, %s5985_s12   ;;  %s5985_s12 = sphi %s6050_s12, %s7265_s12   ;;  %s5981_s11 = sphi %s6048_s11, %s7264_s11   ;;  %s5977_s10 = sphi %s6046_s10, %s7263_s10   ;;  %s5973_s30 = sphi %s6044_s30, %s7262_s30  }
   0x4   : > { %s6069_s15 = sadd.s32 1, %s5985_s12   ;;  %s223_s16 = sadd.s32 1, %s5981_s11 }
   0x5   : > { %s220_s17 = ssub.s32 %s5985_s12, %s6069_s15  ;;  %p233_p0 = scmp.ne.s32.totalorder %s5981_s11, %s5977_s10 }
   0x6   : > { %p221_p1 = scmp.eq.s32.totalorder %s220_s17, 0  ;;  %p234_p2 = scmp.eq.s32.totalorder %s6065_s13, 1 }
   0x7   : > { %p239_p3 = scmp.ne.s32.totalorder %s5977_s10, %s5973_s30  ;;  %p240_p4 = scmp.eq.s32.totalorder %s4205_s14, 1 }
   0x8   : > { %s6080_s18 = scalar_select %p221_p1, %s5981_s11, %s223_s16  }
   0x9   : > { %p6082_p5 = por %p234_p2, %p233_p0  ;;  %p6086_p6 = por %p240_p4, %p239_p3 }
   0xa   : > { %p4208_p7 = scmp.ge.s32.totalorder %s5985_s12, 1  ;;  %p290_p8 = scmp.lt.s32.totalorder %s5985_s12, 3 }
   0xc   : > { %p291_p9 = pnand %p4208_p7, %p290_p8 }
   0xd   : > { %v4212_v0 = vld [vmem:[%s7249_s1 + $0x10] sm:$0xff] (!%p291_p9)  ;;  %v4213_v1 = vld [vmem:[%s7249_s1 + $0x18] sm:$0x1f] (!%p291_p9)  ;;  %vm372_vm0 = vcmask (!%p291_p9), 1044480   ;;  %v5987_v2 = vmov (!%p291_p9), 0.0|0.0   ;;  %vm5988_vm1 = vmmov (!%p291_p9), 1  }
   0xe   : > { %294 = sbr.rel (%p291_p9) target bundleno = 1351 (0x547), region = 56  ;;  %5772 = vmatprep.subr.bf16.mxu1 (!%p291_p9), %v5987_v2  ;;  %5534 = vmatprep.subr.bf16.mxu0 (!%p291_p9), %v5987_v2  ;;  %v5535_v3 = vpack.c.bf16 (!%p291_p9), %v4213_v1, %v4212_v0  ;;  %vm6100_vm2 = vmpackc.low (!%p291_p9), %vm372_vm0, %vm5988_vm1  ;;  %p326_p10 = scmp.lt.s32.totalorder (!%p291_p9), %s6065_s13, 1  ;;  %vm5989_vm3 = vmmov (!%p291_p9), 0   ;;  %v5990_v5 = vmov (!%p291_p9), 0.0   ;;  %v338_v6 = vld [vmem:[%s7249_s1] sm:$0xff] (!%p291_p9)  ;;  %vm350_vm4 = vcmask (!%p291_p9), 105472  }
   0xf   : > { %4839 = vmatprep.mubr.msk.f32.mxu0 (!%p291_p9), %vm5989_vm3, %v5990_v5  ;;  %4854 = vmatprep.mubr.msk.f32.mxu1 (!%p291_p9), %vm5989_vm3, %v5990_v5  ;;  %v339_v7 = vld [vmem:[%s7249_s1 + $0x8] sm:$0x1f] (!%p291_p9)  ;;  %v4230_v8 = vld [vmem:[%s7249_s1 + $0x20] sm:$0xff] (!%p291_p9)  ;;  %v4240_v16 = vld [vmem:[%s7249_s1 + $0x30] sm:$0xff] (!%p291_p9)  ;;  %vm930_vm5 = vcmask (!%p291_p9), 261120   ;;  %vm903_vm6 = vcmask (!%p291_p9), 260096  }
  0x10   : > { %5773 = vmatpush3.bf16.msk.msra.mxu1 (!%p291_p9), %vm6100_vm2, %v5535_v3  ;;  %5537 = vmatpush3.bf16.msk.msra.mxu0 (!%p291_p9), %vm6100_vm2, %v5535_v3  ;;  %v4231_v9 = vld [vmem:[%s7249_s1 + $0x28] sm:$0x1f] (!%p291_p9)  ;;  %v5539_v10 = vpack.c.bf16 (!%p291_p9), %v339_v7, %v338_v6  ;;  %v4241_v17 = vld [vmem:[%s7249_s1 + $0x38] sm:$0x1f] (!%p291_p9)  ;;  %v4251_v33 = vld [vmem:[%s7251_s3 + $0x20] sm:$0xff] (!%p291_p9)  ;;  %3420 = vst.msk [vmem:[#allocation4] sm:$0xff] (!%p291_p9), %vm930_vm5, %v5990_v5 }
  0x11   : > { %5538 = vmatprep.subr.bf16.mxu1 (!%p291_p9), %v5987_v2  ;;  %5542 = vmatprep.subr.bf16.mxu0 (!%p291_p9), %v5987_v2  ;;  %v5543_v13 = vpack.c.bf16 (!%p291_p9), %v4231_v9, %v4230_v8  ;;  %v5547_v20 = vpack.c.bf16 (!%p291_p9), %v4241_v17, %v4240_v16  ;;  %v4252_v34 = vld [vmem:[%s7251_s3 + $0x28] sm:$0xff] (!%p291_p9)  ;;  %v916_v36 = vld [vmem:[%s7251_s3] sm:$0xff] (!%p291_p9)  ;;  %v4253_v39 = vld [vmem:[%s7251_s3 + $0x30] sm:$0xff] (!%p291_p9)  ;;  %3421 = vst.msk [vmem:[#allocation4 + $0x8] sm:$0xff] (!%p291_p9), %vm930_vm5, %v5990_v5  ;;  %vm1998_vm7 = vcmask (!%p291_p9), 523264   ;;  %vm2009_vm8 = vcmask (!%p291_p9), 516096  }
  0x12   : > { %v5551_v35 = vpack.c.bf16 (!%p291_p9), %v4252_v34, %v4251_v33  ;;  %v917_v37 = vld [vmem:[%s7251_s3 + $0x8] sm:$0xff] (!%p291_p9)  ;;  %v4254_v40 = vld [vmem:[%s7251_s3 + $0x38] sm:$0xff] (!%p291_p9)  ;;  %v918_v41 = vld [vmem:[%s7251_s3 + $0x10] sm:$0xff] (!%p291_p9)  ;;  %3422 = vst.msk [vmem:[#allocation4 + $0x10] sm:$0xff] (!%p291_p9), %vm930_vm5, %v5990_v5  ;;  %vm2013_vm9 = vcmask (!%p291_p9), 523271   ;;  %vm2011_vm10 = vcmask (!%p291_p9), 520192  }
  0x13   : > { %v5557_v38 = vpack.c.bf16 (!%p291_p9), %v917_v37, %v916_v36  ;;  %v5554_v42 = vpack.c.bf16 (!%p291_p9), %v4254_v40, %v4253_v39  ;;  %v919_v43 = vld [vmem:[%s7251_s3 + $0x18] sm:$0xff] (!%p291_p9)  ;;  %3423 = vst.msk [vmem:[#allocation4 + $0x18] sm:$0xff] (!%p291_p9), %vm930_vm5, %v5990_v5  ;;  %3424 = vst.msk [vmem:[#allocation4 + $0x20] sm:$0xff] (!%p291_p9), %vm930_vm5, %v5990_v5  ;;  %vm2017_vm11 = vcmask (!%p291_p9), 523270   ;;  %vm2015_vm12 = vcmask (!%p291_p9), 519168   ;;  %s323_s17 = sand.u32 (!%p291_p9), 1, %s5977_s10  }
  0x14   : > { %v5560_v44 = vpack.c.bf16 (!%p291_p9), %v919_v43, %v918_v41  ;;  %3425 = vst.msk [vmem:[#allocation4 + $0x28] sm:$0xff] (!%p291_p9), %vm930_vm5, %v5990_v5  ;;  %3426 = vst.msk [vmem:[#allocation4 + $0x30] sm:$0xff] (!%p291_p9), %vm930_vm5, %v5990_v5  ;;  %vm2019_vm13 = vcmask (!%p291_p9), 518144   ;;  %vm2021_vm14 = vcmask (!%p291_p9), 523269   ;;  %vm2023_vm15 = vcmask (!%p291_p9), 517120   ;;  %s4209_s23 = sshll.u32 (!%p291_p9), %s323_s17, 6 }
  0x15   : > { %s327_s29 = scalar_select %p326_p10, %s6065_s13, 1  ;;  %3427 = vst.msk [vmem:[#allocation4 + $0x38] sm:$0xff] %vm930_vm5, %v5990_v5  ;;  %3428 = vst.msk [vmem:[#allocation4 + $0x40] sm:$0xff] %vm930_vm5, %v5990_v5  ;;  %vm2025_vm0 = vcmask 523268   ;;  %vm3430_vm1 = vcmask 253952  }
  0x16   : > { %3429 = vst.msk [vmem:[#allocation4 + $0x48] sm:$0xff] %vm930_vm5, %v5990_v5  ;;  %s7168_s24 = scalar_lea.vmem [#allocation5], %s4209_s23  ;;  %s5991_s16 = smov [#allocation5]  }
  0x17   : > { %s4520_s22 = sshll.u32 %s327_s29, 6  ;;  %2002 = vst.msk [vmem:[#allocation3 + $0x18] sm:$0xff] %vm1998_vm7, %v5990_v5  ;;  %1999 = vst.msk [vmem:[#allocation3] sm:$0xff] %vm1998_vm7, %v5990_v5  ;;  %s4143_s26 = sshll.u32 %s7168_s24, 4  ;;  %s7202_s26 = int_to_ptr.vmem [resolvable:$true] %s4143_s26 }
  0x18   : > { %s6131_s25 = scalar_lea.vmem %s7248_s0, %s4520_s22  ;;  %2000 = vst.msk [vmem:[#allocation3 + $0x8] sm:$0xff] %vm1998_vm7, %v5990_v5  ;;  %2001 = vst.msk [vmem:[#allocation3 + $0x10] sm:$0xff] %vm1998_vm7, %v5990_v5  ;;  %s5923_s14 = scalar_lea.vmem %s7202_s26, 1024 }
  0x19   : > { %v340_v11 = vld [vmem:[%s6131_s25 + $0x1] sm:$0xff]  ;;  %v6135_v12 = vld [vmem:[%s6131_s25 + $0x29] sm:$0xff]  ;;  %v346_v15 = vld [vmem:[%s6131_s25 + $0x31] sm:$0x7f]  ;;  %2003 = vst.msk [vmem:[#allocation3 + $0x20] sm:$0xff] %vm1998_vm7, %v5990_v5  ;;  %p5924_p11 = scmp.ne.s32.totalorder %s7202_s26, %s5923_s14  ;;  %s5927_s21 = sshll.u32 %s5991_s16, 4  ;;  %s5928_s21 = int_to_ptr.vmem [resolvable:$false] %s5927_s21 }
  0x1a   : > { %4840 = vmatmul.mubr.msk.f32.vlgmr.msra.gmra.mrb[0].mxu0 %vm350_vm4, %v340_v11  ;;  %4855 = vmatmul.mubr.msk.f32.vlgmr.msra.gmra.mrb[0].mxu1 %vm350_vm4, %v6135_v12  ;;  %v341_v14 = vld [vmem:[%s6131_s25 + $0x9] sm:$0xff]  ;;  %v342_v18 = vld [vmem:[%s6131_s25 + $0x11] sm:$0xff]  ;;  %v331_v19 = vld [vmem:[%s6131_s25] sm:$0xff]  ;;  %2004 = vst.msk [vmem:[#allocation3 + $0x28] sm:$0xff] %vm1998_vm7, %v5990_v5  ;;  %s5929_s22 = scalar_lea.vmem %s5928_s21, 2048  ;;  %p5930_p0 = scmp.lt.s32.totalorder %s7202_s26, %s5928_s21 }
  0x1b   : > { %5541 = vmatpush3.bf16.msk.msra.mxu1 %vm6100_vm2, %v5539_v10  ;;  %4842 = vmatprep.mubr.msk.f32.mxu0 %vm5989_vm3, %v5990_v5  ;;  %v343_v21 = vld [vmem:[%s6131_s25 + $0x19] sm:$0xff]  ;;  %v332_v22 = vld [vmem:[%s6131_s25 + $0x8] sm:$0xff]  ;;  %v333_v24 = vld [vmem:[%s6131_s25 + $0x10] sm:$0xff]  ;;  %2005 = vst.msk [vmem:[#allocation3 + $0x30] sm:$0xff] %vm1998_vm7, %v5990_v5  ;;  %p5925_p12 = pnand %p5924_p11, %p6082_p5  ;;  %p5931_p1 = scmp.lt.s32.totalorder %s5929_s22, %s5923_s14 }
  0x1c   : > { %4857 = vmatprep.mubr.msk.f32.mxu1 %vm5989_vm3, %v5990_v5  ;;  %5546 = vmatprep.subr.bf16.mxu1 %v5987_v2  ;;  %v344_v23 = vld [vmem:[%s6131_s25 + $0x21] sm:$0xff]  ;;  %v334_v25 = vld [vmem:[%s6131_s25 + $0x18] sm:$0xff]  ;;  %v337_v28 = vld [vmem:[%s6131_s25 + $0x30] sm:$0x7f]  ;;  %2006 = vst.msk [vmem:[#allocation3 + $0x38] sm:$0xff] %vm1998_vm7, %v5990_v5 }
  0x1d   : > { %5545 = vmatpush3.bf16.msk.msra.mxu0 %vm6100_vm2, %v5543_v13  ;;  %v335_v26 = vld [vmem:[%s6131_s25 + $0x20] sm:$0xff]  ;;  %v336_v27 = vld [vmem:[%s6131_s25 + $0x28] sm:$0xff]  ;;  %v605_v29 = vld [vmem:[%s6131_s25 + $0x30] sm:$0xff]  ;;  %2007 = vst.msk [vmem:[#allocation3 + $0x40] sm:$0xff] %vm1998_vm7, %v5990_v5  ;;  %p5926_p13 = pneg %p5925_p12  ;;  %p5932_p2 = por %p5931_p1, %p5930_p0 }
  0x1e   : > { %4843 = vmatmul.mubr.msk.f32.gmra.mrb[2].mxu0 %vm350_vm4, %v341_v14  ;;  %4858 = vmatmul.mubr.msk.f32.gmra.mrb[2].mxu1 %vm350_vm4, %v346_v15  ;;  %v606_v30 = vld [vmem:[%s6131_s25 + $0x38] sm:$0x7f]  ;;  %2008 = vst.msk [vmem:[#allocation3 + $0x48] sm:$0xff] %vm1998_vm7, %v5990_v5 }
  0x1f   : > { %4845 = vmatprep.mubr.msk.f32.mxu0 %vm5989_vm3, %v5990_v5  ;;  %4864 = vmatprep.mubr.msk.f32.mxu1 %vm5989_vm3, %v5990_v5  ;;  %v746_v31 = vld [vmem:[%s6131_s25 + $0x31] sm:$0xff]  ;;  %v747_v32 = vld [vmem:[%s6131_s25 + $0x39] sm:$0x7f]  ;;  %2010 = vst.msk [vmem:[#allocation3 + $0x50] sm:$0x1] %vm2009_vm8, %v5990_v5  ;;  %s4521_s25 = sshll.u32 %s6065_s13, 10  ;;  %p5933_p3 = pnand %p5932_p2, %p5926_p13 }
  0x20   : > { %5550 = vmatprep.subr.bf16.mxu0 %v5987_v2  ;;  %3431 = vst.msk [vmem:[#allocation4 + $0x50] sm:$0x1] %vm3430_vm1, %v5990_v5  ;;  %s7200_s29 = scalar_lea.hbm %s7257_s9, %s4521_s25  ;;  %s7207_s13 = scalar_lea.sflag [#allocation6], %s323_s17 }
  0x22   : > { %4846 = vmatmul.mubr.msk.f32.gmra.mrb[4].mxu0 %vm350_vm4, %v342_v18  ;;  %4865 = vmatmul.mubr.msk.f32.vlgmr.msra.gmra.mrb[4].mxu1 %vm350_vm4, %v331_v19 }
  0x23   : > { %5549 = vmatpush3.bf16.msk.msra.mxu1 %vm6100_vm2, %v5547_v20  ;;  %4848 = vmatprep.mubr.msk.f32.mxu0 %vm5989_vm3, %v5990_v5  ;;  %vm3433_vm2 = vcmask 261121  }
  0x24   : > { %4867 = vmatprep.mubr.msk.f32.mxu1 %vm5989_vm3, %v5990_v5  ;;  %5556 = vmatprep.subr.bf16.mxu1 %v5987_v2 }
  0x26   : > { %4849 = vmatmul.mubr.msk.f32.gmra.mrb[6].mxu0 %vm350_vm4, %v343_v21  ;;  %4868 = vmatmul.mubr.msk.f32.gmra.mrb[6].mxu1 %vm350_vm4, %v332_v22 }
  0x27   : > { %4851 = vmatprep.mubr.msk.f32.mxu0 %vm5989_vm3, %v5990_v5  ;;  %4870 = vmatprep.mubr.msk.f32.mxu1 %vm5989_vm3, %v5990_v5 }
  0x2a   : > { %4852 = vmatmul.mubr.msk.f32.gmra.mrb[8].mxu0 %vm350_vm4, %v344_v23  ;;  %4871 = vmatmul.mubr.msk.f32.gmra.mrb[8].mxu1 %vm350_vm4, %v333_v24 }
  0x2b   : > { %4873 = vmatprep.mubr.msk.f32.mxu1 %vm5989_vm3, %v5990_v5  ;;  %4889 = vmatprep.mubr.msk.f32.mxu0 %vm5989_vm3, %v5990_v5 }
  0x2e   : > { %4874 = vmatmul.mubr.msk.f32.gmra.mrb[10].mxu1 %vm350_vm4, %v334_v25  ;;  %4890 = vmatmul.mubr.msk.f32.vlgmr.msra.gmra.mrb[10].mxu0 %vm350_vm4, %v332_v22 }
  0x2f   : > { %4876 = vmatprep.mubr.msk.f32.mxu1 %vm5989_vm3, %v5990_v5  ;;  %4892 = vmatprep.mubr.msk.f32.mxu0 %vm5989_vm3, %v5990_v5 }
  0x30   : > { %5552 = vmatpush3.bf16.msra.mxu0 %v5551_v35 }
  0x31   : > { %5553 = vmatprep.subr.bf16.mxu0 %v5987_v2 }
  0x32   : > { %4877 = vmatmul.mubr.msk.f32.gmra.mrb[12].mxu1 %vm350_vm4, %v335_v26  ;;  %4893 = vmatmul.mubr.msk.f32.gmra.mrb[12].mxu0 %vm350_vm4, %v333_v24 }
  0x33   : > { %4879 = vmatprep.mubr.msk.f32.mxu1 %vm5989_vm3, %v5990_v5  ;;  %4895 = vmatprep.mubr.msk.f32.mxu0 %vm5989_vm3, %v5990_v5 }
  0x34   : > { %5555 = vmatpush3.bf16.msra.mxu0 %v5554_v42 }
  0x35   : > { %5562 = vmatprep.subr.bf16.mxu0 %v5987_v2 }
  0x36   : > { %4880 = vmatmul.mubr.msk.f32.gmra.mrb[14].mxu1 %vm350_vm4, %v336_v27  ;;  %4896 = vmatmul.mubr.msk.f32.gmra.mrb[14].mxu0 %vm350_vm4, %v334_v25 }
  0x37   : > { %4882 = vmatprep.mubr.msk.f32.mxu1 %vm5989_vm3, %v5990_v5  ;;  %4898 = vmatprep.mubr.msk.f32.mxu0 %vm5989_vm3, %v5990_v5 }
  0x3a   : > { %4883 = vmatmul.mubr.msk.f32.gmra.mrb[16].mxu1 %vm350_vm4, %v337_v28  ;;  %4899 = vmatmul.mubr.msk.f32.gmra.mrb[16].mxu0 %vm350_vm4, %v335_v26 }
  0x3b   : > { %4901 = vmatprep.mubr.msk.f32.mxu0 %vm5989_vm3, %v5990_v5  ;;  %4914 = vmatprep.mubr.msk.f32.mxu1 %vm5989_vm3, %v5990_v5 }
  0x3e   : > { %4902 = vmatmul.mubr.msk.f32.gmra.mrb[18].mxu0 %vm350_vm4, %v336_v27  ;;  %4915 = vmatmul.mubr.msk.f32.vlgmr.msra.gmra.mrb[18].mxu1 %vm350_vm4, %v341_v14 }
  0x3f   : > { %4904 = vmatprep.mubr.msk.f32.mxu0 %vm5989_vm3, %v5990_v5  ;;  %4917 = vmatprep.mubr.msk.f32.mxu1 %vm5989_vm3, %v5990_v5 }
  0x40   : > { %5558 = vmatpush3.bf16.msra.mxu1 %v5557_v38 }
  0x41   : > { %5559 = vmatprep.subr.bf16.mxu1 %v5987_v2 }
  0x42   : > { %4905 = vmatmul.mubr.msk.f32.gmra.mrb[20].mxu0 %vm350_vm4, %v605_v29  ;;  %4918 = vmatmul.mubr.msk.f32.gmra.mrb[20].mxu1 %vm350_vm4, %v342_v18 }
  0x43   : > { %4907 = vmatprep.mubr.msk.f32.mxu0 %vm5989_vm3, %v5990_v5  ;;  %4920 = vmatprep.mubr.msk.f32.mxu1 %vm5989_vm3, %v5990_v5 }
  0x44   : > { %5561 = vmatpush3.bf16.msra.mxu1 %v5560_v44 }
  0x45   : > { %5568 = vmatprep.subr.bf16.mxu1 %v5987_v2 }
  0x46   : > { %4908 = vmatmul.mubr.msk.f32.gmra.mrb[22].mxu0 %vm350_vm4, %v606_v30  ;;  %4921 = vmatmul.mubr.msk.f32.gmra.mrb[22].mxu1 %vm350_vm4, %v343_v21 }
  0x47   : > { %4923 = vmatprep.mubr.msk.f32.mxu1 %vm5989_vm3, %v5990_v5  ;;  %4943 = vmatprep.mubr.msk.f32.mxu0 %vm5989_vm3, %v5990_v5 }
  0x4a   : > { %4924 = vmatmul.mubr.msk.f32.gmra.mrb[24].mxu1 %vm350_vm4, %v344_v23 }
  0x4b   : > { %4926 = vmatprep.mubr.msk.f32.mxu1 %vm5989_vm3, %v5990_v5 }
  0x4e   : > { %4927 = vmatmul.mubr.msk.f32.gmra.mrb[26].mxu1 %vm350_vm4, %v6135_v12 }
  0x4f   : > { %4929 = vmatprep.mubr.msk.f32.mxu1 %vm5989_vm3, %v5990_v5 }
  0x52   : > { %4930 = vmatmul.mubr.msk.f32.gmra.mrb[28].mxu1 %vm350_vm4, %v746_v31 }
  0x53   : > { %4932 = vmatprep.mubr.msk.f32.mxu1 %vm5989_vm3, %v5990_v5 }
  0x56   : > { %4933 = vmatmul.mubr.msk.f32.gmra.mrb[30].mxu1 %vm350_vm4, %v747_v32  ;;  %v4250_v32 = vld [vmem:[%s7250_s2] ss:$0 sm:$0xff] }
  0x57   : > { %4966 = vmatprep.mubr.msk.f32.mxu1 %vm5989_vm3, %v5990_v5 }
  0xed   : > { %v467_v45 = vpop.f32.mrb[0].mxu1  ;;  %v442_v46 = vpop.f32.mrb[0].mxu0 }
  0xee   : > { %v4856_v47 = vpop.f32.mrb[1].mxu1  ;;  %v4841_v48 = vpop.f32.mrb[1].mxu0 }
  0xf1   : > { %v472_v49 = vpop.f32.mrb[2].mxu1  ;;  %v447_v50 = vpop.f32.mrb[2].mxu0 }
  0xf2   : > { %v4859_v51 = vpop.f32.mrb[3].mxu1  ;;  %v4844_v52 = vpop.f32.mrb[3].mxu0 }
  0xf5   : > { %v566_v53 = vpop.f32.mrb[4].mxu1  ;;  %v452_v54 = vpop.f32.mrb[4].mxu0 }
  0xf6   : > { %v567_v55 = vadd.f32 %v566_v53, %v442_v46  ;;  %v4866_v56 = vpop.f32.mrb[5].mxu1  ;;  %v4847_v57 = vpop.f32.mrb[5].mxu0 }
  0xf9   : > { %v571_v58 = vpop.f32.mrb[6].mxu1  ;;  %v457_v59 = vpop.f32.mrb[6].mxu0 }
  0xfa   : > { %v572_v60 = vadd.f32 %v571_v58, %v447_v50  ;;  %v4869_v61 = vpop.f32.mrb[7].mxu1  ;;  %v4850_v62 = vpop.f32.mrb[7].mxu0 }
  0xfd   : > { %v576_v63 = vpop.f32.mrb[8].mxu1  ;;  %v462_v0 = vpop.f32.mrb[8].mxu0 }
  0xfe   : > { %v577_v1 = vadd.f32 %v576_v63, %v452_v54  ;;  %v4872_v3 = vpop.f32.mrb[9].mxu1  ;;  %v4853_v4 = vpop.f32.mrb[9].mxu0 }
  0xff   : > { %v4266_v3 = vld [vmem:[%s7251_s3 + $0x48] sm:$0xff] }
 0x101   : > { %v581_v6 = vpop.f32.mrb[10].mxu1  ;;  %v700_v7 = vpop.f32.mrb[10].mxu0 }
 0x102   : > { %v582_v8 = vadd.f32 %v581_v6, %v457_v59  ;;  %v734_v9 = vadd.f32 %v700_v7, %v567_v55  ;;  %v4875_v10 = vpop.f32.mrb[11].mxu1  ;;  %v4891_v11 = vpop.f32.mrb[11].mxu0 }
 0x105   : > { %v586_v12 = vpop.f32.mrb[12].mxu1  ;;  %v705_v13 = vpop.f32.mrb[12].mxu0 }
 0x106   : > { %v587_v14 = vadd.f32 %v586_v12, %v462_v0  ;;  %v735_v15 = vadd.f32 %v705_v13, %v572_v60  ;;  %v4878_v16 = vpop.f32.mrb[13].mxu1  ;;  %v4894_v17 = vpop.f32.mrb[13].mxu0  ;;  %v4267_v13 = vld [vmem:[%s7251_s3 + $0x50] sm:$0xff] }
 0x109   : > { %v591_v18 = vpop.f32.mrb[14].mxu1  ;;  %v710_v19 = vpop.f32.mrb[14].mxu0 }
 0x10a   : > { %v592_v20 = vadd.f32 %v591_v18, %v467_v45  ;;  %v736_v21 = vadd.f32 %v710_v19, %v577_v1  ;;  %v4881_v22 = vpop.f32.mrb[15].mxu1  ;;  %v4897_v23 = vpop.f32.mrb[15].mxu0  ;;  %v4265_v1 = vld [vmem:[%s7251_s3 + $0x40] sm:$0xff]  ;;  %v4268_v18 = vld [vmem:[%s7251_s3 + $0x58] sm:$0xff] }
 0x10b   : > { %v5563_v11 = vpack.c.bf16 %v4266_v3, %v4265_v1  ;;  %v5566_v22 = vpack.c.bf16 %v4268_v18, %v4267_v13  ;;  %v4312_v1 = vld [vmem:[%s7251_s3 + $0xf0] sm:$0xff]  ;;  %v4313_v3 = vld [vmem:[%s7251_s3 + $0xf8] sm:$0xff] }
 0x10d   : > { %v596_v24 = vpop.f32.mrb[16].mxu1  ;;  %v715_v25 = vpop.f32.mrb[16].mxu0 }
 0x10e   : > { %v597_v26 = vadd.f32 %v596_v24, %v472_v49  ;;  %v737_v27 = vadd.f32 %v715_v25, %v582_v8  ;;  %v4884_v28 = vpop.f32.mrb[17].mxu1  ;;  %v4900_v29 = vpop.f32.mrb[17].mxu0  ;;  %v4274_v8 = vld [vmem:[%s7251_s3 + $0x60] sm:$0xff] }
 0x111   : > { %v720_v30 = vpop.f32.mrb[18].mxu0  ;;  %v841_v31 = vpop.f32.mrb[18].mxu1 }
 0x112   : > { %v738_v33 = vadd.f32 %v720_v30, %v587_v14  ;;  %v875_v34 = vadd.f32 %v841_v31, %v734_v9  ;;  %v4916_v35 = vpop.f32.mrb[19].mxu1  ;;  %v4903_v36 = vpop.f32.mrb[19].mxu0  ;;  %v4275_v9 = vld [vmem:[%s7251_s3 + $0x68] sm:$0xff] }
 0x113   : > { %v5569_v19 = vpack.c.bf16 %v4275_v9, %v4274_v8  ;;  %v4319_v9 = vld [vmem:[%s7251_s3 + $0x100] sm:$0xff] }
 0x114   : > { %v889_v37 = vadd.f32 %v4250_v32, %v875_v34  ;;  %v4284_v34 = vld [vmem:[%s7251_s3 + $0x88] sm:$0xff] }
 0x115   : > { %v725_v38 = vpop.f32.mrb[20].mxu0  ;;  %v846_v39 = vpop.f32.mrb[20].mxu1 }
 0x116   : > { %5883 = vtanh.f32 %v889_v37  ;;  %v739_v40 = vadd.f32 %v725_v38, %v592_v20  ;;  %v876_v41 = vadd.f32 %v846_v39, %v735_v15  ;;  %v4919_v42 = vpop.f32.mrb[21].mxu1  ;;  %v4906_v43 = vpop.f32.mrb[21].mxu0  ;;  %v4276_v20 = vld [vmem:[%s7251_s3 + $0x70] sm:$0xff]  ;;  %v4292_v37 = vld [vmem:[%s7251_s3 + $0xa0] sm:$0xff]  ;;  %v4293_v38 = vld [vmem:[%s7251_s3 + $0xa8] sm:$0xff] }
 0x117   : > { %v4286_v43 = vld [vmem:[%s7251_s3 + $0x98] sm:$0xff] }
 0x118   : > { %v890_v44 = vadd.f32 %v4250_v32, %v876_v41 }
 0x119   : > { %v730_v45 = vpop.f32.mrb[22].mxu0  ;;  %v851_v46 = vpop.f32.mrb[22].mxu1 }
 0x11a   : > { %5885 = vtanh.f32 %v890_v44  ;;  %v740_v47 = vadd.f32 %v730_v45, %v597_v26  ;;  %v877_v48 = vadd.f32 %v851_v46, %v736_v21  ;;  %v4922_v49 = vpop.f32.mrb[23].mxu1  ;;  %v4909_v50 = vpop.f32.mrb[23].mxu0  ;;  %v4277_v21 = vld [vmem:[%s7251_s3 + $0x78] sm:$0xff]  ;;  %v5581_v44 = vpack.c.bf16 %v4293_v38, %v4292_v37  ;;  %v4294_v45 = vld [vmem:[%s7251_s3 + $0xb0] sm:$0xff] }
 0x11b   : > { %v5572_v26 = vpack.c.bf16 %v4277_v21, %v4276_v20  ;;  %v4295_v46 = vld [vmem:[%s7251_s3 + $0xb8] sm:$0xff] }
 0x11c   : > { %v891_v51 = vadd.f32 %v4250_v32, %v877_v48  ;;  %v5584_v50 = vpack.c.bf16 %v4295_v46, %v4294_v45  ;;  %v2044_v38 = vld [vmem:[#allocation3 + $0x1] sm:$0xff] }
 0x11d   : > { %v856_v52 = vpop.f32.mrb[24].mxu1  ;;  %v2040_v46 = vld [vmem:[%s7253_s5 + $0x20] sm:$0xff] }
 0x11e   : > { %5887 = vtanh.f32 %v891_v51  ;;  %v878_v53 = vadd.f32 %v856_v52, %v737_v27  ;;  %v4925_v54 = vpop.f32.mrb[25].mxu1 }
 0x120   : > { %v5884_v55 = vpop.eup %5883  ;;  %v892_v56 = vadd.f32 %v4250_v32, %v878_v53 }
 0x121   : > { %904 = vst.msk [vmem:[#allocation2] sm:$0x7f] %vm903_vm6, %v5884_v55  ;;  %v861_v57 = vpop.f32.mrb[26].mxu1  ;;  %v4301_v55 = vld [vmem:[%s7251_s3 + $0xc0] sm:$0xff] }
 0x122   : > { %5889 = vtanh.f32 %v892_v56  ;;  %v879_v58 = vadd.f32 %v861_v57, %v738_v33  ;;  %v4928_v59 = vpop.f32.mrb[27].mxu1  ;;  %v4283_v33 = vld [vmem:[%s7251_s3 + $0x80] sm:$0xff]  ;;  %v4302_v56 = vld [vmem:[%s7251_s3 + $0xc8] sm:$0xff] }
 0x123   : > { %v5575_v39 = vpack.c.bf16 %v4284_v34, %v4283_v33  ;;  %v4310_v59 = vld [vmem:[%s7251_s3 + $0xe0] sm:$0xff]  ;;  %v4334_v33 = vld [vmem:[%s7253_s5 + $0x68] sm:$0xff] }
 0x124   : > { %v5886_v60 = vpop.eup %5885  ;;  %v893_v61 = vadd.f32 %v4250_v32, %v879_v58 }
 0x125   : > { %905 = vst.msk [vmem:[#allocation2 + $0x7] sm:$0x7f] %vm903_vm6, %v5886_v60  ;;  %v866_v62 = vpop.f32.mrb[28].mxu1  ;;  %v4311_v60 = vld [vmem:[%s7251_s3 + $0xe8] sm:$0xff] }
 0x126   : > { %5891 = vtanh.f32 %v893_v61  ;;  %v880_v63 = vadd.f32 %v866_v62, %v739_v40  ;;  %v4931_v0 = vpop.f32.mrb[29].mxu1  ;;  %v4285_v40 = vld [vmem:[%s7251_s3 + $0x90] sm:$0xff]  ;;  %v5587_v61 = vpack.c.bf16 %v4302_v56, %v4301_v55 }
 0x127   : > { %v4303_v62 = vld [vmem:[%s7251_s3 + $0xd0] sm:$0xff]  ;;  %v5593_v0 = vpack.c.bf16 %v4311_v60, %v4310_v59 }
 0x128   : > { %v5888_v4 = vpop.eup %5887  ;;  %v894_v6 = vadd.f32 %v4250_v32, %v880_v63  ;;  %v4304_v63 = vld [vmem:[%s7251_s3 + $0xd8] sm:$0xff] }
 0x129   : > { %906 = vst.msk [vmem:[#allocation2 + $0xe] sm:$0x7f] %vm903_vm6, %v5888_v4  ;;  %v871_v7 = vpop.f32.mrb[30].mxu1  ;;  %v5590_v4 = vpack.c.bf16 %v4304_v63, %v4303_v62 }
 0x12a   : > { %5893 = vtanh.f32 %v894_v6  ;;  %v881_v10 = vadd.f32 %v871_v7, %v740_v47  ;;  %v4934_v12 = vpop.f32.mrb[31].mxu1  ;;  %v5578_v47 = vpack.c.bf16 %v4286_v43, %v4285_v40  ;;  %v5596_v6 = vpack.c.bf16 %v4313_v3, %v4312_v1  ;;  %v2036_v40 = vld [vmem:[%s7253_s5] sm:$0xff]  ;;  %v2038_v43 = vld [vmem:[%s7253_s5 + $0x10] sm:$0xff] }
 0x12c   : > { %v5890_v14 = vpop.eup %5889  ;;  %v895_v15 = vadd.f32 %v4250_v32, %v881_v10  ;;  %v920_v16 = vld [vmem:[#allocation2 + $0x1] sm:$0xff] }
 0x12d   : > { %v911_v17 = vld [vmem:[#allocation2] sm:$0xff]  ;;  %907 = vst.msk [vmem:[#allocation2 + $0x15] sm:$0x7f] %vm903_vm6, %v5890_v14  ;;  %4944 = vmatmul.mubr.msk.f32.vlgmr.msra.gmra.mrb[24].mxu0 %vm930_vm5, %v920_v16  ;;  %v4320_v10 = vld [vmem:[%s7251_s3 + $0x108] sm:$0xff]  ;;  %v4322_v16 = vld [vmem:[%s7251_s3 + $0x118] sm:$0xff] }
 0x12e   : > { %4967 = vmatmul.mubr.msk.f32.vlgmr.msra.gmra.mrb[32].mxu1 %vm930_vm5, %v911_v17  ;;  %5895 = vtanh.f32 %v895_v15  ;;  %5564 = vmatpush3.bf16.msra.mxu0 %v5563_v11  ;;  %v1141_v41 = vld [vmem:[#allocation2 + $0x2] sm:$0xff]  ;;  %v5599_v13 = vpack.c.bf16 %v4320_v10, %v4319_v9  ;;  %v4321_v15 = vld [vmem:[%s7251_s3 + $0x110] sm:$0xff] }
 0x12f   : > { %4946 = vmatprep.mubr.msk.f32.mxu0 %vm5989_vm3, %v5990_v5  ;;  %4969 = vmatprep.mubr.msk.f32.mxu1 %vm5989_vm3, %v5990_v5  ;;  %v5602_v17 = vpack.c.bf16 %v4322_v16, %v4321_v15 }
 0x130   : > { %5565 = vmatprep.subr.bf16.mxu0 %v5987_v2  ;;  %v5892_v23 = vpop.eup %5891  ;;  %v6340_v24 = vld [vmem:[#allocation2 + $0x9] sm:$0xff]  ;;  %5570 = vmatpush3.bf16.msra.mxu1 %v5569_v19 }
 0x131   : > { %v6342_v25 = vld [vmem:[#allocation2 + $0x8] sm:$0xff]  ;;  %908 = vst.msk [vmem:[#allocation2 + $0x1c] sm:$0x7f] %vm903_vm6, %v5892_v23  ;;  %4947 = vmatmul.mubr.msk.f32.gmra.mrb[26].mxu0 %vm930_vm5, %v6340_v24  ;;  %5571 = vmatprep.subr.bf16.mxu1 %v5987_v2 }
 0x132   : > { %4970 = vmatmul.mubr.msk.f32.gmra.mrb[34].mxu1 %vm930_vm5, %v6342_v25  ;;  %4949 = vmatprep.mubr.msk.f32.mxu0 %vm5989_vm3, %v5990_v5  ;;  %v1261_v42 = vld [vmem:[#allocation2 + $0x7] sm:$0xff] }
 0x133   : > { %4972 = vmatprep.mubr.msk.f32.mxu1 %vm5989_vm3, %v5990_v5  ;;  %5567 = vmatpush3.bf16.msra.mxu0 %v5566_v22  ;;  %v1142_v48 = vld [vmem:[#allocation2 + $0xa] sm:$0xff] }
 0x134   : > { %v5894_v27 = vpop.eup %5893  ;;  %v6354_v28 = vld [vmem:[#allocation2 + $0x11] sm:$0xff]  ;;  %5573 = vmatpush3.bf16.msra.mxu1 %v5572_v26  ;;  %5574 = vmatprep.subr.bf16.mxu0 %v5987_v2  ;;  %v4329_v26 = vld [vmem:[%s7253_s5 + $0x40] sm:$0xff] }
 0x135   : > { %v6356_v29 = vld [vmem:[#allocation2 + $0x10] sm:$0xff]  ;;  %909 = vst.msk [vmem:[#allocation2 + $0x23] sm:$0x7f] %vm903_vm6, %v5894_v27  ;;  %4950 = vmatmul.mubr.msk.f32.gmra.mrb[28].mxu0 %vm930_vm5, %v6354_v28  ;;  %5580 = vmatprep.subr.bf16.mxu1 %v5987_v2  ;;  %v4330_v27 = vld [vmem:[%s7253_s5 + $0x48] sm:$0xff] }
 0x136   : > { %4973 = vmatmul.mubr.msk.f32.gmra.mrb[36].mxu1 %vm930_vm5, %v6356_v29  ;;  %4952 = vmatprep.mubr.msk.f32.mxu0 %vm5989_vm3, %v5990_v5  ;;  %v6419_v49 = vld [vmem:[#allocation2 + $0xf] sm:$0xff] }
 0x137   : > { %4975 = vmatprep.mubr.msk.f32.mxu1 %vm5989_vm3, %v5990_v5  ;;  %v1143_v51 = vld [vmem:[#allocation2 + $0x12] sm:$0xff] }
 0x138   : > { %v5896_v30 = vpop.eup %5895  ;;  %v6369_v31 = vld [vmem:[#allocation2 + $0x19] sm:$0xff]  ;;  %v924_v35 = vld [vmem:[#allocation2 + $0x21] sm:$0x1]  ;;  %v1145_v57 = vld [vmem:[#allocation2 + $0x22] sm:$0x1] }
 0x139   : > { %v6371_v32 = vld [vmem:[#allocation2 + $0x18] sm:$0xff]  ;;  %910 = vst.msk [vmem:[#allocation2 + $0x2a] sm:$0x7f] %vm903_vm6, %v5896_v30  ;;  %4953 = vmatmul.mubr.msk.f32.gmra.mrb[30].mxu0 %vm930_vm5, %v6369_v31  ;;  %v915_v36 = vld [vmem:[#allocation2 + $0x20] sm:$0x1]  ;;  %v1621_v14 = vld [vmem:[#allocation2 + $0xe] sm:$0xff] }
 0x13a   : > { %4976 = vmatmul.mubr.msk.f32.gmra.mrb[38].mxu1 %vm930_vm5, %v6371_v32  ;;  %4955 = vmatprep.mubr.msk.f32.mxu0 %vm5989_vm3, %v5990_v5  ;;  %v6429_v52 = vld [vmem:[#allocation2 + $0x17] sm:$0xff] }
 0x13b   : > { %4978 = vmatprep.mubr.msk.f32.mxu1 %vm5989_vm3, %v5990_v5  ;;  %v1144_v53 = vld [vmem:[#allocation2 + $0x1a] sm:$0xff] }
 0x13c   : > { %v6440_v54 = vld [vmem:[#allocation2 + $0x1f] sm:$0xff]  ;;  %v1265_v58 = vld [vmem:[#allocation2 + $0x27] sm:$0x1]  ;;  %v1385_v11 = vld [vmem:[#allocation2 + $0x28] sm:$0x1] }
 0x13d   : > { %4956 = vmatmul.mubr.msk.f32.gmra.mrb[32].mxu0 %vm930_vm5, %v924_v35  ;;  %v1384_v7 = vld [vmem:[#allocation2 + $0x20] sm:$0xff]  ;;  %v1505_v12 = vld [vmem:[#allocation2 + $0x29] sm:$0x1]  ;;  %v1622_v18 = vld [vmem:[#allocation2 + $0x16] sm:$0xff] }
 0x13e   : > { %4979 = vmatmul.mubr.msk.f32.gmra.mrb[40].mxu1 %vm930_vm5, %v915_v36  ;;  %4989 = vmatprep.mubr.msk.f32.mxu0 %vm5989_vm3, %v5990_v5  ;;  %v1504_v8 = vld [vmem:[#allocation2 + $0x21] sm:$0xff]  ;;  %v4332_v30 = vld [vmem:[%s7253_s5 + $0x58] sm:$0xff]  ;;  %v4335_v35 = vld [vmem:[%s7253_s5 + $0x70] sm:$0xff] }
 0x13f   : > { %5012 = vmatprep.mubr.msk.f32.mxu1 %vm5989_vm3, %v5990_v5  ;;  %v1623_v19 = vld [vmem:[#allocation2 + $0x1e] sm:$0xff] }
 0x140   : > { %v1624_v20 = vld [vmem:[#allocation2 + $0x26] sm:$0xff]  ;;  %v1625_v22 = vld [vmem:[#allocation2 + $0x2e] sm:$0x1]  ;;  %v1745_v23 = vld [vmem:[#allocation2 + $0x2f] sm:$0x1] }
 0x141   : > { %4990 = vmatmul.mubr.msk.f32.vlgmr.msra.gmra.mrb[34].mxu0 %vm930_vm5, %v1141_v41  ;;  %v1744_v21 = vld [vmem:[#allocation2 + $0x27] sm:$0xff]  ;;  %v4336_v36 = vld [vmem:[%s7253_s5 + $0x78] sm:$0xff] }
 0x142   : > { %5013 = vmatmul.mubr.msk.f32.vlgmr.msra.gmra.mrb[42].mxu1 %vm930_vm5, %v1261_v42  ;;  %5576 = vmatpush3.bf16.msra.mxu0 %v5575_v39  ;;  %v5616_v37 = vpack.c.bf16 %v4336_v36, %v4335_v35  ;;  %v6625_v39 = vld [vmem:[#allocation3 + $0x9] sm:$0xff] }
 0x143   : > { %4992 = vmatprep.mubr.msk.f32.mxu0 %vm5989_vm3, %v5990_v5  ;;  %5015 = vmatprep.mubr.msk.f32.mxu1 %vm5989_vm3, %v5990_v5  ;;  %v2037_v41 = vld [vmem:[%s7253_s5 + $0x8] sm:$0xff] }
 0x144   : > { %5577 = vmatprep.subr.bf16.mxu0 %v5987_v2  ;;  %5582 = vmatpush3.bf16.msra.mxu1 %v5581_v44  ;;  %v5620_v42 = vpack.c.bf16 %v2037_v41, %v2036_v40  ;;  %v2039_v44 = vld [vmem:[%s7253_s5 + $0x18] sm:$0xff] }
 0x145   : > { %4993 = vmatmul.mubr.msk.f32.gmra.mrb[36].mxu0 %vm930_vm5, %v1142_v48  ;;  %5583 = vmatprep.subr.bf16.mxu1 %v5987_v2  ;;  %v5624_v45 = vpack.c.bf16 %v2039_v44, %v2038_v43 }
 0x146   : > { %5016 = vmatmul.mubr.msk.f32.gmra.mrb[44].mxu1 %vm930_vm5, %v6419_v49  ;;  %4995 = vmatprep.mubr.msk.f32.mxu0 %vm5989_vm3, %v5990_v5 }
 0x147   : > { %5018 = vmatprep.mubr.msk.f32.mxu1 %vm5989_vm3, %v5990_v5  ;;  %5579 = vmatpush3.bf16.msra.mxu0 %v5578_v47  ;;  %v2041_v47 = vld [vmem:[%s7253_s5 + $0x28] sm:$0xff] }
 0x148   : > { %5585 = vmatpush3.bf16.msra.mxu1 %v5584_v50  ;;  %5586 = vmatprep.subr.bf16.mxu0 %v5987_v2  ;;  %v5628_v48 = vpack.c.bf16 %v2041_v47, %v2040_v46  ;;  %v2043_v50 = vld [vmem:[%s7253_s5 + $0x38] sm:$0xff] }
 0x149   : > { %4996 = vmatmul.mubr.msk.f32.gmra.mrb[38].mxu0 %vm930_vm5, %v1143_v51  ;;  %5592 = vmatprep.subr.bf16.mxu1 %v5987_v2 }
 0x14a   : > { %5019 = vmatmul.mubr.msk.f32.gmra.mrb[46].mxu1 %vm930_vm5, %v6429_v52  ;;  %4998 = vmatprep.mubr.msk.f32.mxu0 %vm5989_vm3, %v5990_v5 }
 0x14b   : > { %5021 = vmatprep.mubr.msk.f32.mxu1 %vm5989_vm3, %v5990_v5 }
 0x14d   : > { %4999 = vmatmul.mubr.msk.f32.gmra.mrb[40].mxu0 %vm930_vm5, %v1144_v53  ;;  %v4354_v53 = vld [vmem:[%s7253_s5 + $0x88] sm:$0xff] }
 0x14e   : > { %5022 = vmatmul.mubr.msk.f32.gmra.mrb[48].mxu1 %vm930_vm5, %v6440_v54  ;;  %5001 = vmatprep.mubr.msk.f32.mxu0 %vm5989_vm3, %v5990_v5 }
 0x14f   : > { %5024 = vmatprep.mubr.msk.f32.mxu1 %vm5989_vm3, %v5990_v5 }
 0x151   : > { %5002 = vmatmul.mubr.msk.f32.gmra.mrb[42].mxu0 %vm930_vm5, %v1145_v57 }
 0x152   : > { %5025 = vmatmul.mubr.msk.f32.gmra.mrb[50].mxu1 %vm930_vm5, %v1265_v58  ;;  %5035 = vmatprep.mubr.msk.f32.mxu0 %vm5989_vm3, %v5990_v5 }
 0x153   : > { %5058 = vmatprep.mubr.msk.f32.mxu1 %vm5989_vm3, %v5990_v5 }
 0x155   : > { %5036 = vmatmul.mubr.msk.f32.vlgmr.msra.gmra.mrb[44].mxu0 %vm930_vm5, %v6342_v25  ;;  %v1865_v25 = vld [vmem:[#allocation2 + $0x30] sm:$0x1] }
 0x156   : > { %5059 = vmatmul.mubr.msk.f32.vlgmr.msra.gmra.mrb[52].mxu1 %vm930_vm5, %v6340_v24  ;;  %5588 = vmatpush3.bf16.msra.mxu0 %v5587_v61  ;;  %v1864_v24 = vld [vmem:[#allocation2 + $0x28] sm:$0xff] }
 0x157   : > { %5038 = vmatprep.mubr.msk.f32.mxu0 %vm5989_vm3, %v5990_v5  ;;  %5061 = vmatprep.mubr.msk.f32.mxu1 %vm5989_vm3, %v5990_v5 }
 0x158   : > { %5589 = vmatprep.subr.bf16.mxu0 %v5987_v2  ;;  %5594 = vmatpush3.bf16.msra.mxu1 %v5593_v0 }
 0x159   : > { %5039 = vmatmul.mubr.msk.f32.gmra.mrb[46].mxu0 %vm930_vm5, %v6356_v29  ;;  %5595 = vmatprep.subr.bf16.mxu1 %v5987_v2 }
 0x15a   : > { %5062 = vmatmul.mubr.msk.f32.gmra.mrb[54].mxu1 %vm930_vm5, %v6354_v28  ;;  %5041 = vmatprep.mubr.msk.f32.mxu0 %vm5989_vm3, %v5990_v5  ;;  %v5604_v28 = vpack.c.bf16 %v4330_v27, %v4329_v26 }
 0x15b   : > { %5064 = vmatprep.mubr.msk.f32.mxu1 %vm5989_vm3, %v5990_v5  ;;  %5591 = vmatpush3.bf16.msra.mxu0 %v5590_v4 }
 0x15c   : > { %5597 = vmatpush3.bf16.msra.mxu1 %v5596_v6  ;;  %5598 = vmatprep.subr.bf16.mxu0 %v5987_v2 }
 0x15d   : > { %5042 = vmatmul.mubr.msk.f32.gmra.mrb[48].mxu0 %vm930_vm5, %v6371_v32  ;;  %5605 = vmatprep.subr.bf16.mxu1 %v5604_v28 }
 0x15e   : > { %5065 = vmatmul.mubr.msk.f32.gmra.mrb[56].mxu1 %vm930_vm5, %v6369_v31  ;;  %5044 = vmatprep.mubr.msk.f32.mxu0 %vm5989_vm3, %v5990_v5 }
 0x15f   : > { %5067 = vmatprep.mubr.msk.f32.mxu1 %vm5989_vm3, %v5990_v5 }
 0x161   : > { %5045 = vmatmul.mubr.msk.f32.gmra.mrb[50].mxu0 %vm930_vm5, %v1384_v7 }
 0x162   : > { %5068 = vmatmul.mubr.msk.f32.gmra.mrb[58].mxu1 %vm930_vm5, %v1504_v8  ;;  %5047 = vmatprep.mubr.msk.f32.mxu0 %vm5989_vm3, %v5990_v5 }
 0x163   : > { %5070 = vmatprep.mubr.msk.f32.mxu1 %vm5989_vm3, %v5990_v5 }
 0x165   : > { %5048 = vmatmul.mubr.msk.f32.gmra.mrb[52].mxu0 %vm930_vm5, %v1385_v11 }
 0x166   : > { %5071 = vmatmul.mubr.msk.f32.gmra.mrb[60].mxu1 %vm930_vm5, %v1505_v12  ;;  %5081 = vmatprep.mubr.msk.f32.mxu0 %vm5989_vm3, %v5990_v5 }
 0x167   : > { %5104 = vmatprep.mubr.msk.f32.mxu1 %vm5989_vm3, %v5990_v5 }
 0x169   : > { %5082 = vmatmul.mubr.msk.f32.vlgmr.msra.gmra.mrb[54].mxu0 %vm930_vm5, %v1621_v14 }
 0x16a   : > { %5105 = vmatmul.mubr.msk.f32.vlgmr.msra.gmra.mrb[62].mxu1 %vm930_vm5, %v6419_v49  ;;  %5600 = vmatpush3.bf16.msra.mxu0 %v5599_v13  ;;  %v2042_v49 = vld [vmem:[%s7253_s5 + $0x30] sm:$0xff] }
 0x16b   : > { %5084 = vmatprep.mubr.msk.f32.mxu0 %vm5989_vm3, %v5990_v5  ;;  %5107 = vmatprep.mubr.msk.f32.mxu1 %vm5989_vm3, %v5990_v5  ;;  %v5632_v51 = vpack.c.bf16 %v2043_v50, %v2042_v49 }
 0x16c   : > { %5601 = vmatprep.subr.bf16.mxu0 %v5987_v2  ;;  %5607 = vmatpush3.bf16.msra.mxu1 %v5604_v28 }
 0x16d   : > { %5085 = vmatmul.mubr.msk.f32.gmra.mrb[56].mxu0 %vm930_vm5, %v1622_v18 }
 0x16e   : > { %5108 = vmatmul.mubr.msk.f32.gmra.mrb[64].mxu1 %vm930_vm5, %v6429_v52  ;;  %5087 = vmatprep.mubr.msk.f32.mxu0 %vm5989_vm3, %v5990_v5  ;;  %v4353_v52 = vld [vmem:[%s7253_s5 + $0x80] sm:$0xff] }
 0x16f   : > { %5110 = vmatprep.mubr.msk.f32.mxu1 %vm5989_vm3, %v5990_v5  ;;  %5603 = vmatpush3.bf16.msra.mxu0 %v5602_v17 }
 0x170   : > { %5748 = vmatprep.subr.bf16.mxu0 %v5987_v2 }
 0x171   : > { %5088 = vmatmul.mubr.msk.f32.gmra.mrb[58].mxu0 %vm930_vm5, %v1623_v19 }
 0x172   : > { %5111 = vmatmul.mubr.msk.f32.gmra.mrb[66].mxu1 %vm930_vm5, %v6440_v54  ;;  %5090 = vmatprep.mubr.msk.f32.mxu0 %vm5989_vm3, %v5990_v5  ;;  %v6661_v54 = vpack.c.bf16 %v4354_v53, %v4353_v52 }
 0x173   : > { %5113 = vmatprep.mubr.msk.f32.mxu1 %vm5989_vm3, %v5990_v5 }
 0x175   : > { %5091 = vmatmul.mubr.msk.f32.gmra.mrb[60].mxu0 %vm930_vm5, %v1624_v20 }
 0x176   : > { %5114 = vmatmul.mubr.msk.f32.gmra.mrb[68].mxu1 %vm930_vm5, %v1744_v21  ;;  %5093 = vmatprep.mubr.msk.f32.mxu0 %vm5989_vm3, %v5990_v5 }
 0x177   : > { %5116 = vmatprep.mubr.msk.f32.mxu1 %vm5989_vm3, %v5990_v5 }
 0x179   : > { %5094 = vmatmul.mubr.msk.f32.gmra.mrb[62].mxu0 %vm930_vm5, %v1625_v22 }
 0x17a   : > { %5117 = vmatmul.mubr.msk.f32.gmra.mrb[70].mxu1 %vm930_vm5, %v1745_v23  ;;  %5127 = vmatprep.mubr.msk.f32.mxu0 %vm5989_vm3, %v5990_v5 }
 0x17b   : > { %5158 = vmatprep.mubr.msk.f32.mxu1 %vm1998_vm7, %v2044_v38 }
 0x17d   : > { %5128 = vmatmul.mubr.msk.f32.vlgmr.msra.gmra.mrb[64].mxu0 %vm930_vm5, %v6356_v29  ;;  %v4331_v29 = vld [vmem:[%s7253_s5 + $0x50] sm:$0xff] }
 0x17e   : > { %5130 = vmatprep.mubr.msk.f32.mxu0 %vm5989_vm3, %v5990_v5  ;;  %v5608_v31 = vpack.c.bf16 %v4332_v30, %v4331_v29 }
 0x180   : > { %5609 = vmatprep.subr.bf16.mxu1 %v5608_v31 }
 0x181   : > { %5131 = vmatmul.mubr.msk.f32.gmra.mrb[66].mxu0 %vm930_vm5, %v6371_v32  ;;  %5611 = vmatpush3.bf16.msra.mxu1 %v5608_v31  ;;  %v4333_v32 = vld [vmem:[%s7253_s5 + $0x60] sm:$0xff] }
 0x182   : > { %5133 = vmatprep.mubr.msk.f32.mxu0 %vm5989_vm3, %v5990_v5  ;;  %v5612_v34 = vpack.c.bf16 %v4334_v33, %v4333_v32 }
 0x184   : > { %5613 = vmatprep.subr.bf16.mxu1 %v5612_v34 }
 0x185   : > { %5134 = vmatmul.mubr.msk.f32.gmra.mrb[68].mxu0 %vm930_vm5, %v1384_v7  ;;  %5615 = vmatpush3.bf16.msra.mxu1 %v5612_v34 }
 0x186   : > { %5136 = vmatprep.mubr.msk.f32.mxu0 %vm5989_vm3, %v5990_v5  ;;  %5617 = vmatprep.subr.bf16.mxu1 %v5616_v37 }
 0x189   : > { %5137 = vmatmul.mubr.msk.f32.gmra.mrb[70].mxu0 %vm930_vm5, %v1864_v24  ;;  %5619 = vmatpush3.bf16.msra.mxu1 %v5616_v37 }
 0x18a   : > { %5139 = vmatprep.mubr.msk.f32.mxu0 %vm5989_vm3, %v5990_v5  ;;  %5621 = vmatprep.subr.bf16.mxu1 %v5620_v42 }
 0x18c   : > { %5159 = vmatmul.mubr.msk.f32.vlgmr.msra.gmra.mrb[72].mxu1 %vm1998_vm7, %v6625_v39 }
 0x18d   : > { %5140 = vmatmul.mubr.msk.f32.gmra.mrb[72].mxu0 %vm930_vm5, %v1865_v25  ;;  %5623 = vmatpush3.bf16.msra.mxu1 %v5620_v42 }
 0x18e   : > { %5402 = vmatprep.mubr.msk.f32.mxu0 %vm5989_vm3, %v5990_v5  ;;  %5625 = vmatprep.subr.bf16.mxu1 %v5624_v45 }
 0x191   : > { %5627 = vmatpush3.bf16.msra.mxu1 %v5624_v45 }
 0x192   : > { %5629 = vmatprep.subr.bf16.mxu1 %v5628_v48 }
 0x195   : > { %5631 = vmatpush3.bf16.msra.mxu1 %v5628_v48 }
 0x196   : > { %5633 = vmatprep.subr.bf16.mxu1 %v5632_v51 }
 0x199   : > { %5635 = vmatpush3.bf16.msra.mxu1 %v5632_v51 }
 0x19a   : > { %5637 = vmatprep.subr.bf16.mxu1 %v6661_v54 }
 0x200   : > { %v1012_v55 = vpop.f32.mrb[24].mxu0 }
 0x201   : > { %v1117_v56 = vpop.f32.mrb[32].mxu1  ;;  %v4945_v58 = vpop.f32.mrb[25].mxu0 }
 0x202   : > { %v1118_v57 = vadd.f32 %v1117_v56, %v1012_v55  ;;  %v4968_v59 = vpop.f32.mrb[33].mxu1 }
 0x204   : > { %v1017_v60 = vpop.f32.mrb[26].mxu0 }
 0x205   : > { %v1122_v61 = vpop.f32.mrb[34].mxu1  ;;  %v4948_v63 = vpop.f32.mrb[27].mxu0 }
 0x206   : > { %v1123_v62 = vadd.f32 %v1122_v61, %v1017_v60  ;;  %v4971_v0 = vpop.f32.mrb[35].mxu1 }
 0x208   : > { %v1022_v1 = vpop.f32.mrb[28].mxu0 }
 0x209   : > { %v1127_v3 = vpop.f32.mrb[36].mxu1  ;;  %v4951_v6 = vpop.f32.mrb[29].mxu0 }
 0x20a   : > { %v1128_v4 = vadd.f32 %v1127_v3, %v1022_v1  ;;  %v4974_v7 = vpop.f32.mrb[37].mxu1 }
 0x20c   : > { %v1027_v8 = vpop.f32.mrb[30].mxu0 }
 0x20d   : > { %v1132_v9 = vpop.f32.mrb[38].mxu1  ;;  %v4954_v11 = vpop.f32.mrb[31].mxu0 }
 0x20e   : > { %v1133_v10 = vadd.f32 %v1132_v9, %v1027_v8  ;;  %v4977_v12 = vpop.f32.mrb[39].mxu1 }
 0x210   : > { %v1032_v13 = vpop.f32.mrb[32].mxu0 }
 0x211   : > { %v1137_v14 = vpop.f32.mrb[40].mxu1  ;;  %v4957_v16 = vpop.f32.mrb[33].mxu0 }
 0x212   : > { %v1138_v15 = vadd.f32 %v1137_v14, %v1032_v13  ;;  %v4980_v17 = vpop.f32.mrb[41].mxu1 }
 0x214   : > { %v1232_v18 = vpop.f32.mrb[34].mxu0 }
 0x215   : > { %v1352_v19 = vpop.f32.mrb[42].mxu1  ;;  %v1256_v20 = vadd.f32 %v1232_v18, %v1118_v57  ;;  %v4991_v21 = vpop.f32.mrb[35].mxu0 }
 0x216   : > { %v5014_v22 = vpop.f32.mrb[43].mxu1 }
 0x217   : > { %v1376_v23 = vadd.f32 %v1352_v19, %v1256_v20 }
 0x218   : > { %v1237_v24 = vpop.f32.mrb[36].mxu0 }
 0x219   : > { %v1357_v25 = vpop.f32.mrb[44].mxu1  ;;  %v1257_v26 = vadd.f32 %v1237_v24, %v1123_v62  ;;  %v4994_v27 = vpop.f32.mrb[37].mxu0 }
 0x21a   : > { %v5017_v28 = vpop.f32.mrb[45].mxu1 }
 0x21b   : > { %v1377_v29 = vadd.f32 %v1357_v25, %v1257_v26 }
 0x21c   : > { %v1242_v30 = vpop.f32.mrb[38].mxu0 }
 0x21d   : > { %v1362_v31 = vpop.f32.mrb[46].mxu1  ;;  %v1258_v32 = vadd.f32 %v1242_v30, %v1128_v4  ;;  %v4997_v33 = vpop.f32.mrb[39].mxu0 }
 0x21e   : > { %v5020_v34 = vpop.f32.mrb[47].mxu1 }
 0x21f   : > { %v1378_v35 = vadd.f32 %v1362_v31, %v1258_v32 }
 0x220   : > { %v1247_v36 = vpop.f32.mrb[40].mxu0 }
 0x221   : > { %v1367_v37 = vpop.f32.mrb[48].mxu1  ;;  %v1259_v38 = vadd.f32 %v1247_v36, %v1133_v10  ;;  %v5000_v40 = vpop.f32.mrb[41].mxu0 }
 0x222   : > { %v5023_v41 = vpop.f32.mrb[49].mxu1 }
 0x223   : > { %v1379_v42 = vadd.f32 %v1367_v37, %v1259_v38 }
 0x224   : > { %v1252_v43 = vpop.f32.mrb[42].mxu0 }
 0x225   : > { %v1372_v44 = vpop.f32.mrb[50].mxu1  ;;  %v1260_v45 = vadd.f32 %v1252_v43, %v1138_v15  ;;  %v5003_v46 = vpop.f32.mrb[43].mxu0 }
 0x226   : > { %v5026_v47 = vpop.f32.mrb[51].mxu1 }
 0x227   : > { %v1380_v48 = vadd.f32 %v1372_v44, %v1260_v45 }
 0x228   : > { %v1472_v49 = vpop.f32.mrb[44].mxu0 }
 0x229   : > { %v1592_v50 = vpop.f32.mrb[52].mxu1  ;;  %v1496_v51 = vadd.f32 %v1472_v49, %v1376_v23  ;;  %v5037_v52 = vpop.f32.mrb[45].mxu0 }
 0x22a   : > { %v5060_v53 = vpop.f32.mrb[53].mxu1 }
 0x22b   : > { %v1616_v55 = vadd.f32 %v1592_v50, %v1496_v51  ;;  %v4328_v50 = vld [vmem:[%s7252_s4] ss:$0 sm:$0xff] }
 0x22c   : > { %v1477_v56 = vpop.f32.mrb[46].mxu0 }
 0x22d   : > { %v1597_v57 = vpop.f32.mrb[54].mxu1  ;;  %v1497_v58 = vadd.f32 %v1477_v56, %v1377_v29  ;;  %v5040_v59 = vpop.f32.mrb[47].mxu0 }
 0x22e   : > { %v5063_v60 = vpop.f32.mrb[55].mxu1 }
 0x22f   : > { %v1617_v61 = vadd.f32 %v1597_v57, %v1497_v58 }
 0x230   : > { %v1482_v62 = vpop.f32.mrb[48].mxu0 }
 0x231   : > { %v1602_v63 = vpop.f32.mrb[56].mxu1  ;;  %v1498_v0 = vadd.f32 %v1482_v62, %v1378_v35  ;;  %v5043_v1 = vpop.f32.mrb[49].mxu0 }
 0x232   : > { %v5066_v3 = vpop.f32.mrb[57].mxu1 }
 0x233   : > { %v1618_v4 = vadd.f32 %v1602_v63, %v1498_v0 }
 0x234   : > { %v1487_v6 = vpop.f32.mrb[50].mxu0 }
 0x235   : > { %v1607_v7 = vpop.f32.mrb[58].mxu1  ;;  %v1499_v8 = vadd.f32 %v1487_v6, %v1379_v42  ;;  %v5046_v9 = vpop.f32.mrb[51].mxu0 }
 0x236   : > { %v5069_v10 = vpop.f32.mrb[59].mxu1 }
 0x237   : > { %v1619_v11 = vadd.f32 %v1607_v7, %v1499_v8 }
 0x238   : > { %v1492_v12 = vpop.f32.mrb[52].mxu0 }
 0x239   : > { %v1612_v13 = vpop.f32.mrb[60].mxu1  ;;  %v1500_v14 = vadd.f32 %v1492_v12, %v1380_v48  ;;  %v5049_v15 = vpop.f32.mrb[53].mxu0 }
 0x23a   : > { %v5072_v16 = vpop.f32.mrb[61].mxu1 }
 0x23b   : > { %v1620_v17 = vadd.f32 %v1612_v13, %v1500_v14 }
 0x23c   : > { %v1712_v18 = vpop.f32.mrb[54].mxu0 }
 0x23d   : > { %v1832_v19 = vpop.f32.mrb[62].mxu1  ;;  %v1736_v20 = vadd.f32 %v1712_v18, %v1616_v55  ;;  %v5083_v21 = vpop.f32.mrb[55].mxu0 }
 0x23e   : > { %v5106_v22 = vpop.f32.mrb[63].mxu1  ;;  %v4355_v21 = vld [vmem:[%s7253_s5 + $0x90] sm:$0xff] }
 0x23f   : > { %v1856_v23 = vadd.f32 %v1832_v19, %v1736_v20  ;;  %v2028_v19 = vld [vmem:[#allocation3] sm:$0xff] }
 0x240   : > { %v1717_v24 = vpop.f32.mrb[56].mxu0  ;;  %v4356_v22 = vld [vmem:[%s7253_s5 + $0x98] sm:$0xff] }
 0x241   : > { %v1837_v25 = vpop.f32.mrb[64].mxu1  ;;  %v1737_v26 = vadd.f32 %v1717_v24, %v1617_v61  ;;  %v5086_v27 = vpop.f32.mrb[57].mxu0  ;;  %v4466_v24 = vld [vmem:[%s7255_s7 + $0x20] sm:$0xff] }
 0x242   : > { %v5109_v28 = vpop.f32.mrb[65].mxu1 }
 0x243   : > { %v1857_v29 = vadd.f32 %v1837_v25, %v1737_v26  ;;  %v4467_v25 = vld [vmem:[%s7255_s7 + $0x28] sm:$0xff]  ;;  %v5640_v26 = vpack.c.bf16 %v4356_v22, %v4355_v21  ;;  %v4357_v28 = vld [vmem:[%s7253_s5 + $0xa0] sm:$0xff]  ;;  %v4407_v21 = vld [vmem:[%s7253_s5 + $0x170] sm:$0xff] }
 0x244   : > { %v1722_v30 = vpop.f32.mrb[58].mxu0  ;;  %v5749_v27 = vpack.c.bf16 %v4467_v25, %v4466_v24  ;;  %v4408_v22 = vld [vmem:[%s7253_s5 + $0x178] sm:$0xff]  ;;  %v4417_v24 = vld [vmem:[%s7253_s5 + $0x180] sm:$0xff]  ;;  %v4418_v25 = vld [vmem:[%s7253_s5 + $0x188] sm:$0xff] }
 0x245   : > { %v1842_v31 = vpop.f32.mrb[66].mxu1  ;;  %v1738_v32 = vadd.f32 %v1722_v30, %v1618_v4  ;;  %v5089_v33 = vpop.f32.mrb[59].mxu0 }
 0x246   : > { %v5112_v34 = vpop.f32.mrb[67].mxu1  ;;  %5750 = vmatpush3.bf16.msra.mxu0 %v5749_v27  ;;  %v4359_v33 = vld [vmem:[%s7253_s5 + $0xb0] sm:$0xff]  ;;  %v2634_v27 = vld [vmem:[#allocation3 + $0x42] sm:$0x1f] }
 0x247   : > { %v1858_v35 = vadd.f32 %v1842_v31, %v1738_v32  ;;  %5751 = vmatprep.subr.bf16.mxu0 %v5987_v2  ;;  %v4360_v34 = vld [vmem:[%s7253_s5 + $0xb8] sm:$0xff] }
 0x248   : > { %v1727_v36 = vpop.f32.mrb[60].mxu0 }
 0x249   : > { %v1847_v37 = vpop.f32.mrb[68].mxu1  ;;  %v1739_v38 = vadd.f32 %v1727_v36, %v1619_v11  ;;  %v5092_v40 = vpop.f32.mrb[61].mxu0 }
 0x24a   : > { %v5115_v41 = vpop.f32.mrb[69].mxu1 }
 0x24b   : > { %v1859_v42 = vadd.f32 %v1847_v37, %v1739_v38  ;;  %v4369_v37 = vld [vmem:[%s7253_s5 + $0xc0] sm:$0xff]  ;;  %v4370_v38 = vld [vmem:[%s7253_s5 + $0xc8] sm:$0xff] }
 0x24c   : > { %v1732_v43 = vpop.f32.mrb[62].mxu0  ;;  %v2319_v41 = vld [vmem:[#allocation3 + $0x2] sm:$0xff] }
 0x24d   : > { %v1852_v44 = vpop.f32.mrb[70].mxu1  ;;  %v1740_v45 = vadd.f32 %v1732_v43, %v1620_v17  ;;  %v5095_v46 = vpop.f32.mrb[63].mxu0 }
 0x24e   : > { %v5118_v47 = vpop.f32.mrb[71].mxu1  ;;  %v6736_v46 = vld [vmem:[#allocation3 + $0xa] sm:$0xff] }
 0x24f   : > { %v1860_v48 = vadd.f32 %v1852_v44, %v1740_v45  ;;  %v4371_v44 = vld [vmem:[%s7253_s5 + $0xd0] sm:$0xff]  ;;  %v4372_v45 = vld [vmem:[%s7253_s5 + $0xd8] sm:$0xff] }
 0x250   : > { %v1952_v49 = vpop.f32.mrb[64].mxu0  ;;  %v5656_v47 = vpack.c.bf16 %v4372_v45, %v4371_v44  ;;  %v4433_v44 = vld [vmem:[%s7253_s5 + $0x1c0] sm:$0xff]  ;;  %v4434_v45 = vld [vmem:[%s7253_s5 + $0x1c8] sm:$0xff] }
 0x251   : > { %v1976_v51 = vadd.f32 %v1952_v49, %v1856_v23  ;;  %v5129_v52 = vpop.f32.mrb[65].mxu0  ;;  %v2029_v23 = vld [vmem:[#allocation3 + $0x8] sm:$0xff]  ;;  %v4374_v49 = vld [vmem:[%s7253_s5 + $0xe8] sm:$0xff] }
 0x253   : > { %v1988_v53 = vadd.f32 %v4328_v50, %v1976_v51 }
 0x254   : > { %v1957_v55 = vpop.f32.mrb[66].mxu0 }
 0x255   : > { %5897 = vtanh.f32 %v1988_v53  ;;  %v1977_v56 = vadd.f32 %v1957_v55, %v1857_v29  ;;  %v5132_v57 = vpop.f32.mrb[67].mxu0  ;;  %v4358_v29 = vld [vmem:[%s7253_s5 + $0xa8] sm:$0xff]  ;;  %v4375_v53 = vld [vmem:[%s7253_s5 + $0xf0] sm:$0xff]  ;;  %v4376_v55 = vld [vmem:[%s7253_s5 + $0xf8] sm:$0xff] }
 0x256   : > { %v5644_v31 = vpack.c.bf16 %v4358_v29, %v4357_v28  ;;  %v5664_v57 = vpack.c.bf16 %v4376_v55, %v4375_v53  ;;  %v2781_v28 = vld [vmem:[#allocation3 + $0xb] sm:$0xff]  ;;  %v5700_v29 = vpack.c.bf16 %v4418_v25, %v4417_v24 }
 0x257   : > { %v1989_v58 = vadd.f32 %v4328_v50, %v1977_v56  ;;  %v4437_v55 = vld [vmem:[%s7253_s5 + $0x1e0] sm:$0xff]  ;;  %v3464_v25 = vld [vmem:[%s7255_s7 + $0x8] sm:$0xff] }
 0x258   : > { %v1962_v59 = vpop.f32.mrb[68].mxu0  ;;  %v3463_v24 = vld [vmem:[%s7255_s7] sm:$0xff] }
 0x259   : > { %5899 = vtanh.f32 %v1989_v58  ;;  %v1978_v60 = vadd.f32 %v1962_v59, %v1858_v35  ;;  %v5135_v61 = vpop.f32.mrb[69].mxu0  ;;  %v4385_v59 = vld [vmem:[%s7253_s5 + $0x100] sm:$0xff] }
 0x25b   : > { %v1990_v62 = vadd.f32 %v4328_v50, %v1978_v60  ;;  %v4386_v60 = vld [vmem:[%s7253_s5 + $0x108] sm:$0xff] }
 0x25c   : > { %v1967_v63 = vpop.f32.mrb[70].mxu0 }
 0x25d   : > { %5901 = vtanh.f32 %v1990_v62  ;;  %v1979_v0 = vadd.f32 %v1967_v63, %v1859_v42  ;;  %v5138_v1 = vpop.f32.mrb[71].mxu0  ;;  %v5652_v42 = vpack.c.bf16 %v4370_v38, %v4369_v37  ;;  %v5668_v62 = vpack.c.bf16 %v4386_v60, %v4385_v59  ;;  %v4423_v38 = vld [vmem:[%s7253_s5 + $0x1b0] sm:$0xff]  ;;  %v4440_v60 = vld [vmem:[%s7253_s5 + $0x1f8] sm:$0xff] }
 0x25e   : > { %v4388_v1 = vld [vmem:[%s7253_s5 + $0x118] sm:$0xff] }
 0x25f   : > { %v5898_v3 = vpop.eup %5897  ;;  %v1991_v4 = vadd.f32 %v4328_v50, %v1979_v0  ;;  %v4387_v0 = vld [vmem:[%s7253_s5 + $0x110] sm:$0xff] }
 0x260   : > { %2014 = vst.msk [vmem:[#allocation3 + $0x16] sm:$0x80] %vm2013_vm9, %v5898_v3  ;;  %v1972_v6 = vpop.f32.mrb[72].mxu0  ;;  %vm3444_vm9 = vcmask 256000  }
 0x261   : > { %2012 = vst.msk [vmem:[#allocation3 + $0x14] sm:$0x1f] %vm2011_vm10, %v5898_v3  ;;  %5903 = vtanh.f32 %v1991_v4  ;;  %v1980_v7 = vadd.f32 %v1972_v6, %v1860_v48  ;;  %v5141_v8 = vpop.f32.mrb[73].mxu0  ;;  %v4373_v48 = vld [vmem:[%s7253_s5 + $0xe0] sm:$0xff]  ;;  %v5672_v3 = vpack.c.bf16 %v4388_v1, %v4387_v0  ;;  %v4390_v6 = vld [vmem:[%s7253_s5 + $0x128] sm:$0xff]  ;;  %v4451_v0 = vld [vmem:[%s7253_s5 + $0x210] sm:$0xff] }
 0x262   : > { %v5660_v51 = vpack.c.bf16 %v4374_v49, %v4373_v48  ;;  %v4389_v4 = vld [vmem:[%s7253_s5 + $0x120] sm:$0xff]  ;;  %v4392_v8 = vld [vmem:[%s7253_s5 + $0x138] sm:$0xff]  ;;  %v5716_v48 = vpack.c.bf16 %v4434_v45, %v4433_v44  ;;  %v4435_v49 = vld [vmem:[%s7253_s5 + $0x1d0] sm:$0xff]  ;;  %vm3446_vm10 = vcmask 261125  }
 0x263   : > { %v5900_v9 = vpop.eup %5899  ;;  %v1992_v10 = vadd.f32 %v4328_v50, %v1980_v7  ;;  %v5676_v7 = vpack.c.bf16 %v4390_v6, %v4389_v4  ;;  %v4452_v1 = vld [vmem:[%s7253_s5 + $0x218] sm:$0xff]  ;;  %v4453_v4 = vld [vmem:[%s7253_s5 + $0x220] sm:$0xff]  ;;  %v4454_v6 = vld [vmem:[%s7253_s5 + $0x228] sm:$0xff] }
 0x264   : > { %2018 = vst.msk [vmem:[#allocation3 + $0x20] sm:$0xc0] %vm2017_vm11, %v5900_v9  ;;  %vm3440_vm11 = vcmask 254976  }
 0x265   : > { %2016 = vst.msk [vmem:[#allocation3 + $0x1e] sm:$0xf] %vm2015_vm12, %v5900_v9  ;;  %5905 = vtanh.f32 %v1992_v10  ;;  %v4401_v10 = vld [vmem:[%s7253_s5 + $0x140] sm:$0xff]  ;;  %vm3442_vm12 = vcmask 261124  }
 0x267   : > { %v5902_v11 = vpop.eup %5901 }
 0x268   : > { %v6667_v12 = vld [vmem:[#allocation3 + $0x11] sm:$0xff]  ;;  %2020 = vst.msk [vmem:[#allocation3 + $0x28] sm:$0x7] %vm2019_vm13, %v5902_v11  ;;  %vm3448_vm13 = vcmask 257024  }
 0x269   : > { %5161 = vmatprep.mubr.msk.f32.mxu1 %vm1998_vm7, %v6667_v12  ;;  %2022 = vst.msk [vmem:[#allocation3 + $0x2a] sm:$0xe0] %vm2021_vm14, %v5902_v11  ;;  %v2030_v30 = vld [vmem:[#allocation3 + $0x10] sm:$0xff]  ;;  %vm3450_vm14 = vcmask 261126  }
 0x26a   : > { %v6746_v50 = vld [vmem:[#allocation3 + $0x12] sm:$0xff] }
 0x26b   : > { %v5904_v13 = vpop.eup %5903  ;;  %v4402_v11 = vld [vmem:[%s7253_s5 + $0x148] sm:$0xff] }
 0x26c   : > { %v6671_v14 = vld [vmem:[#allocation3 + $0x19] sm:$0xff]  ;;  %2024 = vst.msk [vmem:[#allocation3 + $0x32] sm:$0x3] %vm2023_vm15, %v5904_v13  ;;  %vm4105_vm15 = vcmask 105474  }
 0x26d   : > { %2026 = vst.msk [vmem:[#allocation3 + $0x34] sm:$0xf0] %vm2025_vm0, %v5904_v13  ;;  %5162 = vmatmul.mubr.msk.f32.gmra.mrb[74].mxu1 %vm1998_vm7, %v6671_v14  ;;  %v2031_v32 = vld [vmem:[#allocation3 + $0x18] sm:$0xff]  ;;  %v2032_v35 = vld [vmem:[#allocation3 + $0x20] sm:$0xff]  ;;  %vm4109_vm0 = vcmask 105475  }
 0x26e   : > { %v6750_v52 = vld [vmem:[#allocation3 + $0x1a] sm:$0xff] }
 0x26f   : > { %v5906_v15 = vpop.eup %5905  ;;  %v6675_v16 = vld [vmem:[#allocation3 + $0x21] sm:$0xff] }
 0x270   : > { %v6677_v17 = vld [vmem:[#allocation3 + $0x29] sm:$0xff]  ;;  %2027 = vst.msk [vmem:[#allocation3 + $0x3c] sm:$0x1] %vm2009_vm8, %v5906_v15  ;;  %5164 = vmatprep.mubr.msk.f32.mxu1 %vm1998_vm7, %v6675_v16  ;;  %v2480_v13 = vld [vmem:[#allocation3 + $0x41] sm:$0x1f]  ;;  %v4403_v15 = vld [vmem:[%s7253_s5 + $0x150] sm:$0xff] }
 0x271   : > { %5165 = vmatmul.mubr.msk.f32.gmra.mrb[76].mxu1 %vm1998_vm7, %v6677_v17  ;;  %v2033_v36 = vld [vmem:[#allocation3 + $0x28] sm:$0xff]  ;;  %vm3435_vm8 = vcmask 261122  }
 0x272   : > { %v6760_v56 = vld [vmem:[#allocation3 + $0x22] sm:$0xff]  ;;  %v6764_v58 = vld [vmem:[#allocation3 + $0x2a] sm:$0xff] }
 0x273   : > { %v2034_v40 = vld [vmem:[#allocation3 + $0x30] sm:$0xff]  ;;  %v2784_v37 = vld [vmem:[#allocation3 + $0x23] sm:$0xff] }
 0x274   : > { %v6684_v18 = vld [vmem:[#allocation3 + $0x31] sm:$0xff] }
 0x275   : > { %5167 = vmatprep.mubr.msk.f32.mxu1 %vm1998_vm7, %v6684_v18  ;;  %v6774_v61 = vld [vmem:[#allocation3 + $0x32] sm:$0xff] }
 0x277   : > { %v2051_v20 = vld [vmem:[#allocation3 + $0x39] sm:$0x1f] }
 0x278   : > { %5168 = vmatmul.mubr.msk.f32.gmra.mrb[78].mxu1 %vm1998_vm7, %v2051_v20  ;;  %v2035_v43 = vld [vmem:[#allocation3 + $0x38] sm:$0x1f] }
 0x279   : > { %5186 = vmatprep.mubr.msk.f32.mxu1 %vm1998_vm7, %v2028_v19  ;;  %v2326_v63 = vld [vmem:[#allocation3 + $0x3a] sm:$0x1f]  ;;  %v4406_v19 = vld [vmem:[%s7253_s5 + $0x168] sm:$0xff] }
 0x27c   : > { %5187 = vmatmul.mubr.msk.f32.vlgmr.msra.gmra.mrb[72].mxu1 %vm1998_vm7, %v2029_v23  ;;  %v5696_v23 = vpack.c.bf16 %v4408_v22, %v4407_v21  ;;  %v4469_v21 = vld [vmem:[%s7255_s7 + $0x38] sm:$0xff] }
 0x27d   : > { %5639 = vmatpush3.bf16.msra.mxu1 %v6661_v54  ;;  %5189 = vmatprep.mubr.msk.f32.mxu1 %vm1998_vm7, %v2030_v30  ;;  %v5648_v54 = vpack.c.bf16 %v4360_v34, %v4359_v33  ;;  %v4419_v30 = vld [vmem:[%s7253_s5 + $0x190] sm:$0xff]  ;;  %v4421_v34 = vld [vmem:[%s7253_s5 + $0x1a0] sm:$0xff] }
 0x27e   : > { %5641 = vmatprep.subr.bf16.mxu1 %v5640_v26  ;;  %v2782_v33 = vld [vmem:[#allocation3 + $0x13] sm:$0xff] }
 0x280   : > { %5190 = vmatmul.mubr.msk.f32.gmra.mrb[74].mxu1 %vm1998_vm7, %v2031_v32 }
 0x281   : > { %5643 = vmatpush3.bf16.msra.mxu1 %v5640_v26  ;;  %5192 = vmatprep.mubr.msk.f32.mxu1 %vm1998_vm7, %v2032_v35  ;;  %v6853_v26 = vld [vmem:[#allocation3 + $0x3a] sm:$0xff]  ;;  %v4422_v35 = vld [vmem:[%s7253_s5 + $0x1a8] sm:$0xff] }
 0x282   : > { %5645 = vmatprep.subr.bf16.mxu1 %v5644_v31 }
 0x284   : > { %5193 = vmatmul.mubr.msk.f32.gmra.mrb[76].mxu1 %vm1998_vm7, %v2033_v36  ;;  %v5708_v36 = vpack.c.bf16 %v4422_v35, %v4421_v34 }
 0x285   : > { %5647 = vmatpush3.bf16.msra.mxu1 %v5644_v31  ;;  %5195 = vmatprep.mubr.msk.f32.mxu1 %vm1998_vm7, %v2034_v40  ;;  %v4420_v31 = vld [vmem:[%s7253_s5 + $0x198] sm:$0xff] }
 0x286   : > { %5649 = vmatprep.subr.bf16.mxu1 %v5648_v54  ;;  %v5704_v32 = vpack.c.bf16 %v4420_v31, %v4419_v30  ;;  %v4424_v40 = vld [vmem:[%s7253_s5 + $0x1b8] sm:$0xff]  ;;  %v4465_v30 = vld [vmem:[%s7254_s6] ss:$0 sm:$0xff] }
 0x288   : > { %5196 = vmatmul.mubr.msk.f32.gmra.mrb[78].mxu1 %vm1998_vm7, %v2035_v43  ;;  %v2786_v43 = vld [vmem:[#allocation3 + $0x33] sm:$0xff] }
 0x289   : > { %5651 = vmatpush3.bf16.msra.mxu1 %v5648_v54  ;;  %5214 = vmatprep.mubr.msk.f32.mxu1 %vm1998_vm7, %v2319_v41  ;;  %v6872_v54 = vld [vmem:[#allocation3 + $0x1b] sm:$0xff]  ;;  %v2785_v41 = vld [vmem:[#allocation3 + $0x2b] sm:$0xff] }
 0x28a   : > { %5653 = vmatprep.subr.bf16.mxu1 %v5652_v42 }
 0x28c   : > { %5215 = vmatmul.mubr.msk.f32.vlgmr.msra.gmra.mrb[72].mxu1 %vm1998_vm7, %v6736_v46 }
 0x28d   : > { %5655 = vmatpush3.bf16.msra.mxu1 %v5652_v42  ;;  %5217 = vmatprep.mubr.msk.f32.mxu1 %vm1998_vm7, %v6746_v50  ;;  %v5712_v42 = vpack.c.bf16 %v4424_v40, %v4423_v38 }
 0x28e   : > { %5657 = vmatprep.subr.bf16.mxu1 %v5656_v47 }
 0x290   : > { %5218 = vmatmul.mubr.msk.f32.gmra.mrb[74].mxu1 %vm1998_vm7, %v6750_v52 }
 0x291   : > { %5659 = vmatpush3.bf16.msra.mxu1 %v5656_v47  ;;  %5220 = vmatprep.mubr.msk.f32.mxu1 %vm1998_vm7, %v6760_v56  ;;  %v2788_v47 = vld [vmem:[#allocation3 + $0x43] sm:$0x1f] }
 0x292   : > { %5661 = vmatprep.subr.bf16.mxu1 %v5660_v51 }
 0x294   : > { %5221 = vmatmul.mubr.msk.f32.gmra.mrb[76].mxu1 %vm1998_vm7, %v6764_v58 }
 0x295   : > { %5663 = vmatpush3.bf16.msra.mxu1 %v5660_v51  ;;  %5223 = vmatprep.mubr.msk.f32.mxu1 %vm1998_vm7, %v6774_v61  ;;  %v4436_v51 = vld [vmem:[%s7253_s5 + $0x1d8] sm:$0xff] }
 0x296   : > { %5665 = vmatprep.subr.bf16.mxu1 %v5664_v57  ;;  %v5720_v53 = vpack.c.bf16 %v4436_v51, %v4435_v49 }
 0x298   : > { %5224 = vmatmul.mubr.msk.f32.gmra.mrb[78].mxu1 %vm1998_vm7, %v2326_v63  ;;  %v4450_v63 = vld [vmem:[%s7253_s5 + $0x208] sm:$0xff] }
 0x299   : > { %5667 = vmatpush3.bf16.msra.mxu1 %v5664_v57  ;;  %5242 = vmatprep.mubr.msk.f32.mxu1 %vm1998_vm7, %v6625_v39  ;;  %v4391_v39 = vld [vmem:[%s7253_s5 + $0x130] sm:$0xff]  ;;  %v4438_v57 = vld [vmem:[%s7253_s5 + $0x1e8] sm:$0xff] }
 0x29a   : > { %5669 = vmatprep.subr.bf16.mxu1 %v5668_v62  ;;  %v5680_v9 = vpack.c.bf16 %v4392_v8, %v4391_v39  ;;  %v5724_v59 = vpack.c.bf16 %v4438_v57, %v4437_v55  ;;  %v4455_v39 = vld [vmem:[%s7253_s5 + $0x230] sm:$0xff]  ;;  %v4456_v8 = vld [vmem:[%s7253_s5 + $0x238] sm:$0xff] }
 0x29c   : > { %5243 = vmatmul.mubr.msk.f32.vlgmr.msra.gmra.mrb[72].mxu1 %vm1998_vm7, %v6667_v12  ;;  %v2479_v12 = vld [vmem:[#allocation3 + $0x39] sm:$0xff] }
 0x29d   : > { %5671 = vmatpush3.bf16.msra.mxu1 %v5668_v62  ;;  %5245 = vmatprep.mubr.msk.f32.mxu1 %vm1998_vm7, %v6671_v14  ;;  %v5684_v14 = vpack.c.bf16 %v4402_v11, %v4401_v10  ;;  %v4449_v62 = vld [vmem:[%s7253_s5 + $0x200] sm:$0xff]  ;;  %v5744_v10 = vpack.c.bf16 %v4456_v8, %v4455_v39 }
 0x29e   : > { %5673 = vmatprep.subr.bf16.mxu1 %v5672_v3  ;;  %v3096_v11 = vld [vmem:[#allocation3 + $0x4b] sm:$0x1f] }
 0x2a0   : > { %5246 = vmatmul.mubr.msk.f32.gmra.mrb[74].mxu1 %vm1998_vm7, %v6675_v16  ;;  %v4404_v16 = vld [vmem:[%s7253_s5 + $0x158] sm:$0xff] }
 0x2a1   : > { %5675 = vmatpush3.bf16.msra.mxu1 %v5672_v3  ;;  %5248 = vmatprep.mubr.msk.f32.mxu1 %vm1998_vm7, %v6677_v17  ;;  %v5688_v17 = vpack.c.bf16 %v4404_v16, %v4403_v15  ;;  %v5736_v3 = vpack.c.bf16 %v4452_v1, %v4451_v0  ;;  %v3246_v15 = vld [vmem:[#allocation3 + $0x2c] sm:$0xff]  ;;  %v3247_v16 = vld [vmem:[#allocation3 + $0x34] sm:$0xff] }
 0x2a2   : > { %5677 = vmatprep.subr.bf16.mxu1 %v5676_v7  ;;  %v4489_v0 = vld [vmem:[%s7255_s7 + $0x48] sm:$0xff] }
 0x2a4   : > { %5249 = vmatmul.mubr.msk.f32.gmra.mrb[76].mxu1 %vm1998_vm7, %v6684_v18  ;;  %v4405_v18 = vld [vmem:[%s7253_s5 + $0x160] sm:$0xff] }
 0x2a5   : > { %5679 = vmatpush3.bf16.msra.mxu1 %v5676_v7  ;;  %5251 = vmatprep.mubr.msk.f32.mxu1 %vm1998_vm7, %v2479_v12  ;;  %v5692_v20 = vpack.c.bf16 %v4406_v19, %v4405_v18  ;;  %v5740_v7 = vpack.c.bf16 %v4454_v6, %v4453_v4  ;;  %v3243_v12 = vld [vmem:[#allocation3 + $0x14] sm:$0xff]  ;;  %v3248_v18 = vld [vmem:[#allocation3 + $0x3c] sm:$0xff]  ;;  %v3250_v19 = vld [vmem:[#allocation3 + $0x4c] sm:$0x1f] }
 0x2a6   : > { %5681 = vmatprep.subr.bf16.mxu1 %v5680_v9  ;;  %v4490_v6 = vld [vmem:[%s7255_s7 + $0x50] sm:$0xff] }
 0x2a8   : > { %5252 = vmatmul.mubr.msk.f32.gmra.mrb[78].mxu1 %vm1998_vm7, %v2480_v13  ;;  %v3244_v13 = vld [vmem:[#allocation3 + $0x1c] sm:$0xff] }
 0x2a9   : > { %5683 = vmatpush3.bf16.msra.mxu1 %v5680_v9  ;;  %5270 = vmatprep.mubr.msk.f32.mxu1 %vm1998_vm7, %v6736_v46  ;;  %v2787_v46 = vld [vmem:[#allocation3 + $0x3b] sm:$0xff]  ;;  %v3095_v9 = vld [vmem:[#allocation3 + $0x43] sm:$0xff] }
 0x2aa   : > { %5685 = vmatprep.subr.bf16.mxu1 %v5684_v14 }
 0x2ac   : > { %5271 = vmatmul.mubr.msk.f32.vlgmr.msra.gmra.mrb[72].mxu1 %vm1998_vm7, %v6746_v50 }
 0x2ad   : > { %5687 = vmatpush3.bf16.msra.mxu1 %v5684_v14  ;;  %5273 = vmatprep.mubr.msk.f32.mxu1 %vm1998_vm7, %v6750_v52  ;;  %v3245_v14 = vld [vmem:[#allocation3 + $0x24] sm:$0xff] }
 0x2ae   : > { %5689 = vmatprep.subr.bf16.mxu1 %v5688_v17 }
 0x2b0   : > { %5274 = vmatmul.mubr.msk.f32.gmra.mrb[74].mxu1 %vm1998_vm7, %v6760_v56 }
 0x2b1   : > { %5691 = vmatpush3.bf16.msra.mxu1 %v5688_v17  ;;  %5276 = vmatprep.mubr.msk.f32.mxu1 %vm1998_vm7, %v6764_v58  ;;  %v3249_v17 = vld [vmem:[#allocation3 + $0x44] sm:$0xff] }
 0x2b2   : > { %5693 = vmatprep.subr.bf16.mxu1 %v5692_v20 }
 0x2b4   : > { %5277 = vmatmul.mubr.msk.f32.gmra.mrb[76].mxu1 %vm1998_vm7, %v6774_v61 }
 0x2b5   : > { %5695 = vmatpush3.bf16.msra.mxu1 %v5692_v20  ;;  %5279 = vmatprep.mubr.msk.f32.mxu1 %vm1998_vm7, %v6853_v26  ;;  %v4468_v20 = vld [vmem:[%s7255_s7 + $0x30] sm:$0xff] }
 0x2b6   : > { %5697 = vmatprep.subr.bf16.mxu1 %v5696_v23  ;;  %v5752_v22 = vpack.c.bf16 %v4469_v21, %v4468_v20  ;;  %v4504_v20 = vld [vmem:[%s7255_s7 + $0x78] sm:$0xff] }
 0x2b8   : > { %5280 = vmatmul.mubr.msk.f32.gmra.mrb[78].mxu1 %vm1998_vm7, %v2634_v27  ;;  %5753 = vmatpush3.bf16.msra.mxu0 %v5752_v22  ;;  %v3465_v27 = vld [vmem:[%s7255_s7 + $0x10] sm:$0xff] }
 0x2b9   : > { %5699 = vmatpush3.bf16.msra.mxu1 %v5696_v23  ;;  %5298 = vmatprep.mubr.msk.f32.mxu1 %vm1998_vm7, %v2781_v28  ;;  %v3467_v23 = vld [vmem:[#allocation4 + $0x1] sm:$0xff] }
 0x2ba   : > { %5701 = vmatprep.subr.bf16.mxu1 %v5700_v29  ;;  %5754 = vmatprep.subr.bf16.mxu0 %v5987_v2  ;;  %v3466_v28 = vld [vmem:[%s7255_s7 + $0x18] sm:$0xff] }
 0x2bb   : > { %5403 = vmatmul.mubr.msk.f32.vlgmr.msra.gmra.mrb[74].mxu0 %vm930_vm5, %v3467_v23 }
 0x2bc   : > { %5299 = vmatmul.mubr.msk.f32.vlgmr.msra.gmra.mrb[72].mxu1 %vm1998_vm7, %v2782_v33  ;;  %5405 = vmatprep.mubr.msk.f32.mxu0 %vm5989_vm3, %v5990_v5 }
 0x2bd   : > { %5703 = vmatpush3.bf16.msra.mxu1 %v5700_v29  ;;  %5301 = vmatprep.mubr.msk.f32.mxu1 %vm1998_vm7, %v6872_v54  ;;  %v5758_v29 = vpack.c.bf16 %v3466_v28, %v3465_v27 }
 0x2be   : > { %5705 = vmatprep.subr.bf16.mxu1 %v5704_v32 }
 0x2c0   : > { %5302 = vmatmul.mubr.msk.f32.gmra.mrb[74].mxu1 %vm1998_vm7, %v2784_v37 }
 0x2c1   : > { %5707 = vmatpush3.bf16.msra.mxu1 %v5704_v32  ;;  %5304 = vmatprep.mubr.msk.f32.mxu1 %vm1998_vm7, %v2785_v41 }
 0x2c2   : > { %5709 = vmatprep.subr.bf16.mxu1 %v5708_v36 }
 0x2c4   : > { %5305 = vmatmul.mubr.msk.f32.gmra.mrb[76].mxu1 %vm1998_vm7, %v2786_v43 }
 0x2c5   : > { %5711 = vmatpush3.bf16.msra.mxu1 %v5708_v36  ;;  %5307 = vmatprep.mubr.msk.f32.mxu1 %vm1998_vm7, %v2787_v46 }
 0x2c6   : > { %5713 = vmatprep.subr.bf16.mxu1 %v5712_v42 }
 0x2c8   : > { %5308 = vmatmul.mubr.msk.f32.gmra.mrb[78].mxu1 %vm1998_vm7, %v2788_v47 }
 0x2c9   : > { %5715 = vmatpush3.bf16.msra.mxu1 %v5712_v42  ;;  %5326 = vmatprep.mubr.msk.f32.mxu1 %vm1998_vm7, %v6746_v50  ;;  %v4439_v50 = vld [vmem:[%s7253_s5 + $0x1f0] sm:$0xff] }
 0x2ca   : > { %5717 = vmatprep.subr.bf16.mxu1 %v5716_v48 }
 0x2cc   : > { %5327 = vmatmul.mubr.msk.f32.vlgmr.msra.gmra.mrb[72].mxu1 %vm1998_vm7, %v6750_v52  ;;  %v2941_v52 = vld [vmem:[#allocation3 + $0x42] sm:$0xff] }
 0x2cd   : > { %5719 = vmatpush3.bf16.msra.mxu1 %v5716_v48  ;;  %5329 = vmatprep.mubr.msk.f32.mxu1 %vm1998_vm7, %v6760_v56  ;;  %v5728_v56 = vpack.c.bf16 %v4440_v60, %v4439_v50 }
 0x2ce   : > { %5721 = vmatprep.subr.bf16.mxu1 %v5720_v53 }
 0x2d0   : > { %5330 = vmatmul.mubr.msk.f32.gmra.mrb[74].mxu1 %vm1998_vm7, %v6764_v58  ;;  %v2942_v58 = vld [vmem:[#allocation3 + $0x4a] sm:$0x1f] }
 0x2d1   : > { %5723 = vmatpush3.bf16.msra.mxu1 %v5720_v53  ;;  %5332 = vmatprep.mubr.msk.f32.mxu1 %vm1998_vm7, %v6774_v61  ;;  %v5732_v61 = vpack.c.bf16 %v4450_v63, %v4449_v62 }
 0x2d2   : > { %5725 = vmatprep.subr.bf16.mxu1 %v5724_v59 }
 0x2d4   : > { %5333 = vmatmul.mubr.msk.f32.gmra.mrb[76].mxu1 %vm1998_vm7, %v6853_v26  ;;  %v5755_v26 = vpack.c.bf16 %v3464_v25, %v3463_v24  ;;  %v3763_v24 = vld [vmem:[#allocation4 + $0x49] sm:$0x7f] }
 0x2d5   : > { %5727 = vmatpush3.bf16.msra.mxu1 %v5724_v59  ;;  %5335 = vmatprep.mubr.msk.f32.mxu1 %vm1998_vm7, %v2941_v52 }
 0x2d6   : > { %5729 = vmatprep.subr.bf16.mxu1 %v5728_v56  ;;  %5756 = vmatpush3.bf16.msra.mxu0 %v5755_v26 }
 0x2d7   : > { %5757 = vmatprep.subr.bf16.mxu0 %v5987_v2 }
 0x2d8   : > { %5336 = vmatmul.mubr.msk.f32.gmra.mrb[78].mxu1 %vm1998_vm7, %v2942_v58 }
 0x2d9   : > { %5731 = vmatpush3.bf16.msra.mxu1 %v5728_v56  ;;  %5354 = vmatprep.mubr.msk.f32.mxu1 %vm1998_vm7, %v2782_v33 }
 0x2da   : > { %5733 = vmatprep.subr.bf16.mxu1 %v5732_v61  ;;  %5759 = vmatpush3.bf16.msra.mxu0 %v5758_v29 }
 0x2db   : > { %5760 = vmatprep.subr.bf16.mxu0 %v5987_v2 }
 0x2dc   : > { %5355 = vmatmul.mubr.msk.f32.vlgmr.msra.gmra.mrb[72].mxu1 %vm1998_vm7, %v6872_v54 }
 0x2dd   : > { %5735 = vmatpush3.bf16.msra.mxu1 %v5732_v61  ;;  %5357 = vmatprep.mubr.msk.f32.mxu1 %vm1998_vm7, %v2784_v37  ;;  %v4488_v61 = vld [vmem:[%s7255_s7 + $0x40] sm:$0xff] }
 0x2de   : > { %5737 = vmatprep.subr.bf16.mxu1 %v5736_v3  ;;  %v5761_v4 = vpack.c.bf16 %v4489_v0, %v4488_v61 }
 0x2e0   : > { %5358 = vmatmul.mubr.msk.f32.gmra.mrb[74].mxu1 %vm1998_vm7, %v2785_v41 }
 0x2e1   : > { %5739 = vmatpush3.bf16.msra.mxu1 %v5736_v3  ;;  %5360 = vmatprep.mubr.msk.f32.mxu1 %vm1998_vm7, %v2786_v43  ;;  %v3454_v3 = vld [vmem:[#allocation4] sm:$0xff] }
 0x2e2   : > { %5741 = vmatprep.subr.bf16.mxu1 %v5740_v7 }
 0x2e4   : > { %5361 = vmatmul.mubr.msk.f32.gmra.mrb[76].mxu1 %vm1998_vm7, %v2787_v46 }
 0x2e5   : > { %5743 = vmatpush3.bf16.msra.mxu1 %v5740_v7  ;;  %5363 = vmatprep.mubr.msk.f32.mxu1 %vm1998_vm7, %v3095_v9  ;;  %v4491_v7 = vld [vmem:[%s7255_s7 + $0x58] sm:$0xff] }
 0x2e6   : > { %5745 = vmatprep.subr.bf16.mxu1 %v5744_v10  ;;  %v5764_v39 = vpack.c.bf16 %v4491_v7, %v4490_v6 }
 0x2e8   : > { %5364 = vmatmul.mubr.msk.f32.gmra.mrb[78].mxu1 %vm1998_vm7, %v3096_v11 }
 0x2e9   : > { %5747 = vmatpush3.bf16.msra.mxu1 %v5744_v10  ;;  %5382 = vmatprep.mubr.msk.f32.mxu1 %vm1998_vm7, %v3243_v12 }
 0x2ec   : > { %5383 = vmatmul.mubr.msk.f32.vlgmr.msra.gmra.mrb[72].mxu1 %vm1998_vm7, %v3244_v13 }
 0x2ed   : > { %5385 = vmatprep.mubr.msk.f32.mxu1 %vm1998_vm7, %v3245_v14 }
 0x2f0   : > { %5386 = vmatmul.mubr.msk.f32.gmra.mrb[74].mxu1 %vm1998_vm7, %v3246_v15  ;;  %v4501_v15 = vld [vmem:[%s7255_s7 + $0x60] sm:$0xff] }
 0x2f1   : > { %5388 = vmatprep.mubr.msk.f32.mxu1 %vm1998_vm7, %v3247_v16  ;;  %v4502_v16 = vld [vmem:[%s7255_s7 + $0x68] sm:$0xff] }
 0x2f4   : > { %5389 = vmatmul.mubr.msk.f32.gmra.mrb[76].mxu1 %vm1998_vm7, %v3248_v18  ;;  %v5767_v18 = vpack.c.bf16 %v4502_v16, %v4501_v15 }
 0x2f5   : > { %5391 = vmatprep.mubr.msk.f32.mxu1 %vm1998_vm7, %v3249_v17 }
 0x2f8   : > { %5392 = vmatmul.mubr.msk.f32.gmra.mrb[78].mxu1 %vm1998_vm7, %v3250_v19  ;;  %vm3438_vm7 = vcmask 261123   ;;  %v4503_v19 = vld [vmem:[%s7255_s7 + $0x70] sm:$0xff] }
 0x2f9   : > { %v5770_v21 = vpack.c.bf16 %v4504_v20, %v4503_v19 }
 0x38e   : > { %v3574_v22 = vpop.f32.mrb[74].mxu0 }
 0x3bf   : > { %v5384_v31 = vpop.f32.mrb[72].mxu1 }
 0x3c0   : > { %v3405_v32 = vadd.f32 %v5384_v31, %v4465_v30  ;;  %v3350_v33 = vpop.f32.mrb[73].mxu1 }
 0x3c1   : > { %v3404_v34 = vadd.f32 %v4465_v30, %v3350_v33  ;;  %v3923_v33 = vld [vmem:[#allocation4 + $0x4a] sm:$0x7f] }
 0x3c2   : > { %5907 = vtanh.f32 %v3405_v32 }
 0x3c3   : > { %5909 = vtanh.f32 %v3404_v34  ;;  %v5387_v35 = vpop.f32.mrb[74].mxu1 }
 0x3c4   : > { %v3407_v54 = vadd.f32 %v5387_v35, %v4465_v30  ;;  %v3360_v36 = vpop.f32.mrb[75].mxu1 }
 0x3c5   : > { %v3406_v37 = vadd.f32 %v4465_v30, %v3360_v36 }
 0x3c6   : > { %5911 = vtanh.f32 %v3407_v54 }
 0x3c7   : > { %5913 = vtanh.f32 %v3406_v37  ;;  %v5390_v38 = vpop.f32.mrb[76].mxu1 }
 0x3c8   : > { %v3409_v40 = vadd.f32 %v5390_v38, %v4465_v30  ;;  %v3370_v41 = vpop.f32.mrb[77].mxu1 }
 0x3c9   : > { %v3408_v42 = vadd.f32 %v4465_v30, %v3370_v41 }
 0x3ca   : > { %5915 = vtanh.f32 %v3409_v40 }
 0x3cb   : > { %5917 = vtanh.f32 %v3408_v42  ;;  %v5393_v43 = vpop.f32.mrb[78].mxu1 }
 0x3cc   : > { %v5908_v44 = vpop.eup %5907  ;;  %v3411_v45 = vadd.f32 %v5393_v43, %v4465_v30  ;;  %v3380_v46 = vpop.f32.mrb[79].mxu1 }
 0x3cd   : > { %v5910_v47 = vpop.eup %5909  ;;  %v3410_v48 = vadd.f32 %v4465_v30, %v3380_v46  ;;  %3434 = vst.msk [vmem:[#allocation4 + $0x12] sm:$0xfe] %vm3433_vm2, %v5908_v44  ;;  %vm4113_vm2 = vcmask 105476  }
 0x3ce   : > { %3432 = vst.msk [vmem:[#allocation4 + $0xa] sm:$0x7f] %vm903_vm6, %v5910_v47  ;;  %5919 = vtanh.f32 %v3411_v45  ;;  %vm3452_vm6 = vcmask 258048  }
 0x3cf   : > { %5921 = vtanh.f32 %v3410_v48 }
 0x3d0   : > { %v5912_v49 = vpop.eup %5911 }
 0x3d1   : > { %v5914_v51 = vpop.eup %5913  ;;  %3437 = vst.msk [vmem:[#allocation4 + $0x22] sm:$0x1] %vm3430_vm1, %v5912_v49  ;;  %vm4111_vm1 = vcmask 100352  }
 0x3d2   : > { %3439 = vst.msk [vmem:[#allocation4 + $0x22] sm:$0xf8] %vm3438_vm7, %v5912_v49  ;;  %vm4115_vm7 = vcmask 101376  }
 0x3d3   : > { %3436 = vst.msk [vmem:[#allocation4 + $0x1a] sm:$0xfc] %vm3435_vm8, %v5914_v51  ;;  %vm4117_vm8 = vcmask 105477  }
 0x3d4   : > { %v5916_v53 = vpop.eup %5915  ;;  %v7003_v60 = vld [vmem:[#allocation4 + $0x11] sm:$0xff] }
 0x3d5   : > { %v5918_v55 = vpop.eup %5917  ;;  %3445 = vst.msk [vmem:[#allocation4 + $0x32] sm:$0x7] %vm3444_vm9, %v5916_v53  ;;  %v6997_v57 = vld [vmem:[#allocation4 + $0x9] sm:$0xff]  ;;  %v3916_v26 = vld [vmem:[#allocation4 + $0x12] sm:$0xff]  ;;  %vm4119_vm9 = vcmask 102400  }
 0x3d6   : > { %3447 = vst.msk [vmem:[#allocation4 + $0x32] sm:$0xe0] %vm3446_vm10, %v5916_v53  ;;  %5406 = vmatmul.mubr.msk.f32.gmra.mrb[76].mxu0 %vm930_vm5, %v6997_v57  ;;  %v3455_v8 = vld [vmem:[#allocation4 + $0x8] sm:$0xff]  ;;  %v3456_v9 = vld [vmem:[#allocation4 + $0x10] sm:$0xff]  ;;  %vm4121_vm10 = vcmask 105478  }
 0x3d7   : > { %3441 = vst.msk [vmem:[#allocation4 + $0x2a] sm:$0x3] %vm3440_vm11, %v5918_v55  ;;  %5408 = vmatprep.mubr.msk.f32.mxu0 %vm5989_vm3, %v5990_v5  ;;  %v3915_v25 = vld [vmem:[#allocation4 + $0xa] sm:$0xff]  ;;  %vm4123_vm11 = vcmask 103424  }
 0x3d8   : > { %3443 = vst.msk [vmem:[#allocation4 + $0x2a] sm:$0xf0] %vm3442_vm12, %v5918_v55  ;;  %v5920_v59 = vpop.eup %5919  ;;  %vm4125_vm12 = vcmask 105479  }
 0x3d9   : > { %v5922_v50 = vpop.eup %5921  ;;  %3453 = vst.msk [vmem:[#allocation4 + $0x42] sm:$0x1f] %vm3452_vm6, %v5920_v59  ;;  %v3918_v28 = vld [vmem:[#allocation4 + $0x22] sm:$0xff]  ;;  %vm4127_vm6 = vcmask 104448  }
 0x3da   : > { %3449 = vst.msk [vmem:[#allocation4 + $0x3a] sm:$0xf] %vm3448_vm13, %v5922_v50  ;;  %5409 = vmatmul.mubr.msk.f32.gmra.mrb[78].mxu0 %vm930_vm5, %v7003_v60  ;;  %v7009_v52 = vld [vmem:[#allocation4 + $0x19] sm:$0xff]  ;;  %v7015_v56 = vld [vmem:[#allocation4 + $0x21] sm:$0xff] }
 0x3db   : > { %3451 = vst.msk [vmem:[#allocation4 + $0x3a] sm:$0xc0] %vm3450_vm14, %v5922_v50  ;;  %5411 = vmatprep.mubr.msk.f32.mxu0 %vm5989_vm3, %v5990_v5  ;;  %v3457_v10 = vld [vmem:[#allocation4 + $0x18] sm:$0xff]  ;;  %v3458_v11 = vld [vmem:[#allocation4 + $0x20] sm:$0xff] }
 0x3dc   : > { %v3917_v27 = vld [vmem:[#allocation4 + $0x1a] sm:$0xff] }
 0x3dd   : > { %v3920_v30 = vld [vmem:[#allocation4 + $0x32] sm:$0xff] }
 0x3de   : > { %5412 = vmatmul.mubr.msk.f32.gmra.mrb[80].mxu0 %vm930_vm5, %v7009_v52 }
 0x3df   : > { %5414 = vmatprep.mubr.msk.f32.mxu0 %vm5989_vm3, %v5990_v5  ;;  %v7021_v62 = vld [vmem:[#allocation4 + $0x29] sm:$0xff]  ;;  %v7027_v63 = vld [vmem:[#allocation4 + $0x31] sm:$0xff] }
 0x3e0   : > { %v3459_v12 = vld [vmem:[#allocation4 + $0x28] sm:$0xff]  ;;  %v3460_v13 = vld [vmem:[#allocation4 + $0x30] sm:$0xff] }
 0x3e1   : > { %v3461_v14 = vld [vmem:[#allocation4 + $0x38] sm:$0xff]  ;;  %v3919_v29 = vld [vmem:[#allocation4 + $0x2a] sm:$0xff]  ;;  %v3922_v32 = vld [vmem:[#allocation4 + $0x42] sm:$0xff] }
 0x3e2   : > { %5415 = vmatmul.mubr.msk.f32.gmra.mrb[82].mxu0 %vm930_vm5, %v7015_v56  ;;  %v7033_v58 = vld [vmem:[#allocation4 + $0x39] sm:$0xff]  ;;  %v3475_v1 = vld [vmem:[#allocation4 + $0x41] sm:$0x7f] }
 0x3e3   : > { %5417 = vmatprep.mubr.msk.f32.mxu0 %vm5989_vm3, %v5990_v5  ;;  %v3462_v17 = vld [vmem:[#allocation4 + $0x40] sm:$0x7f] }
 0x3e4   : > { %v3762_v23 = vld [vmem:[#allocation4 + $0x41] sm:$0xff] }
 0x3e5   : > { %v3921_v31 = vld [vmem:[#allocation4 + $0x3a] sm:$0xff] }
 0x3e6   : > { %5418 = vmatmul.mubr.msk.f32.gmra.mrb[84].mxu0 %vm930_vm5, %v7021_v62 }
 0x3e7   : > { %5420 = vmatprep.mubr.msk.f32.mxu0 %vm5989_vm3, %v5990_v5 }
 0x3ea   : > { %5421 = vmatmul.mubr.msk.f32.gmra.mrb[86].mxu0 %vm930_vm5, %v7027_v63 }
 0x3eb   : > { %5423 = vmatprep.mubr.msk.f32.mxu0 %vm5989_vm3, %v5990_v5 }
 0x3ee   : > { %5424 = vmatmul.mubr.msk.f32.gmra.mrb[88].mxu0 %vm930_vm5, %v7033_v58 }
 0x3ef   : > { %5426 = vmatprep.mubr.msk.f32.mxu0 %vm5989_vm3, %v5990_v5 }
 0x3f2   : > { %5427 = vmatmul.mubr.msk.f32.gmra.mrb[90].mxu0 %vm930_vm5, %v3475_v1 }
 0x3f3   : > { %5437 = vmatprep.mubr.msk.f32.mxu0 %vm5989_vm3, %v5990_v5 }
 0x3f6   : > { %5438 = vmatmul.mubr.msk.f32.vlgmr.msra.gmra.mrb[92].mxu0 %vm930_vm5, %v3454_v3 }
 0x3f7   : > { %5762 = vmatpush3.bf16.msra.mxu0 %v5761_v4  ;;  %5440 = vmatprep.mubr.msk.f32.mxu0 %vm5989_vm3, %v5990_v5 }
 0x3f8   : > { %5763 = vmatprep.subr.bf16.mxu0 %v5987_v2 }
 0x3fa   : > { %5441 = vmatmul.mubr.msk.f32.gmra.mrb[94].mxu0 %vm930_vm5, %v3455_v8 }
 0x3fb   : > { %5443 = vmatprep.mubr.msk.f32.mxu0 %vm5989_vm3, %v5990_v5  ;;  %5765 = vmatpush3.bf16.msra.mxu0 %v5764_v39 }
 0x3fc   : > { %5766 = vmatprep.subr.bf16.mxu0 %v5987_v2 }
 0x3fe   : > { %5444 = vmatmul.mubr.msk.f32.gmra.mrb[96].mxu0 %vm930_vm5, %v3456_v9 }
 0x3ff   : > { %5446 = vmatprep.mubr.msk.f32.mxu0 %vm5989_vm3, %v5990_v5 }
 0x402   : > { %5447 = vmatmul.mubr.msk.f32.gmra.mrb[98].mxu0 %vm930_vm5, %v3457_v10 }
 0x403   : > { %5449 = vmatprep.mubr.msk.f32.mxu0 %vm5989_vm3, %v5990_v5 }
 0x406   : > { %5450 = vmatmul.mubr.msk.f32.gmra.mrb[100].mxu0 %vm930_vm5, %v3458_v11 }
 0x407   : > { %5452 = vmatprep.mubr.msk.f32.mxu0 %vm5989_vm3, %v5990_v5 }
 0x40a   : > { %5453 = vmatmul.mubr.msk.f32.gmra.mrb[102].mxu0 %vm930_vm5, %v3459_v12 }
 0x40b   : > { %5455 = vmatprep.mubr.msk.f32.mxu0 %vm5989_vm3, %v5990_v5 }
 0x40e   : > { %5456 = vmatmul.mubr.msk.f32.gmra.mrb[104].mxu0 %vm930_vm5, %v3460_v13 }
 0x40f   : > { %5458 = vmatprep.mubr.msk.f32.mxu0 %vm5989_vm3, %v5990_v5 }
 0x412   : > { %5459 = vmatmul.mubr.msk.f32.gmra.mrb[106].mxu0 %vm930_vm5, %v3461_v14 }
 0x413   : > { %5461 = vmatprep.mubr.msk.f32.mxu0 %vm5989_vm3, %v5990_v5 }
 0x416   : > { %5462 = vmatmul.mubr.msk.f32.gmra.mrb[108].mxu0 %vm930_vm5, %v3462_v17 }
 0x417   : > { %5472 = vmatprep.mubr.msk.f32.mxu0 %vm5989_vm3, %v5990_v5 }
 0x41a   : > { %5473 = vmatmul.mubr.msk.f32.vlgmr.msra.gmra.mrb[110].mxu0 %vm930_vm5, %v6997_v57 }
 0x41b   : > { %5768 = vmatpush3.bf16.msra.mxu0 %v5767_v18  ;;  %5475 = vmatprep.mubr.msk.f32.mxu0 %vm5989_vm3, %v5990_v5 }
 0x41c   : > { %5769 = vmatprep.subr.bf16.mxu0 %v5987_v2  ;;  %v5404_v2 = vpop.f32.mrb[75].mxu0 }
 0x41e   : > { %5476 = vmatmul.mubr.msk.f32.gmra.mrb[112].mxu0 %vm930_vm5, %v7003_v60 }
 0x41f   : > { %5478 = vmatprep.mubr.msk.f32.mxu0 %vm5989_vm3, %v5990_v5  ;;  %5771 = vmatpush3.bf16.msra.mxu0 %v5770_v21 }
 0x422   : > { %5479 = vmatmul.mubr.msk.f32.gmra.mrb[114].mxu0 %vm930_vm5, %v7009_v52 }
 0x423   : > { %5481 = vmatprep.mubr.msk.f32.mxu0 %vm5989_vm3, %v5990_v5 }
 0x426   : > { %5482 = vmatmul.mubr.msk.f32.gmra.mrb[116].mxu0 %vm930_vm5, %v7015_v56 }
 0x427   : > { %5484 = vmatprep.mubr.msk.f32.mxu0 %vm5989_vm3, %v5990_v5 }
 0x42a   : > { %5485 = vmatmul.mubr.msk.f32.gmra.mrb[118].mxu0 %vm930_vm5, %v7021_v62 }
 0x42b   : > { %5487 = vmatprep.mubr.msk.f32.mxu0 %vm5989_vm3, %v5990_v5 }
 0x42e   : > { %5488 = vmatmul.mubr.msk.f32.gmra.mrb[120].mxu0 %vm930_vm5, %v7027_v63 }
 0x42f   : > { %5490 = vmatprep.mubr.msk.f32.mxu0 %vm5989_vm3, %v5990_v5 }
 0x432   : > { %5491 = vmatmul.mubr.msk.f32.gmra.mrb[122].mxu0 %vm930_vm5, %v7033_v58 }
 0x433   : > { %5493 = vmatprep.mubr.msk.f32.mxu0 %vm5989_vm3, %v5990_v5 }
 0x436   : > { %5494 = vmatmul.mubr.msk.f32.gmra.mrb[124].mxu0 %vm930_vm5, %v3762_v23 }
 0x437   : > { %5496 = vmatprep.mubr.msk.f32.mxu0 %vm5989_vm3, %v5990_v5 }
 0x43a   : > { %5497 = vmatmul.mubr.msk.f32.gmra.mrb[126].mxu0 %vm930_vm5, %v3763_v24 }
 0x43b   : > { %5507 = vmatprep.mubr.msk.f32.mxu0 %vm5989_vm3, %v5990_v5 }
 0x43e   : > { %5508 = vmatmul.mubr.msk.f32.vlgmr.msra.gmra.mrb[128].mxu0 %vm930_vm5, %v3915_v25 }
 0x43f   : > { %5510 = vmatprep.mubr.msk.f32.mxu0 %vm5989_vm3, %v5990_v5 }
 0x442   : > { %5511 = vmatmul.mubr.msk.f32.gmra.mrb[130].mxu0 %vm930_vm5, %v3916_v26 }
 0x443   : > { %5513 = vmatprep.mubr.msk.f32.mxu0 %vm5989_vm3, %v5990_v5 }
 0x446   : > { %5514 = vmatmul.mubr.msk.f32.gmra.mrb[132].mxu0 %vm930_vm5, %v3917_v27 }
 0x447   : > { %5516 = vmatprep.mubr.msk.f32.mxu0 %vm5989_vm3, %v5990_v5 }
 0x44a   : > { %5517 = vmatmul.mubr.msk.f32.gmra.mrb[134].mxu0 %vm930_vm5, %v3918_v28 }
 0x44b   : > { %5519 = vmatprep.mubr.msk.f32.mxu0 %vm5989_vm3, %v5990_v5 }
 0x44e   : > { %5520 = vmatmul.mubr.msk.f32.gmra.mrb[136].mxu0 %vm930_vm5, %v3919_v29 }
 0x44f   : > { %5522 = vmatprep.mubr.msk.f32.mxu0 %vm5989_vm3, %v5990_v5 }
 0x452   : > { %5523 = vmatmul.mubr.msk.f32.gmra.mrb[138].mxu0 %vm930_vm5, %v3920_v30 }
 0x453   : > { %5525 = vmatprep.mubr.msk.f32.mxu0 %vm5989_vm3, %v5990_v5 }
 0x456   : > { %5526 = vmatmul.mubr.msk.f32.gmra.mrb[140].mxu0 %vm930_vm5, %v3921_v31 }
 0x457   : > { %5528 = vmatprep.mubr.msk.f32.mxu0 %vm5989_vm3, %v5990_v5 }
 0x45a   : > { %5529 = vmatmul.mubr.msk.f32.gmra.mrb[142].mxu0 %vm930_vm5, %v3922_v32 }
 0x45b   : > { %5531 = vmatprep.mubr.msk.f32.mxu0 %vm5989_vm3, %v5990_v5  ;;  %vm4101_vm3 = vcmask 105473  }
 0x45e   : > { %5532 = vmatmul.mubr.msk.f32.gmra.mrb[144].mxu0 %vm930_vm5, %v3923_v33  ;;  %vm4103_vm5 = vcmask 98304  }
 0x4a9   : > { %v3579_v34 = vpop.f32.mrb[76].mxu0 }
 0x4aa   : > { %v5407_v35 = vpop.f32.mrb[77].mxu0 }
 0x4ad   : > { %v3584_v54 = vpop.f32.mrb[78].mxu0 }
 0x4ae   : > { %v5410_v36 = vpop.f32.mrb[79].mxu0 }
 0x4b1   : > { %v3589_v37 = vpop.f32.mrb[80].mxu0 }
 0x4b2   : > { %v5413_v38 = vpop.f32.mrb[81].mxu0 }
 0x4b5   : > { %v3594_v40 = vpop.f32.mrb[82].mxu0 }
 0x4b6   : > { %v5416_v41 = vpop.f32.mrb[83].mxu0 }
 0x4b7   : > { %v7163_v41 = vld [vmem:[%s7256_s8] ss:$0 sm:$0xff] }
 0x4b9   : > { %v3599_v42 = vpop.f32.mrb[84].mxu0 }
 0x4ba   : > { %v5419_v43 = vpop.f32.mrb[85].mxu0 }
 0x4bd   : > { %v3604_v44 = vpop.f32.mrb[86].mxu0 }
 0x4be   : > { %v5422_v45 = vpop.f32.mrb[87].mxu0 }
 0x4c1   : > { %v3609_v46 = vpop.f32.mrb[88].mxu0 }
 0x4c2   : > { %v5425_v47 = vpop.f32.mrb[89].mxu0 }
 0x4c5   : > { %v3614_v48 = vpop.f32.mrb[90].mxu0 }
 0x4c6   : > { %v5428_v49 = vpop.f32.mrb[91].mxu0 }
 0x4c9   : > { %v3711_v5 = vpop.f32.mrb[92].mxu0 }
 0x4ca   : > { %v3712_v51 = vadd.f32 %v3711_v5, %v3574_v22  ;;  %v5439_v53 = vpop.f32.mrb[93].mxu0 }
 0x4cd   : > { %v3716_v55 = vpop.f32.mrb[94].mxu0 }
 0x4ce   : > { %v3717_v57 = vadd.f32 %v3716_v55, %v3579_v34  ;;  %v5442_v59 = vpop.f32.mrb[95].mxu0 }
 0x4d1   : > { %v3721_v50 = vpop.f32.mrb[96].mxu0 }
 0x4d2   : > { %v3722_v60 = vadd.f32 %v3721_v50, %v3584_v54  ;;  %v5445_v52 = vpop.f32.mrb[97].mxu0 }
 0x4d5   : > { %v3726_v56 = vpop.f32.mrb[98].mxu0 }
 0x4d6   : > { %v3727_v62 = vadd.f32 %v3726_v56, %v3589_v37  ;;  %v5448_v63 = vpop.f32.mrb[99].mxu0 }
 0x4d9   : > { %v3731_v58 = vpop.f32.mrb[100].mxu0 }
 0x4da   : > { %v3732_v61 = vadd.f32 %v3731_v58, %v3594_v40  ;;  %v5451_v0 = vpop.f32.mrb[101].mxu0 }
 0x4dd   : > { %v3736_v1 = vpop.f32.mrb[102].mxu0 }
 0x4de   : > { %v3737_v3 = vadd.f32 %v3736_v1, %v3599_v42  ;;  %v5454_v4 = vpop.f32.mrb[103].mxu0 }
 0x4e1   : > { %v3741_v6 = vpop.f32.mrb[104].mxu0 }
 0x4e2   : > { %v3742_v7 = vadd.f32 %v3741_v6, %v3604_v44  ;;  %v5457_v39 = vpop.f32.mrb[105].mxu0 }
 0x4e5   : > { %v3746_v8 = vpop.f32.mrb[106].mxu0 }
 0x4e6   : > { %v3747_v9 = vadd.f32 %v3746_v8, %v3609_v46  ;;  %v5460_v10 = vpop.f32.mrb[107].mxu0 }
 0x4e9   : > { %v3751_v11 = vpop.f32.mrb[108].mxu0 }
 0x4ea   : > { %v3752_v12 = vadd.f32 %v3751_v11, %v3614_v48  ;;  %v5463_v13 = vpop.f32.mrb[109].mxu0 }
 0x4ed   : > { %v3862_v14 = vpop.f32.mrb[110].mxu0 }
 0x4ee   : > { %v3906_v15 = vadd.f32 %v3862_v14, %v3712_v51  ;;  %v5474_v16 = vpop.f32.mrb[111].mxu0 }
 0x4f1   : > { %v3867_v17 = vpop.f32.mrb[112].mxu0 }
 0x4f2   : > { %v3907_v18 = vadd.f32 %v3867_v17, %v3717_v57  ;;  %v5477_v19 = vpop.f32.mrb[113].mxu0 }
 0x4f5   : > { %v3872_v20 = vpop.f32.mrb[114].mxu0 }
 0x4f6   : > { %v3908_v21 = vadd.f32 %v3872_v20, %v3722_v60  ;;  %v5480_v22 = vpop.f32.mrb[115].mxu0 }
 0x4f9   : > { %v3877_v2 = vpop.f32.mrb[116].mxu0 }
 0x4fa   : > { %v3909_v23 = vadd.f32 %v3877_v2, %v3727_v62  ;;  %v5483_v24 = vpop.f32.mrb[117].mxu0 }
 0x4fd   : > { %v3882_v25 = vpop.f32.mrb[118].mxu0 }
 0x4fe   : > { %v3910_v26 = vadd.f32 %v3882_v25, %v3732_v61  ;;  %v5486_v27 = vpop.f32.mrb[119].mxu0 }
 0x501   : > { %v3887_v28 = vpop.f32.mrb[120].mxu0 }
 0x502   : > { %v3911_v29 = vadd.f32 %v3887_v28, %v3737_v3  ;;  %v5489_v30 = vpop.f32.mrb[121].mxu0 }
 0x505   : > { %v3892_v31 = vpop.f32.mrb[122].mxu0 }
 0x506   : > { %v3912_v32 = vadd.f32 %v3892_v31, %v3742_v7  ;;  %v5492_v33 = vpop.f32.mrb[123].mxu0 }
 0x509   : > { %v3897_v34 = vpop.f32.mrb[124].mxu0 }
 0x50a   : > { %v7155_v35 = vadd.f32 %v3897_v34, %v3747_v9  ;;  %v5495_v54 = vpop.f32.mrb[125].mxu0 }
 0x50d   : > { %v3902_v36 = vpop.f32.mrb[126].mxu0 }
 0x50e   : > { %v7157_v37 = vadd.f32 %v3902_v36, %v3752_v12  ;;  %v5498_v38 = vpop.f32.mrb[127].mxu0 }
 0x511   : > { %v4022_v40 = vpop.f32.mrb[128].mxu0 }
 0x512   : > { %v4066_v42 = vadd.f32 %v4022_v40, %v3906_v15  ;;  %v5509_v43 = vpop.f32.mrb[129].mxu0 }
 0x514   : > { %v4082_v44 = vadd.f32 %v7163_v41, %v4066_v42 }
 0x515   : > { %v4027_v45 = vpop.f32.mrb[130].mxu0 }
 0x516   : > { %v4091_v46 = vmax.f32 %v4082_v44, 0.0  ;;  %v4067_v47 = vadd.f32 %v4027_v45, %v3907_v18  ;;  %v5512_v48 = vpop.f32.mrb[131].mxu0 }
 0x518   : > { %4100 = vst.msk [vmem:[%s7168_s24] sm:$0xff] %vm350_vm4, %v4091_v46  ;;  %v4083_v49 = vadd.f32 %v7163_v41, %v4067_v47  ;;  %vm4107_vm4 = vcmask 99328  }
 0x519   : > { %v4032_v5 = vpop.f32.mrb[132].mxu0 }
 0x51a   : > { %v4092_v51 = vmax.f32 %v4083_v49, 0.0  ;;  %v4068_v53 = vadd.f32 %v4032_v5, %v3908_v21  ;;  %v5515_v55 = vpop.f32.mrb[133].mxu0 }
 0x51c   : > { %4102 = vst.msk [vmem:[%s7168_s24 + $0x7] sm:$0xfe] %vm4101_vm3, %v4092_v51  ;;  %v4084_v57 = vadd.f32 %v7163_v41, %v4068_v53 }
 0x51d   : > { %v4037_v59 = vpop.f32.mrb[134].mxu0 }
 0x51e   : > { %v4093_v50 = vmax.f32 %v4084_v57, 0.0  ;;  %v4069_v60 = vadd.f32 %v4037_v59, %v3909_v23  ;;  %v5518_v52 = vpop.f32.mrb[135].mxu0 }
 0x520   : > { %4104 = vst.msk [vmem:[%s7168_s24 + $0xf] sm:$0x1] %vm4103_vm5, %v4093_v50  ;;  %v4085_v56 = vadd.f32 %v7163_v41, %v4069_v60 }
 0x521   : > { %4106 = vst.msk [vmem:[%s7168_s24 + $0xe] sm:$0xfc] %vm4105_vm15, %v4093_v50  ;;  %v4042_v62 = vpop.f32.mrb[136].mxu0 }
 0x522   : > { %v4094_v63 = vmax.f32 %v4085_v56, 0.0  ;;  %v4070_v58 = vadd.f32 %v4042_v62, %v3910_v26  ;;  %v5521_v61 = vpop.f32.mrb[137].mxu0 }
 0x524   : > { %4108 = vst.msk [vmem:[%s7168_s24 + $0x16] sm:$0x3] %vm4107_vm4, %v4094_v63  ;;  %v4086_v0 = vadd.f32 %v7163_v41, %v4070_v58 }
 0x525   : > { %4110 = vst.msk [vmem:[%s7168_s24 + $0x15] sm:$0xf8] %vm4109_vm0, %v4094_v63  ;;  %v4047_v1 = vpop.f32.mrb[138].mxu0 }
 0x526   : > { %v4095_v3 = vmax.f32 %v4086_v0, 0.0  ;;  %v4071_v4 = vadd.f32 %v4047_v1, %v3911_v29  ;;  %v5524_v6 = vpop.f32.mrb[139].mxu0 }
 0x528   : > { %4112 = vst.msk [vmem:[%s7168_s24 + $0x1d] sm:$0x7] %vm4111_vm1, %v4095_v3  ;;  %v4087_v7 = vadd.f32 %v7163_v41, %v4071_v4 }
 0x529   : > { %4114 = vst.msk [vmem:[%s7168_s24 + $0x1c] sm:$0xf0] %vm4113_vm2, %v4095_v3  ;;  %v4052_v39 = vpop.f32.mrb[140].mxu0 }
 0x52a   : > { %v4096_v8 = vmax.f32 %v4087_v7, 0.0  ;;  %v4072_v9 = vadd.f32 %v4052_v39, %v3912_v32  ;;  %v5527_v10 = vpop.f32.mrb[141].mxu0 }
 0x52c   : > { %4116 = vst.msk [vmem:[%s7168_s24 + $0x24] sm:$0xf] %vm4115_vm7, %v4096_v8  ;;  %v4088_v11 = vadd.f32 %v7163_v41, %v4072_v9 }
 0x52d   : > { %4118 = vst.msk [vmem:[%s7168_s24 + $0x23] sm:$0xe0] %vm4117_vm8, %v4096_v8  ;;  %v4057_v12 = vpop.f32.mrb[142].mxu0 }
 0x52e   : > { %v4097_v13 = vmax.f32 %v4088_v11, 0.0  ;;  %v4073_v14 = vadd.f32 %v4057_v12, %v7155_v35  ;;  %v5530_v15 = vpop.f32.mrb[143].mxu0 }
 0x530   : > { %4120 = vst.msk [vmem:[%s7168_s24 + $0x2b] sm:$0x1f] %vm4119_vm9, %v4097_v13  ;;  %v4089_v16 = vadd.f32 %v7163_v41, %v4073_v14 }
 0x531   : > { %4122 = vst.msk [vmem:[%s7168_s24 + $0x2a] sm:$0xc0] %vm4121_vm10, %v4097_v13  ;;  %v4062_v17 = vpop.f32.mrb[144].mxu0 }
 0x532   : > { %v4098_v18 = vmax.f32 %v4089_v16, 0.0  ;;  %v4074_v19 = vadd.f32 %v4062_v17, %v7157_v37  ;;  %v5533_v20 = vpop.f32.mrb[145].mxu0 }
 0x534   : > { %4124 = vst.msk [vmem:[%s7168_s24 + $0x32] sm:$0x3f] %vm4123_vm11, %v4098_v18  ;;  %v4090_v21 = vadd.f32 %v7163_v41, %v4074_v19 }
 0x535   : > { %4126 = vst.msk [vmem:[%s7168_s24 + $0x31] sm:$0x80] %vm4125_vm12, %v4098_v18 }
 0x536   : > { %v4099_v22 = vmax.f32 %v4090_v21, 0.0 }
 0x538   : > { %4128 = vst.msk [vmem:[%s7168_s24 + $0x39] sm:$0x7f] %vm4127_vm6, %v4099_v22 }
 0x539   : > { %5936 = shalt.err (!%p5933_p3)
}
 0x53a   : > { %s5937_s17 = scalar_lea.hbm %s7200_s29, 1024  ;;  %s5941_s25 = scalar_lea.hbm %s7257_s9, 2048 }
 0x53b   : > { %p5938_p4 = scmp.ne.s32.totalorder %s7200_s29, %s5937_s17  ;;  %p5942_p9 = scmp.lt.u32.totalorder %s7200_s29, %s7257_s9 }
 0x53c   : > { %p5943_p10 = scmp.lt.u32.totalorder %s5941_s25, %s5937_s17  ;;  %p5945_p12 = scmp.lt.u32.totalorder %s5937_s17, %s7200_s29 }
 0x53d   : > { %p5939_p7 = pnand %p5938_p4, %p6082_p5 }
 0x53e   : > { %p5944_p11 = por %p5943_p10, %p5942_p9 }
 0x53f   : > { %p5940_p8 = pneg %p5939_p7 }
 0x540   : > { %p5946_p13 = por %p5945_p12, %p5944_p11 }
 0x542   : > { %p5947_p0 = pnand %p5946_p13, %p5940_p8 }
 0x544   : > { %5950 = shalt.err (!%p5947_p0)
}
 0x545   : > { %s5992_s14 = smov 128   ;;  %s5993_s16 = smov 8  }
 0x546   : > { %5838 = dma.vmem_to_hbm [thread:$0]  (%p6082_p5), %s7202_s26, 1024, %s7200_s29, %s7207_s13, %s5992_s14, %s5992_s14, %s5993_s16  }
 0x547 PF: > { %p5844_p1 = scmp.ge.s32.totalorder %s5985_s12, 2  ;;  %s4158_s21 = sand.u32 1, %s5973_s30  }
 0x548   : > { %s4159_s22 = scalar_lea.sflag [#allocation6], %s4158_s21 }
 0x549   : > { %p5841_p2 = pnand %p5844_p1, %p6086_p6 }
 0x54b   : > { %5968 = dma.done.wait (!%p5841_p2), %s4159_s22, 1024  }
 0x54c   : > { %5970 = vsyncadd (!%p5841_p2), %s4159_s22, 4294966272  ;;  %p19_p3 = scmp.ge.s32.totalorder %s6069_s15, 4   ;;  %s7262_s30 = smov %s5977_s10 }
 0x54d   : > { %s7263_s10 = smov %s5981_s11  ;;  %s7264_s11 = smov %s6080_s18 }
 0x54e   : > { %s7265_s12 = smov %s6069_s15  ;;  %21 = sbr.rel (!%p19_p3) target bundleno = 3 (0x3), region = 113 }
 0x555   :  { %4164 = vsyncpa [#allocation6], 1 }
 0x556   :  { %4166 = vsyncpa [#allocation6 + $0x1], 1 }

</bundles_post_ra>
